<compile_context>
chip_gen: v7x
topology: tpu7x:2x2x1
jax: 0.10.0
libtpu: 0.0.40
codegen_flags: <defaults>
</compile_context>

<pallas_src>
import functools

import jax
import jax.numpy as jnp
from jax import lax
from jax.experimental import pallas as pl
from jax.experimental.pallas import tpu as pltpu


def _temporal_cross_attn_kernel(
    x_in_ref,   # (bb, M, Tin)   x_matrix_in, flat (N*C) x time, natural layout
    x_out_ref,  # (bb, M, Tout)  x_matrix_out, feeds both k and the value matmul
    wq_ref,     # (N, M)   folded (C->1 linear o Wq)^T, pre-scaled by 1/sqrt(N)
    bq_ref,     # (1, N, 1) folded q bias (pre-scaled)
    wk_ref,     # (N, M)   folded (C->1 linear o Wk)^T
    bk_ref,     # (1, N, 1) folded k bias
    attn_ref,   # (bb, Tin*Tout)  lane-dense attention output
    out_ref,    # (bb, M*Tin)     lane-dense attended-features output
):
    bb, M, Tin = x_in_ref.shape
    Tout = x_out_ref.shape[2]
    N = wq_ref.shape[0]
    f32 = jnp.float32

    x_in = x_in_ref[...].astype(f32)     # (bb, M, Tin)
    x_out = x_out_ref[...].astype(f32)   # (bb, M, Tout)

    # Weight broadcasts hoisted once per chunk (never inside per-batch code).
    wq_b = jnp.broadcast_to(wq_ref[...][None], (bb, N, M))
    wk_b = jnp.broadcast_to(wk_ref[...][None], (bb, N, M))

    # qT[b,n,t] = sum_m wq[n,m] * x_in[b,m,t]   (C->1 linear, q proj, 1/sqrt(N) folded)
    # Plain batched NN matmul: batch dims (0,0), contract lhs-last with rhs-first.
    qT = lax.dot_general(wq_b, x_in, (((2,), (1,)), ((0,), (0,))),
                         preferred_element_type=f32) + bq_ref[...]       # (bb, N, Tin)
    kT = lax.dot_general(wk_b, x_out, (((2,), (1,)), ((0,), (0,))),
                         preferred_element_type=f32) + bk_ref[...]       # (bb, N, Tout)

    q3 = jnp.swapaxes(qT, 1, 2)                                          # (bb, Tin, N)

    # scores[b,t,s] = sum_n q3[b,t,n] * kT[b,n,s]   (batched NN matmul)
    scores = lax.dot_general(q3, kT, (((2,), (1,)), ((0,), (0,))),
                             preferred_element_type=f32)                 # (bb, Tin, Tout)

    # Slab-wide softmax over the key axis (all bb*Tin rows at once).
    scores = scores - jnp.max(scores, axis=-1, keepdims=True)
    e = jnp.exp(scores)
    denom = jnp.sum(e, axis=-1, keepdims=True)
    inv = pl.reciprocal(denom, approx=True)    # EUP slot
    inv = inv * (2.0 - denom * inv)            # one Newton step -> ~f32 accuracy
    attn = e * inv                                                       # (bb, Tin, Tout)

    # out[b,m,t] = sum_s x_out[b,m,s] * attn[b,t,s]   (batched NT matmul, flash form)
    out = lax.dot_general(x_out, attn, (((2,), (2,)), ((0,), (0,))),
                          preferred_element_type=f32)                    # (bb, M, Tin)

    # Lane-dense stores: write Tout-/Tin-wide windows of the flat output blocks so the
    # output VMEM blocks stay dense and the write-back DMA is one long contiguous row.
    attn_st = attn.astype(attn_ref.dtype)
    for t in range(Tin):
        attn_ref[:, t * Tout:(t + 1) * Tout] = attn_st[:, t, :]
    out_st = out.astype(out_ref.dtype)
    for m in range(M):
        out_ref[:, m * Tin:(m + 1) * Tin] = out_st[:, m, :]


def _ru(x, m):
    return (x + m - 1) // m * m


def _pick_batch_block(m, t_in, t_out, in_itemsize, out_itemsize):
    """Padding-aware ((8,128)-tiled, x2 double-buffered) VMEM estimate per batch."""
    sub_in = 8 * max(1, 4 // in_itemsize)                 # sublane granule: f32->8, bf16->16
    x_in_b = _ru(m, sub_in) * _ru(t_in, 128) * in_itemsize
    x_out_b = _ru(m, sub_in) * _ru(t_out, 128) * in_itemsize
    attn_b = _ru(t_in * t_out, 128) * 4                   # attn emitted in f32
    out_b = _ru(m * t_in, 128) * out_itemsize
    blocks = 2 * (x_in_b + x_out_b + attn_b + out_b)      # explicit double buffering
    # allowance for in-kernel f32 working values (casts, qT/kT/scores/attn/out)
    work = 3 * _ru(m, 8) * (_ru(t_in, 128) + _ru(t_out, 128)) * 4
    per_batch = max(1, blocks + work)
    budget = 24 * 1024 * 1024                             # of the 48 MiB scoped limit
    return max(1, budget // per_batch)


@functools.partial(jax.jit, static_argnames=("batch_block",))
def temporal_cross_attention(x_matrix_in, x_matrix_out, params, *, batch_block=None):
    """x_matrix_in: (B, N, C, Tin), x_matrix_out: (B, N, C, Tout) -- PyTorch convention."""
    B, N, C, Tin = x_matrix_in.shape
    Tout = x_matrix_out.shape[-1]
    M = N * C
    dt = jnp.float32
    out_dtype = x_matrix_in.dtype

    # Natural flat layouts -- pure reshapes, no HBM-copying transposes.
    x_in_r = x_matrix_in.reshape(B, M, Tin)
    x_out_r = x_matrix_out.reshape(B, M, Tout)

    # Fold the C->1 channel linears and the 1/sqrt(N) scale into the q/k projections
    # (parameter-only work, tiny shapes):  wqT[n, n'*C + c] = Wq[n, n'] * w_in[c] * scale.
    w_in = params["w_in"].reshape(C).astype(dt)
    w_out = params["w_out"].reshape(C).astype(dt)
    b_in = params["b_in"].reshape(()).astype(dt)
    b_out = params["b_out"].reshape(()).astype(dt)
    wq = params["wq"].astype(dt)
    bq = params["bq"].astype(dt)
    wk = params["wk"].astype(dt)
    bk = params["bk"].astype(dt)
    scale = 1.0 / jnp.sqrt(jnp.asarray(N, dt))

    wqT = (wq[:, :, None] * w_in[None, None, :]).reshape(N, M) * scale     # (N, M)
    bqv = ((b_in * jnp.sum(wq, axis=1) + bq) * scale).reshape(1, N, 1)
    wkT = (wk[:, :, None] * w_out[None, None, :]).reshape(N, M)            # (N, M)
    bkv = (b_out * jnp.sum(wk, axis=1) + bk).reshape(1, N, 1)

    in_isz = jnp.dtype(x_matrix_in.dtype).itemsize
    out_isz = jnp.dtype(out_dtype).itemsize
    if batch_block is None:
        bb = _pick_batch_block(M, Tin, Tout, in_isz, out_isz)
        # cap so n_chunks >= 2 whenever B >= 2 (keeps both v7x TensorCores busy)
        bb = min(bb, 128, max(1, pl.cdiv(B, 2)))
    else:
        bb = int(batch_block)
    bb = max(8, _ru(int(bb), 8))       # flat outputs' sublane dim stays 8-aligned

    n_chunks = pl.cdiv(B, bb)
    b_pad = n_chunks * bb
    if b_pad != B:
        pad = b_pad - B
        x_in_r = jnp.pad(x_in_r, ((0, pad), (0, 0), (0, 0)))
        x_out_r = jnp.pad(x_out_r, ((0, pad), (0, 0), (0, 0)))

    flops = 2 * B * (N * M * Tin + N * M * Tout + Tin * N * Tout + M * Tout * Tin)
    bytes_accessed = (b_pad * (M * Tin + M * Tout) * in_isz
                      + b_pad * Tin * Tout * 4
                      + b_pad * M * Tin * out_isz)
    cost = pl.CostEstimate(flops=int(flops),
                           transcendentals=int(B * Tin * Tout),
                           bytes_accessed=int(bytes_accessed))

    attn_flat, out_flat = pl.pallas_call(
        _temporal_cross_attn_kernel,
        out_shape=(
            jax.ShapeDtypeStruct((b_pad, Tin * Tout), jnp.float32),
            jax.ShapeDtypeStruct((b_pad, M * Tin), out_dtype),
        ),
        grid=(n_chunks,),
        in_specs=[
            pl.BlockSpec((bb, M, Tin), lambda i: (i, 0, 0)),
            pl.BlockSpec((bb, M, Tout), lambda i: (i, 0, 0)),
            pl.BlockSpec((N, M), lambda i: (0, 0)),        # weights: resident
            pl.BlockSpec((1, N, 1), lambda i: (0, 0, 0)),
            pl.BlockSpec((N, M), lambda i: (0, 0)),
            pl.BlockSpec((1, N, 1), lambda i: (0, 0, 0)),
        ],
        out_specs=(
            pl.BlockSpec((bb, Tin * Tout), lambda i: (i, 0)),
            pl.BlockSpec((bb, M * Tin), lambda i: (i, 0)),
        ),
        compiler_params=pltpu.CompilerParams(
            dimension_semantics=("parallel",),
            # heuristic budgets ~24 MiB of blocks+working set; 48 MiB leaves headroom
            # even on v7x's 64 MiB-per-TC VMEM and is far below v5e/v6e's 128 MiB.
            vmem_limit_bytes=48 * 1024 * 1024,
        ),
        cost_estimate=cost,
    )(x_in_r, x_out_r, wqT, bqv, wkT, bkv)

    attn = attn_flat[:B].reshape(B, Tin, Tout)
    x_out_res = out_flat[:B].reshape(B, N, C, Tin).astype(out_dtype)
    return x_out_res, attn


def reference(x_in, x_out, params):
    """Pure-JAX reference matching the PyTorch forward (heads=1, mask=None)."""
    B, N, C, Tin = x_in.shape
    Tout = x_out.shape[-1]
    xm_in = jnp.einsum("bnct,c->btn", x_in, params["w_in"][0]) + params["b_in"][0, 0]
    xm_out = jnp.einsum("bnct,c->btn", x_out, params["w_out"][0]) + params["b_out"][0, 0]
    q = jnp.einsum("btn,mn->btm", xm_in, params["wq"]) + params["bq"]
    k = jnp.einsum("bsn,mn->bsm", xm_out, params["wk"]) + params["bk"]
    scores = jnp.einsum("btm,bsm->bts", q, k) / jnp.sqrt(jnp.float32(N))
    attn = jax.nn.softmax(scores, axis=-1)
    out = jnp.einsum("bms,bts->bmt", x_out.reshape(B, N * C, Tout), attn)
    return out.reshape(B, N, C, Tin), attn


if __name__ == "__main__":
    B, N, C, Tin, Tout = 2, 8, 4, 16, 8   # vertices_num=N=8, in_channels=C=4, heads_num=1

    key = jax.random.PRNGKey(0)
    ks = jax.random.split(key, 10)
    x_matrix_in = jax.random.normal(ks[0], (B, N, C, Tin), jnp.float32)
    x_matrix_out = jax.random.normal(ks[1], (B, N, C, Tout), jnp.float32)

    # Deterministic synthetic parameters (same shapes as the PyTorch module's params).
    params = {
        "w_in": jax.random.normal(ks[2], (1, C), jnp.float32) * 0.5,   # channel_input_linear.weight
        "b_in": jax.random.normal(ks[3], (1, 1), jnp.float32) * 0.1,   # channel_input_linear.bias
        "w_out": jax.random.normal(ks[4], (1, C), jnp.float32) * 0.5,  # channel_output_linear.weight
        "b_out": jax.random.normal(ks[5], (1, 1), jnp.float32) * 0.1,  # channel_output_linear.bias
        "wq": jax.random.normal(ks[6], (N, N), jnp.float32) / jnp.sqrt(jnp.float32(N)),
        "bq": jax.random.normal(ks[7], (N,), jnp.float32) * 0.1,
        "wk": jax.random.normal(ks[8], (N, N), jnp.float32) / jnp.sqrt(jnp.float32(N)),
        "bk": jax.random.normal(ks[9], (N,), jnp.float32) * 0.1,
    }

    x_out_res, temporal_attention = temporal_cross_attention(x_matrix_in, x_matrix_out, params)
    jax.block_until_ready((x_out_res, temporal_attention))

    ref_out, ref_attn = reference(x_matrix_in, x_matrix_out, params)
    assert x_out_res.shape == (B, N, C, Tin)
    assert temporal_attention.shape == (B, Tin, Tout)
    assert jnp.allclose(temporal_attention, ref_attn, atol=1e-4, rtol=1e-4)
    assert jnp.allclose(x_out_res, ref_out, atol=1e-3, rtol=1e-3)

    print("KERNEL_OK")
</pallas_src>

<mosaic_0001>
module attributes {stable_mosaic.version = 11 : i64} {
  func.func @_temporal_cross_attn_kernel(%arg0: i32, %arg1: memref<8x32x16xf32, #tpu.memory_space<vmem>>, %arg2: memref<8x32x8xf32, #tpu.memory_space<vmem>>, %arg3: memref<8x32xf32, #tpu.memory_space<vmem>>, %arg4: memref<1x8x1xf32, #tpu.memory_space<vmem>>, %arg5: memref<8x32xf32, #tpu.memory_space<vmem>>, %arg6: memref<1x8x1xf32, #tpu.memory_space<vmem>>, %arg7: memref<8x128xf32, #tpu.memory_space<vmem>>, %arg8: memref<8x512xf32, #tpu.memory_space<vmem>>) attributes {dimension_semantics = [#tpu.dimension_semantics<parallel>], iteration_bounds = array<i64: 1>, scalar_prefetch = 0 : i64, scratch_operands = 0 : i64, tpu.core_type = #tpu.core_type<tc>, window_params = [{transform_indices = @transform_0, window_bounds = array<i64: 8, 32, 16>}, {transform_indices = @transform_1, window_bounds = array<i64: 8, 32, 8>}, {pipeline_mode = #tpu.pipeline_mode<synchronous>, transform_indices = @transform_2, window_bounds = array<i64: 8, 32>}, {pipeline_mode = #tpu.pipeline_mode<synchronous>, transform_indices = @transform_3, window_bounds = array<i64: 1, 8, 1>}, {pipeline_mode = #tpu.pipeline_mode<synchronous>, transform_indices = @transform_4, window_bounds = array<i64: 8, 32>}, {pipeline_mode = #tpu.pipeline_mode<synchronous>, transform_indices = @transform_5, window_bounds = array<i64: 1, 8, 1>}, {transform_indices = @transform_6, window_bounds = array<i64: 8, 128>}, {transform_indices = @transform_7, window_bounds = array<i64: 8, 512>}]} {
    %c0 = arith.constant 0 : index
    %c0_0 = arith.constant 0 : index
    %c0_1 = arith.constant 0 : index
    %0 = vector.load %arg1[%c0, %c0_0, %c0_1] : memref<8x32x16xf32, #tpu.memory_space<vmem>>, vector<8x32x16xf32>
    %c0_2 = arith.constant 0 : index
    %c0_3 = arith.constant 0 : index
    %c0_4 = arith.constant 0 : index
    %1 = vector.load %arg2[%c0_2, %c0_3, %c0_4] : memref<8x32x8xf32, #tpu.memory_space<vmem>>, vector<8x32x8xf32>
    %c0_5 = arith.constant 0 : index
    %c0_6 = arith.constant 0 : index
    %2 = vector.load %arg3[%c0_5, %c0_6] : memref<8x32xf32, #tpu.memory_space<vmem>>, vector<8x32xf32>
    %3 = vector.shape_cast %2 : vector<8x32xf32> to vector<1x8x32xf32>
    %4 = vector.shape_cast %3 : vector<1x8x32xf32> to vector<1x8x32xf32>
    %5 = vector.broadcast %4 : vector<1x8x32xf32> to vector<8x8x32xf32>
    %c0_7 = arith.constant 0 : index
    %c0_8 = arith.constant 0 : index
    %6 = vector.load %arg5[%c0_7, %c0_8] : memref<8x32xf32, #tpu.memory_space<vmem>>, vector<8x32xf32>
    %7 = vector.shape_cast %6 : vector<8x32xf32> to vector<1x8x32xf32>
    %8 = vector.shape_cast %7 : vector<1x8x32xf32> to vector<1x8x32xf32>
    %9 = vector.broadcast %8 : vector<1x8x32xf32> to vector<8x8x32xf32>
    %cst = arith.constant dense<0.000000e+00> : vector<8x8x16xf32>
    %10 = tpu.matmul %5, %0, %cst {dimension_numbers = #tpu.dot_dimension_numbers<[2], [1], [1], [2], [0, 0, 0, 1, 1, 2], [0], [0]>} : vector<8x8x32xf32>, vector<8x32x16xf32>, vector<8x8x16xf32> -> vector<8x8x16xf32>
    %c0_9 = arith.constant 0 : index
    %c0_10 = arith.constant 0 : index
    %c0_11 = arith.constant 0 : index
    %11 = vector.load %arg4[%c0_9, %c0_10, %c0_11] : memref<1x8x1xf32, #tpu.memory_space<vmem>>, vector<1x8x1xf32>
    %12 = vector.broadcast %11 : vector<1x8x1xf32> to vector<8x8x16xf32>
    %13 = arith.addf %10, %12 : vector<8x8x16xf32>
    %cst_12 = arith.constant dense<0.000000e+00> : vector<8x8x8xf32>
    %14 = tpu.matmul %9, %1, %cst_12 {dimension_numbers = #tpu.dot_dimension_numbers<[2], [1], [1], [2], [0, 0, 0, 1, 1, 2], [0], [0]>} : vector<8x8x32xf32>, vector<8x32x8xf32>, vector<8x8x8xf32> -> vector<8x8x8xf32>
    %c0_13 = arith.constant 0 : index
    %c0_14 = arith.constant 0 : index
    %c0_15 = arith.constant 0 : index
    %15 = vector.load %arg6[%c0_13, %c0_14, %c0_15] : memref<1x8x1xf32, #tpu.memory_space<vmem>>, vector<1x8x1xf32>
    %16 = vector.broadcast %15 : vector<1x8x1xf32> to vector<8x8x8xf32>
    %17 = arith.addf %14, %16 : vector<8x8x8xf32>
    %18 = tpu.transpose %13, [0, 2, 1] : vector<8x8x16xf32> -> vector<8x16x8xf32>
    %cst_16 = arith.constant dense<0.000000e+00> : vector<8x16x8xf32>
    %19 = tpu.matmul %18, %17, %cst_16 {dimension_numbers = #tpu.dot_dimension_numbers<[2], [1], [1], [2], [0, 0, 0, 1, 1, 2], [0], [0]>} : vector<8x16x8xf32>, vector<8x8x8xf32>, vector<8x16x8xf32> -> vector<8x16x8xf32>
    %cst_17 = arith.constant dense<0xFF800000> : vector<8x16xf32>
    %20 = vector.multi_reduction <maximumf>, %19, %cst_17 [2] : vector<8x16x8xf32> to vector<8x16xf32>
    %21 = vector.shape_cast %20 : vector<8x16xf32> to vector<8x16x1xf32>
    %22 = vector.broadcast %21 : vector<8x16x1xf32> to vector<8x16x8xf32>
    %23 = arith.subf %19, %22 : vector<8x16x8xf32>
    %24 = math.exp %23 : vector<8x16x8xf32>
    %cst_18 = arith.constant dense<0.000000e+00> : vector<8x16xf32>
    %25 = vector.multi_reduction <add>, %24, %cst_18 [2] : vector<8x16x8xf32> to vector<8x16xf32>
    %26 = vector.shape_cast %25 : vector<8x16xf32> to vector<8x16x1xf32>
    %27 = tpu.reciprocal %26 {approx = true} : vector<8x16x1xf32> -> vector<8x16x1xf32>
    %28 = arith.mulf %26, %27 : vector<8x16x1xf32>
    %cst_19 = arith.constant 2.000000e+00 : f32
    %29 = vector.broadcast %cst_19 : f32 to vector<8x16x1xf32>
    %30 = arith.subf %29, %28 : vector<8x16x1xf32>
    %31 = arith.mulf %27, %30 : vector<8x16x1xf32>
    %32 = vector.broadcast %31 : vector<8x16x1xf32> to vector<8x16x8xf32>
    %33 = arith.mulf %24, %32 : vector<8x16x8xf32>
    %cst_20 = arith.constant dense<0.000000e+00> : vector<8x32x16xf32>
    %34 = tpu.matmul %1, %33, %cst_20 {dimension_numbers = #tpu.dot_dimension_numbers<[2], [2], [1], [1], [0, 0, 0, 1, 1, 1], [0], [0]>} : vector<8x32x8xf32>, vector<8x16x8xf32>, vector<8x32x16xf32> -> vector<8x32x16xf32>
    %35 = vector.extract_strided_slice %33 {offsets = [0, 0, 0], sizes = [8, 1, 8], strides = [1, 1, 1]} : vector<8x16x8xf32> to vector<8x1x8xf32>
    %36 = vector.shape_cast %35 : vector<8x1x8xf32> to vector<8x8xf32>
    %c0_21 = arith.constant 0 : index
    %c0_22 = arith.constant 0 : index
    %37 = vector.load %arg7[%c0_21, %c0_22] : memref<8x128xf32, #tpu.memory_space<vmem>>, vector<8x8xf32>
    tpu.vector_store %arg7[%c0_21, %c0_22], %36 {strides = array<i32>} : memref<8x128xf32, #tpu.memory_space<vmem>>, vector<8x8xf32>,
    %38 = vector.extract_strided_slice %33 {offsets = [0, 1, 0], sizes = [8, 1, 8], strides = [1, 1, 1]} : vector<8x16x8xf32> to vector<8x1x8xf32>
    %39 = vector.shape_cast %38 : vector<8x1x8xf32> to vector<8x8xf32>
    %c0_23 = arith.constant 0 : index
    %c8 = arith.constant 8 : index
    %40 = vector.load %arg7[%c0_23, %c8] : memref<8x128xf32, #tpu.memory_space<vmem>>, vector<8x8xf32>
    tpu.vector_store %arg7[%c0_23, %c8], %39 {strides = array<i32>} : memref<8x128xf32, #tpu.memory_space<vmem>>, vector<8x8xf32>,
    %41 = vector.extract_strided_slice %33 {offsets = [0, 2, 0], sizes = [8, 1, 8], strides = [1, 1, 1]} : vector<8x16x8xf32> to vector<8x1x8xf32>
    %42 = vector.shape_cast %41 : vector<8x1x8xf32> to vector<8x8xf32>
    %c0_24 = arith.constant 0 : index
    %c16 = arith.constant 16 : index
    %43 = vector.load %arg7[%c0_24, %c16] : memref<8x128xf32, #tpu.memory_space<vmem>>, vector<8x8xf32>
    tpu.vector_store %arg7[%c0_24, %c16], %42 {strides = array<i32>} : memref<8x128xf32, #tpu.memory_space<vmem>>, vector<8x8xf32>,
    %44 = vector.extract_strided_slice %33 {offsets = [0, 3, 0], sizes = [8, 1, 8], strides = [1, 1, 1]} : vector<8x16x8xf32> to vector<8x1x8xf32>
    %45 = vector.shape_cast %44 : vector<8x1x8xf32> to vector<8x8xf32>
    %c0_25 = arith.constant 0 : index
    %c24 = arith.constant 24 : index
    %46 = vector.load %arg7[%c0_25, %c24] : memref<8x128xf32, #tpu.memory_space<vmem>>, vector<8x8xf32>
    tpu.vector_store %arg7[%c0_25, %c24], %45 {strides = array<i32>} : memref<8x128xf32, #tpu.memory_space<vmem>>, vector<8x8xf32>,
    %47 = vector.extract_strided_slice %33 {offsets = [0, 4, 0], sizes = [8, 1, 8], strides = [1, 1, 1]} : vector<8x16x8xf32> to vector<8x1x8xf32>
    %48 = vector.shape_cast %47 : vector<8x1x8xf32> to vector<8x8xf32>
    %c0_26 = arith.constant 0 : index
    %c32 = arith.constant 32 : index
    %49 = vector.load %arg7[%c0_26, %c32] : memref<8x128xf32, #tpu.memory_space<vmem>>, vector<8x8xf32>
    tpu.vector_store %arg7[%c0_26, %c32], %48 {strides = array<i32>} : memref<8x128xf32, #tpu.memory_space<vmem>>, vector<8x8xf32>,
    %50 = vector.extract_strided_slice %33 {offsets = [0, 5, 0], sizes = [8, 1, 8], strides = [1, 1, 1]} : vector<8x16x8xf32> to vector<8x1x8xf32>
    %51 = vector.shape_cast %50 : vector<8x1x8xf32> to vector<8x8xf32>
    %c0_27 = arith.constant 0 : index
    %c40 = arith.constant 40 : index
    %52 = vector.load %arg7[%c0_27, %c40] : memref<8x128xf32, #tpu.memory_space<vmem>>, vector<8x8xf32>
    tpu.vector_store %arg7[%c0_27, %c40], %51 {strides = array<i32>} : memref<8x128xf32, #tpu.memory_space<vmem>>, vector<8x8xf32>,
    %53 = vector.extract_strided_slice %33 {offsets = [0, 6, 0], sizes = [8, 1, 8], strides = [1, 1, 1]} : vector<8x16x8xf32> to vector<8x1x8xf32>
    %54 = vector.shape_cast %53 : vector<8x1x8xf32> to vector<8x8xf32>
    %c0_28 = arith.constant 0 : index
    %c48 = arith.constant 48 : index
    %55 = vector.load %arg7[%c0_28, %c48] : memref<8x128xf32, #tpu.memory_space<vmem>>, vector<8x8xf32>
    tpu.vector_store %arg7[%c0_28, %c48], %54 {strides = array<i32>} : memref<8x128xf32, #tpu.memory_space<vmem>>, vector<8x8xf32>,
    %56 = vector.extract_strided_slice %33 {offsets = [0, 7, 0], sizes = [8, 1, 8], strides = [1, 1, 1]} : vector<8x16x8xf32> to vector<8x1x8xf32>
    %57 = vector.shape_cast %56 : vector<8x1x8xf32> to vector<8x8xf32>
    %c0_29 = arith.constant 0 : index
    %c56 = arith.constant 56 : index
    %58 = vector.load %arg7[%c0_29, %c56] : memref<8x128xf32, #tpu.memory_space<vmem>>, vector<8x8xf32>
    tpu.vector_store %arg7[%c0_29, %c56], %57 {strides = array<i32>} : memref<8x128xf32, #tpu.memory_space<vmem>>, vector<8x8xf32>,
    %59 = vector.extract_strided_slice %33 {offsets = [0, 8, 0], sizes = [8, 1, 8], strides = [1, 1, 1]} : vector<8x16x8xf32> to vector<8x1x8xf32>
    %60 = vector.shape_cast %59 : vector<8x1x8xf32> to vector<8x8xf32>
    %c0_30 = arith.constant 0 : index
    %c64 = arith.constant 64 : index
    %61 = vector.load %arg7[%c0_30, %c64] : memref<8x128xf32, #tpu.memory_space<vmem>>, vector<8x8xf32>
    tpu.vector_store %arg7[%c0_30, %c64], %60 {strides = array<i32>} : memref<8x128xf32, #tpu.memory_space<vmem>>, vector<8x8xf32>,
    %62 = vector.extract_strided_slice %33 {offsets = [0, 9, 0], sizes = [8, 1, 8], strides = [1, 1, 1]} : vector<8x16x8xf32> to vector<8x1x8xf32>
    %63 = vector.shape_cast %62 : vector<8x1x8xf32> to vector<8x8xf32>
    %c0_31 = arith.constant 0 : index
    %c72 = arith.constant 72 : index
    %64 = vector.load %arg7[%c0_31, %c72] : memref<8x128xf32, #tpu.memory_space<vmem>>, vector<8x8xf32>
    tpu.vector_store %arg7[%c0_31, %c72], %63 {strides = array<i32>} : memref<8x128xf32, #tpu.memory_space<vmem>>, vector<8x8xf32>,
    %65 = vector.extract_strided_slice %33 {offsets = [0, 10, 0], sizes = [8, 1, 8], strides = [1, 1, 1]} : vector<8x16x8xf32> to vector<8x1x8xf32>
    %66 = vector.shape_cast %65 : vector<8x1x8xf32> to vector<8x8xf32>
    %c0_32 = arith.constant 0 : index
    %c80 = arith.constant 80 : index
    %67 = vector.load %arg7[%c0_32, %c80] : memref<8x128xf32, #tpu.memory_space<vmem>>, vector<8x8xf32>
    tpu.vector_store %arg7[%c0_32, %c80], %66 {strides = array<i32>} : memref<8x128xf32, #tpu.memory_space<vmem>>, vector<8x8xf32>,
    %68 = vector.extract_strided_slice %33 {offsets = [0, 11, 0], sizes = [8, 1, 8], strides = [1, 1, 1]} : vector<8x16x8xf32> to vector<8x1x8xf32>
    %69 = vector.shape_cast %68 : vector<8x1x8xf32> to vector<8x8xf32>
    %c0_33 = arith.constant 0 : index
    %c88 = arith.constant 88 : index
    %70 = vector.load %arg7[%c0_33, %c88] : memref<8x128xf32, #tpu.memory_space<vmem>>, vector<8x8xf32>
    tpu.vector_store %arg7[%c0_33, %c88], %69 {strides = array<i32>} : memref<8x128xf32, #tpu.memory_space<vmem>>, vector<8x8xf32>,
    %71 = vector.extract_strided_slice %33 {offsets = [0, 12, 0], sizes = [8, 1, 8], strides = [1, 1, 1]} : vector<8x16x8xf32> to vector<8x1x8xf32>
    %72 = vector.shape_cast %71 : vector<8x1x8xf32> to vector<8x8xf32>
    %c0_34 = arith.constant 0 : index
    %c96 = arith.constant 96 : index
    %73 = vector.load %arg7[%c0_34, %c96] : memref<8x128xf32, #tpu.memory_space<vmem>>, vector<8x8xf32>
    tpu.vector_store %arg7[%c0_34, %c96], %72 {strides = array<i32>} : memref<8x128xf32, #tpu.memory_space<vmem>>, vector<8x8xf32>,
    %74 = vector.extract_strided_slice %33 {offsets = [0, 13, 0], sizes = [8, 1, 8], strides = [1, 1, 1]} : vector<8x16x8xf32> to vector<8x1x8xf32>
    %75 = vector.shape_cast %74 : vector<8x1x8xf32> to vector<8x8xf32>
    %c0_35 = arith.constant 0 : index
    %c104 = arith.constant 104 : index
    %76 = vector.load %arg7[%c0_35, %c104] : memref<8x128xf32, #tpu.memory_space<vmem>>, vector<8x8xf32>
    tpu.vector_store %arg7[%c0_35, %c104], %75 {strides = array<i32>} : memref<8x128xf32, #tpu.memory_space<vmem>>, vector<8x8xf32>,
    %77 = vector.extract_strided_slice %33 {offsets = [0, 14, 0], sizes = [8, 1, 8], strides = [1, 1, 1]} : vector<8x16x8xf32> to vector<8x1x8xf32>
    %78 = vector.shape_cast %77 : vector<8x1x8xf32> to vector<8x8xf32>
    %c0_36 = arith.constant 0 : index
    %c112 = arith.constant 112 : index
    %79 = vector.load %arg7[%c0_36, %c112] : memref<8x128xf32, #tpu.memory_space<vmem>>, vector<8x8xf32>
    tpu.vector_store %arg7[%c0_36, %c112], %78 {strides = array<i32>} : memref<8x128xf32, #tpu.memory_space<vmem>>, vector<8x8xf32>,
    %80 = vector.extract_strided_slice %33 {offsets = [0, 15, 0], sizes = [8, 1, 8], strides = [1, 1, 1]} : vector<8x16x8xf32> to vector<8x1x8xf32>
    %81 = vector.shape_cast %80 : vector<8x1x8xf32> to vector<8x8xf32>
    %c0_37 = arith.constant 0 : index
    %c120 = arith.constant 120 : index
    %82 = vector.load %arg7[%c0_37, %c120] : memref<8x128xf32, #tpu.memory_space<vmem>>, vector<8x8xf32>
    tpu.vector_store %arg7[%c0_37, %c120], %81 {strides = array<i32>} : memref<8x128xf32, #tpu.memory_space<vmem>>, vector<8x8xf32>,
    %83 = vector.extract_strided_slice %34 {offsets = [0, 0, 0], sizes = [8, 1, 16], strides = [1, 1, 1]} : vector<8x32x16xf32> to vector<8x1x16xf32>
    %84 = vector.shape_cast %83 : vector<8x1x16xf32> to vector<8x16xf32>
    %c0_38 = arith.constant 0 : index
    %c0_39 = arith.constant 0 : index
    %85 = vector.load %arg8[%c0_38, %c0_39] : memref<8x512xf32, #tpu.memory_space<vmem>>, vector<8x16xf32>
    tpu.vector_store %arg8[%c0_38, %c0_39], %84 {strides = array<i32>} : memref<8x512xf32, #tpu.memory_space<vmem>>, vector<8x16xf32>,
    %86 = vector.extract_strided_slice %34 {offsets = [0, 1, 0], sizes = [8, 1, 16], strides = [1, 1, 1]} : vector<8x32x16xf32> to vector<8x1x16xf32>
    %87 = vector.shape_cast %86 : vector<8x1x16xf32> to vector<8x16xf32>
    %c0_40 = arith.constant 0 : index
    %c16_41 = arith.constant 16 : index
    %88 = vector.load %arg8[%c0_40, %c16_41] : memref<8x512xf32, #tpu.memory_space<vmem>>, vector<8x16xf32>
    tpu.vector_store %arg8[%c0_40, %c16_41], %87 {strides = array<i32>} : memref<8x512xf32, #tpu.memory_space<vmem>>, vector<8x16xf32>,
    %89 = vector.extract_strided_slice %34 {offsets = [0, 2, 0], sizes = [8, 1, 16], strides = [1, 1, 1]} : vector<8x32x16xf32> to vector<8x1x16xf32>
    %90 = vector.shape_cast %89 : vector<8x1x16xf32> to vector<8x16xf32>
    %c0_42 = arith.constant 0 : index
    %c32_43 = arith.constant 32 : index
    %91 = vector.load %arg8[%c0_42, %c32_43] : memref<8x512xf32, #tpu.memory_space<vmem>>, vector<8x16xf32>
    tpu.vector_store %arg8[%c0_42, %c32_43], %90 {strides = array<i32>} : memref<8x512xf32, #tpu.memory_space<vmem>>, vector<8x16xf32>,
    %92 = vector.extract_strided_slice %34 {offsets = [0, 3, 0], sizes = [8, 1, 16], strides = [1, 1, 1]} : vector<8x32x16xf32> to vector<8x1x16xf32>
    %93 = vector.shape_cast %92 : vector<8x1x16xf32> to vector<8x16xf32>
    %c0_44 = arith.constant 0 : index
    %c48_45 = arith.constant 48 : index
    %94 = vector.load %arg8[%c0_44, %c48_45] : memref<8x512xf32, #tpu.memory_space<vmem>>, vector<8x16xf32>
    tpu.vector_store %arg8[%c0_44, %c48_45], %93 {strides = array<i32>} : memref<8x512xf32, #tpu.memory_space<vmem>>, vector<8x16xf32>,
    %95 = vector.extract_strided_slice %34 {offsets = [0, 4, 0], sizes = [8, 1, 16], strides = [1, 1, 1]} : vector<8x32x16xf32> to vector<8x1x16xf32>
    %96 = vector.shape_cast %95 : vector<8x1x16xf32> to vector<8x16xf32>
    %c0_46 = arith.constant 0 : index
    %c64_47 = arith.constant 64 : index
    %97 = vector.load %arg8[%c0_46, %c64_47] : memref<8x512xf32, #tpu.memory_space<vmem>>, vector<8x16xf32>
    tpu.vector_store %arg8[%c0_46, %c64_47], %96 {strides = array<i32>} : memref<8x512xf32, #tpu.memory_space<vmem>>, vector<8x16xf32>,
    %98 = vector.extract_strided_slice %34 {offsets = [0, 5, 0], sizes = [8, 1, 16], strides = [1, 1, 1]} : vector<8x32x16xf32> to vector<8x1x16xf32>
    %99 = vector.shape_cast %98 : vector<8x1x16xf32> to vector<8x16xf32>
    %c0_48 = arith.constant 0 : index
    %c80_49 = arith.constant 80 : index
    %100 = vector.load %arg8[%c0_48, %c80_49] : memref<8x512xf32, #tpu.memory_space<vmem>>, vector<8x16xf32>
    tpu.vector_store %arg8[%c0_48, %c80_49], %99 {strides = array<i32>} : memref<8x512xf32, #tpu.memory_space<vmem>>, vector<8x16xf32>,
    %101 = vector.extract_strided_slice %34 {offsets = [0, 6, 0], sizes = [8, 1, 16], strides = [1, 1, 1]} : vector<8x32x16xf32> to vector<8x1x16xf32>
    %102 = vector.shape_cast %101 : vector<8x1x16xf32> to vector<8x16xf32>
    %c0_50 = arith.constant 0 : index
    %c96_51 = arith.constant 96 : index
    %103 = vector.load %arg8[%c0_50, %c96_51] : memref<8x512xf32, #tpu.memory_space<vmem>>, vector<8x16xf32>
    tpu.vector_store %arg8[%c0_50, %c96_51], %102 {strides = array<i32>} : memref<8x512xf32, #tpu.memory_space<vmem>>, vector<8x16xf32>,
    %104 = vector.extract_strided_slice %34 {offsets = [0, 7, 0], sizes = [8, 1, 16], strides = [1, 1, 1]} : vector<8x32x16xf32> to vector<8x1x16xf32>
    %105 = vector.shape_cast %104 : vector<8x1x16xf32> to vector<8x16xf32>
    %c0_52 = arith.constant 0 : index
    %c112_53 = arith.constant 112 : index
    %106 = vector.load %arg8[%c0_52, %c112_53] : memref<8x512xf32, #tpu.memory_space<vmem>>, vector<8x16xf32>
    tpu.vector_store %arg8[%c0_52, %c112_53], %105 {strides = array<i32>} : memref<8x512xf32, #tpu.memory_space<vmem>>, vector<8x16xf32>,
    %107 = vector.extract_strided_slice %34 {offsets = [0, 8, 0], sizes = [8, 1, 16], strides = [1, 1, 1]} : vector<8x32x16xf32> to vector<8x1x16xf32>
    %108 = vector.shape_cast %107 : vector<8x1x16xf32> to vector<8x16xf32>
    %c0_54 = arith.constant 0 : index
    %c128 = arith.constant 128 : index
    %109 = vector.load %arg8[%c0_54, %c128] : memref<8x512xf32, #tpu.memory_space<vmem>>, vector<8x16xf32>
    tpu.vector_store %arg8[%c0_54, %c128], %108 {strides = array<i32>} : memref<8x512xf32, #tpu.memory_space<vmem>>, vector<8x16xf32>,
    %110 = vector.extract_strided_slice %34 {offsets = [0, 9, 0], sizes = [8, 1, 16], strides = [1, 1, 1]} : vector<8x32x16xf32> to vector<8x1x16xf32>
    %111 = vector.shape_cast %110 : vector<8x1x16xf32> to vector<8x16xf32>
    %c0_55 = arith.constant 0 : index
    %c144 = arith.constant 144 : index
    %112 = vector.load %arg8[%c0_55, %c144] : memref<8x512xf32, #tpu.memory_space<vmem>>, vector<8x16xf32>
    tpu.vector_store %arg8[%c0_55, %c144], %111 {strides = array<i32>} : memref<8x512xf32, #tpu.memory_space<vmem>>, vector<8x16xf32>,
    %113 = vector.extract_strided_slice %34 {offsets = [0, 10, 0], sizes = [8, 1, 16], strides = [1, 1, 1]} : vector<8x32x16xf32> to vector<8x1x16xf32>
    %114 = vector.shape_cast %113 : vector<8x1x16xf32> to vector<8x16xf32>
    %c0_56 = arith.constant 0 : index
    %c160 = arith.constant 160 : index
    %115 = vector.load %arg8[%c0_56, %c160] : memref<8x512xf32, #tpu.memory_space<vmem>>, vector<8x16xf32>
    tpu.vector_store %arg8[%c0_56, %c160], %114 {strides = array<i32>} : memref<8x512xf32, #tpu.memory_space<vmem>>, vector<8x16xf32>,
    %116 = vector.extract_strided_slice %34 {offsets = [0, 11, 0], sizes = [8, 1, 16], strides = [1, 1, 1]} : vector<8x32x16xf32> to vector<8x1x16xf32>
    %117 = vector.shape_cast %116 : vector<8x1x16xf32> to vector<8x16xf32>
    %c0_57 = arith.constant 0 : index
    %c176 = arith.constant 176 : index
    %118 = vector.load %arg8[%c0_57, %c176] : memref<8x512xf32, #tpu.memory_space<vmem>>, vector<8x16xf32>
    tpu.vector_store %arg8[%c0_57, %c176], %117 {strides = array<i32>} : memref<8x512xf32, #tpu.memory_space<vmem>>, vector<8x16xf32>,
    %119 = vector.extract_strided_slice %34 {offsets = [0, 12, 0], sizes = [8, 1, 16], strides = [1, 1, 1]} : vector<8x32x16xf32> to vector<8x1x16xf32>
    %120 = vector.shape_cast %119 : vector<8x1x16xf32> to vector<8x16xf32>
    %c0_58 = arith.constant 0 : index
    %c192 = arith.constant 192 : index
    %121 = vector.load %arg8[%c0_58, %c192] : memref<8x512xf32, #tpu.memory_space<vmem>>, vector<8x16xf32>
    tpu.vector_store %arg8[%c0_58, %c192], %120 {strides = array<i32>} : memref<8x512xf32, #tpu.memory_space<vmem>>, vector<8x16xf32>,
    %122 = vector.extract_strided_slice %34 {offsets = [0, 13, 0], sizes = [8, 1, 16], strides = [1, 1, 1]} : vector<8x32x16xf32> to vector<8x1x16xf32>
    %123 = vector.shape_cast %122 : vector<8x1x16xf32> to vector<8x16xf32>
    %c0_59 = arith.constant 0 : index
    %c208 = arith.constant 208 : index
    %124 = vector.load %arg8[%c0_59, %c208] : memref<8x512xf32, #tpu.memory_space<vmem>>, vector<8x16xf32>
    tpu.vector_store %arg8[%c0_59, %c208], %123 {strides = array<i32>} : memref<8x512xf32, #tpu.memory_space<vmem>>, vector<8x16xf32>,
    %125 = vector.extract_strided_slice %34 {offsets = [0, 14, 0], sizes = [8, 1, 16], strides = [1, 1, 1]} : vector<8x32x16xf32> to vector<8x1x16xf32>
    %126 = vector.shape_cast %125 : vector<8x1x16xf32> to vector<8x16xf32>
    %c0_60 = arith.constant 0 : index
    %c224 = arith.constant 224 : index
    %127 = vector.load %arg8[%c0_60, %c224] : memref<8x512xf32, #tpu.memory_space<vmem>>, vector<8x16xf32>
    tpu.vector_store %arg8[%c0_60, %c224], %126 {strides = array<i32>} : memref<8x512xf32, #tpu.memory_space<vmem>>, vector<8x16xf32>,
    %128 = vector.extract_strided_slice %34 {offsets = [0, 15, 0], sizes = [8, 1, 16], strides = [1, 1, 1]} : vector<8x32x16xf32> to vector<8x1x16xf32>
    %129 = vector.shape_cast %128 : vector<8x1x16xf32> to vector<8x16xf32>
    %c0_61 = arith.constant 0 : index
    %c240 = arith.constant 240 : index
    %130 = vector.load %arg8[%c0_61, %c240] : memref<8x512xf32, #tpu.memory_space<vmem>>, vector<8x16xf32>
    tpu.vector_store %arg8[%c0_61, %c240], %129 {strides = array<i32>} : memref<8x512xf32, #tpu.memory_space<vmem>>, vector<8x16xf32>,
    %131 = vector.extract_strided_slice %34 {offsets = [0, 16, 0], sizes = [8, 1, 16], strides = [1, 1, 1]} : vector<8x32x16xf32> to vector<8x1x16xf32>
    %132 = vector.shape_cast %131 : vector<8x1x16xf32> to vector<8x16xf32>
    %c0_62 = arith.constant 0 : index
    %c256 = arith.constant 256 : index
    %133 = vector.load %arg8[%c0_62, %c256] : memref<8x512xf32, #tpu.memory_space<vmem>>, vector<8x16xf32>
    tpu.vector_store %arg8[%c0_62, %c256], %132 {strides = array<i32>} : memref<8x512xf32, #tpu.memory_space<vmem>>, vector<8x16xf32>,
    %134 = vector.extract_strided_slice %34 {offsets = [0, 17, 0], sizes = [8, 1, 16], strides = [1, 1, 1]} : vector<8x32x16xf32> to vector<8x1x16xf32>
    %135 = vector.shape_cast %134 : vector<8x1x16xf32> to vector<8x16xf32>
    %c0_63 = arith.constant 0 : index
    %c272 = arith.constant 272 : index
    %136 = vector.load %arg8[%c0_63, %c272] : memref<8x512xf32, #tpu.memory_space<vmem>>, vector<8x16xf32>
    tpu.vector_store %arg8[%c0_63, %c272], %135 {strides = array<i32>} : memref<8x512xf32, #tpu.memory_space<vmem>>, vector<8x16xf32>,
    %137 = vector.extract_strided_slice %34 {offsets = [0, 18, 0], sizes = [8, 1, 16], strides = [1, 1, 1]} : vector<8x32x16xf32> to vector<8x1x16xf32>
    %138 = vector.shape_cast %137 : vector<8x1x16xf32> to vector<8x16xf32>
    %c0_64 = arith.constant 0 : index
    %c288 = arith.constant 288 : index
    %139 = vector.load %arg8[%c0_64, %c288] : memref<8x512xf32, #tpu.memory_space<vmem>>, vector<8x16xf32>
    tpu.vector_store %arg8[%c0_64, %c288], %138 {strides = array<i32>} : memref<8x512xf32, #tpu.memory_space<vmem>>, vector<8x16xf32>,
    %140 = vector.extract_strided_slice %34 {offsets = [0, 19, 0], sizes = [8, 1, 16], strides = [1, 1, 1]} : vector<8x32x16xf32> to vector<8x1x16xf32>
    %141 = vector.shape_cast %140 : vector<8x1x16xf32> to vector<8x16xf32>
    %c0_65 = arith.constant 0 : index
    %c304 = arith.constant 304 : index
    %142 = vector.load %arg8[%c0_65, %c304] : memref<8x512xf32, #tpu.memory_space<vmem>>, vector<8x16xf32>
    tpu.vector_store %arg8[%c0_65, %c304], %141 {strides = array<i32>} : memref<8x512xf32, #tpu.memory_space<vmem>>, vector<8x16xf32>,
    %143 = vector.extract_strided_slice %34 {offsets = [0, 20, 0], sizes = [8, 1, 16], strides = [1, 1, 1]} : vector<8x32x16xf32> to vector<8x1x16xf32>
    %144 = vector.shape_cast %143 : vector<8x1x16xf32> to vector<8x16xf32>
    %c0_66 = arith.constant 0 : index
    %c320 = arith.constant 320 : index
    %145 = vector.load %arg8[%c0_66, %c320] : memref<8x512xf32, #tpu.memory_space<vmem>>, vector<8x16xf32>
    tpu.vector_store %arg8[%c0_66, %c320], %144 {strides = array<i32>} : memref<8x512xf32, #tpu.memory_space<vmem>>, vector<8x16xf32>,
    %146 = vector.extract_strided_slice %34 {offsets = [0, 21, 0], sizes = [8, 1, 16], strides = [1, 1, 1]} : vector<8x32x16xf32> to vector<8x1x16xf32>
    %147 = vector.shape_cast %146 : vector<8x1x16xf32> to vector<8x16xf32>
    %c0_67 = arith.constant 0 : index
    %c336 = arith.constant 336 : index
    %148 = vector.load %arg8[%c0_67, %c336] : memref<8x512xf32, #tpu.memory_space<vmem>>, vector<8x16xf32>
    tpu.vector_store %arg8[%c0_67, %c336], %147 {strides = array<i32>} : memref<8x512xf32, #tpu.memory_space<vmem>>, vector<8x16xf32>,
    %149 = vector.extract_strided_slice %34 {offsets = [0, 22, 0], sizes = [8, 1, 16], strides = [1, 1, 1]} : vector<8x32x16xf32> to vector<8x1x16xf32>
    %150 = vector.shape_cast %149 : vector<8x1x16xf32> to vector<8x16xf32>
    %c0_68 = arith.constant 0 : index
    %c352 = arith.constant 352 : index
    %151 = vector.load %arg8[%c0_68, %c352] : memref<8x512xf32, #tpu.memory_space<vmem>>, vector<8x16xf32>
    tpu.vector_store %arg8[%c0_68, %c352], %150 {strides = array<i32>} : memref<8x512xf32, #tpu.memory_space<vmem>>, vector<8x16xf32>,
    %152 = vector.extract_strided_slice %34 {offsets = [0, 23, 0], sizes = [8, 1, 16], strides = [1, 1, 1]} : vector<8x32x16xf32> to vector<8x1x16xf32>
    %153 = vector.shape_cast %152 : vector<8x1x16xf32> to vector<8x16xf32>
    %c0_69 = arith.constant 0 : index
    %c368 = arith.constant 368 : index
    %154 = vector.load %arg8[%c0_69, %c368] : memref<8x512xf32, #tpu.memory_space<vmem>>, vector<8x16xf32>
    tpu.vector_store %arg8[%c0_69, %c368], %153 {strides = array<i32>} : memref<8x512xf32, #tpu.memory_space<vmem>>, vector<8x16xf32>,
    %155 = vector.extract_strided_slice %34 {offsets = [0, 24, 0], sizes = [8, 1, 16], strides = [1, 1, 1]} : vector<8x32x16xf32> to vector<8x1x16xf32>
    %156 = vector.shape_cast %155 : vector<8x1x16xf32> to vector<8x16xf32>
    %c0_70 = arith.constant 0 : index
    %c384 = arith.constant 384 : index
    %157 = vector.load %arg8[%c0_70, %c384] : memref<8x512xf32, #tpu.memory_space<vmem>>, vector<8x16xf32>
    tpu.vector_store %arg8[%c0_70, %c384], %156 {strides = array<i32>} : memref<8x512xf32, #tpu.memory_space<vmem>>, vector<8x16xf32>,
    %158 = vector.extract_strided_slice %34 {offsets = [0, 25, 0], sizes = [8, 1, 16], strides = [1, 1, 1]} : vector<8x32x16xf32> to vector<8x1x16xf32>
    %159 = vector.shape_cast %158 : vector<8x1x16xf32> to vector<8x16xf32>
    %c0_71 = arith.constant 0 : index
    %c400 = arith.constant 400 : index
    %160 = vector.load %arg8[%c0_71, %c400] : memref<8x512xf32, #tpu.memory_space<vmem>>, vector<8x16xf32>
    tpu.vector_store %arg8[%c0_71, %c400], %159 {strides = array<i32>} : memref<8x512xf32, #tpu.memory_space<vmem>>, vector<8x16xf32>,
    %161 = vector.extract_strided_slice %34 {offsets = [0, 26, 0], sizes = [8, 1, 16], strides = [1, 1, 1]} : vector<8x32x16xf32> to vector<8x1x16xf32>
    %162 = vector.shape_cast %161 : vector<8x1x16xf32> to vector<8x16xf32>
    %c0_72 = arith.constant 0 : index
    %c416 = arith.constant 416 : index
    %163 = vector.load %arg8[%c0_72, %c416] : memref<8x512xf32, #tpu.memory_space<vmem>>, vector<8x16xf32>
    tpu.vector_store %arg8[%c0_72, %c416], %162 {strides = array<i32>} : memref<8x512xf32, #tpu.memory_space<vmem>>, vector<8x16xf32>,
    %164 = vector.extract_strided_slice %34 {offsets = [0, 27, 0], sizes = [8, 1, 16], strides = [1, 1, 1]} : vector<8x32x16xf32> to vector<8x1x16xf32>
    %165 = vector.shape_cast %164 : vector<8x1x16xf32> to vector<8x16xf32>
    %c0_73 = arith.constant 0 : index
    %c432 = arith.constant 432 : index
    %166 = vector.load %arg8[%c0_73, %c432] : memref<8x512xf32, #tpu.memory_space<vmem>>, vector<8x16xf32>
    tpu.vector_store %arg8[%c0_73, %c432], %165 {strides = array<i32>} : memref<8x512xf32, #tpu.memory_space<vmem>>, vector<8x16xf32>,
    %167 = vector.extract_strided_slice %34 {offsets = [0, 28, 0], sizes = [8, 1, 16], strides = [1, 1, 1]} : vector<8x32x16xf32> to vector<8x1x16xf32>
    %168 = vector.shape_cast %167 : vector<8x1x16xf32> to vector<8x16xf32>
    %c0_74 = arith.constant 0 : index
    %c448 = arith.constant 448 : index
    %169 = vector.load %arg8[%c0_74, %c448] : memref<8x512xf32, #tpu.memory_space<vmem>>, vector<8x16xf32>
    tpu.vector_store %arg8[%c0_74, %c448], %168 {strides = array<i32>} : memref<8x512xf32, #tpu.memory_space<vmem>>, vector<8x16xf32>,
    %170 = vector.extract_strided_slice %34 {offsets = [0, 29, 0], sizes = [8, 1, 16], strides = [1, 1, 1]} : vector<8x32x16xf32> to vector<8x1x16xf32>
    %171 = vector.shape_cast %170 : vector<8x1x16xf32> to vector<8x16xf32>
    %c0_75 = arith.constant 0 : index
    %c464 = arith.constant 464 : index
    %172 = vector.load %arg8[%c0_75, %c464] : memref<8x512xf32, #tpu.memory_space<vmem>>, vector<8x16xf32>
    tpu.vector_store %arg8[%c0_75, %c464], %171 {strides = array<i32>} : memref<8x512xf32, #tpu.memory_space<vmem>>, vector<8x16xf32>,
    %173 = vector.extract_strided_slice %34 {offsets = [0, 30, 0], sizes = [8, 1, 16], strides = [1, 1, 1]} : vector<8x32x16xf32> to vector<8x1x16xf32>
    %174 = vector.shape_cast %173 : vector<8x1x16xf32> to vector<8x16xf32>
    %c0_76 = arith.constant 0 : index
    %c480 = arith.constant 480 : index
    %175 = vector.load %arg8[%c0_76, %c480] : memref<8x512xf32, #tpu.memory_space<vmem>>, vector<8x16xf32>
    tpu.vector_store %arg8[%c0_76, %c480], %174 {strides = array<i32>} : memref<8x512xf32, #tpu.memory_space<vmem>>, vector<8x16xf32>,
    %176 = vector.extract_strided_slice %34 {offsets = [0, 31, 0], sizes = [8, 1, 16], strides = [1, 1, 1]} : vector<8x32x16xf32> to vector<8x1x16xf32>
    %177 = vector.shape_cast %176 : vector<8x1x16xf32> to vector<8x16xf32>
    %c0_77 = arith.constant 0 : index
    %c496 = arith.constant 496 : index
    %178 = vector.load %arg8[%c0_77, %c496] : memref<8x512xf32, #tpu.memory_space<vmem>>, vector<8x16xf32>
    tpu.vector_store %arg8[%c0_77, %c496], %177 {strides = array<i32>} : memref<8x512xf32, #tpu.memory_space<vmem>>, vector<8x16xf32>,
    return
  }
  func.func @transform_0(%arg0: i32) -> (i32, i32, i32) {
    %c0_i32 = arith.constant 0 : i32
    %c0_i32_0 = arith.constant 0 : i32
    %c0_i32_1 = arith.constant 0 : i32
    return %arg0, %c0_i32, %c0_i32_0 : i32, i32, i32
  }
  func.func @transform_1(%arg0: i32) -> (i32, i32, i32) {
    %c0_i32 = arith.constant 0 : i32
    %c0_i32_0 = arith.constant 0 : i32
    %c0_i32_1 = arith.constant 0 : i32
    return %arg0, %c0_i32, %c0_i32_0 : i32, i32, i32
  }
  func.func @transform_2(%arg0: i32) -> (i32, i32) {
    %c0_i32 = arith.constant 0 : i32
    %c0_i32_0 = arith.constant 0 : i32
    %c0_i32_1 = arith.constant 0 : i32
    return %c0_i32, %c0_i32_0 : i32, i32
  }
  func.func @transform_3(%arg0: i32) -> (i32, i32, i32) {
    %c0_i32 = arith.constant 0 : i32
    %c0_i32_0 = arith.constant 0 : i32
    %c0_i32_1 = arith.constant 0 : i32
    %c0_i32_2 = arith.constant 0 : i32
    return %c0_i32, %c0_i32_0, %c0_i32_1 : i32, i32, i32
  }
  func.func @transform_4(%arg0: i32) -> (i32, i32) {
    %c0_i32 = arith.constant 0 : i32
    %c0_i32_0 = arith.constant 0 : i32
    %c0_i32_1 = arith.constant 0 : i32
    return %c0_i32, %c0_i32_0 : i32, i32
  }
  func.func @transform_5(%arg0: i32) -> (i32, i32, i32) {
    %c0_i32 = arith.constant 0 : i32
    %c0_i32_0 = arith.constant 0 : i32
    %c0_i32_1 = arith.constant 0 : i32
    %c0_i32_2 = arith.constant 0 : i32
    return %c0_i32, %c0_i32_0, %c0_i32_1 : i32, i32, i32
  }
  func.func @transform_6(%arg0: i32) -> (i32, i32) {
    %c0_i32 = arith.constant 0 : i32
    %c0_i32_0 = arith.constant 0 : i32
    return %arg0, %c0_i32 : i32, i32
  }
  func.func @transform_7(%arg0: i32) -> (i32, i32) {
    %c0_i32 = arith.constant 0 : i32
    %c0_i32_0 = arith.constant 0 : i32
    return %arg0, %c0_i32 : i32, i32
  }
}

</mosaic_0001>

<bundles_post_ra>
// kernel: temporal_cross_attention.1
= control target key start
LH: loop header
LB: loop body
LE: loop exit
PB: predicated region body
PF: predicated region fallthrough
CT: control target
= control target key end

     0   :  { %v4845_v0 = vmov 0.0|0.0   ;;  %vm4846_vm0 = vmmov 0   ;;  %v4847_v8 = vmov 0.0   ;;  %v4848_v12 = vmov 0   ;;  %s4849_s30 = smov 120   ;;  %s4850_s8 = smov 112   ;;  %s6719_s0 = inlined_call_operand.vmem [shape: f32[8,32,16], index: 0, kind: input, shape index: {}]   ;;  %s6720_s2 = inlined_call_operand.vmem [shape: f32[8,32], index: 2, kind: input, shape index: {}]   ;;  %s6721_s3 = inlined_call_operand.vmem [shape: f32[1,8,1], index: 3, kind: input, shape index: {}]   ;;  %s6722_s5 = inlined_call_operand.vmem [shape: f32[1,8,1], index: 5, kind: input, shape index: {}]   ;;  %s6723_s1 = inlined_call_operand.vmem [shape: f32[8,32,8], index: 1, kind: input, shape index: {}]   ;;  %s6724_s4 = inlined_call_operand.vmem [shape: f32[8,32], index: 4, kind: input, shape index: {}]   ;;  %s6725_s6 = inlined_call_operand.vmem [shape: f32[8,128], index: 6, kind: output, shape index: {0}]   ;;  %s6726_s7 = inlined_call_operand.vmem [shape: f32[8,512], index: 7, kind: output, shape index: {1}]  }
   0x1   :  { %4593 = vmatprep.subr.bf16.mxu0 %v4845_v0  ;;  %4599 = vmatprep.subr.bf16.mxu1 %v4845_v0  ;;  %v25_v1 = vld [vmem:[%s6719_s0] sm:$0xff]  ;;  %v26_v2 = vld [vmem:[%s6719_s0 + $0x8] sm:$0xff]  ;;  %v27_v6 = vld [vmem:[%s6719_s0 + $0x10] sm:$0xff]  ;;  %vm97_vm1 = vcmask 261120   ;;  %vm1486_vm2 = vcmask 64512   ;;  %vm6727_vm3 = vcmask 1047559  }
   0x2   :  { %v29_v3 = vld [vmem:[%s6719_s0 + $0x20] sm:$0xff]  ;;  %v4594_v4 = vpack.c.bf16 %v26_v2, %v25_v1  ;;  %v30_v5 = vld [vmem:[%s6719_s0 + $0x28] sm:$0xff]  ;;  %v28_v7 = vld [vmem:[%s6719_s0 + $0x18] sm:$0xff]  ;;  %4305 = vmatprep.mubr.msk.f32.mxu0 %vm4846_vm0, %v4847_v8  ;;  %4316 = vmatprep.mubr.msk.f32.mxu1 %vm4846_vm0, %v4847_v8  ;;  %vm3199_vm4 = vcmask 1046534   ;;  %vm3196_vm6 = vcmask 1045509   ;;  %s4851_s9 = smov 56  }
   0x3   :  { %v4600_v9 = vpack.c.bf16 %v30_v5, %v29_v3  ;;  %v31_v10 = vld [vmem:[%s6719_s0 + $0x30] sm:$0xff]  ;;  %v32_v11 = vld [vmem:[%s6719_s0 + $0x38] sm:$0xff]  ;;  %4756 = vset.pattern.permute.xlu0 %v4848_v12  ;;  %v4597_v13 = vpack.c.bf16 %v28_v7, %v27_v6  ;;  %v33_v15 = vld [vmem:[%s6719_s0 + $0x40] sm:$0xff]  ;;  %s4853_s10 = smov 48   ;;  %vm3193_vm7 = vcmask 1044484   ;;  %s4854_s11 = smov 96  }
   0x4   :  { %4595 = vmatpush3.bf16.msra.mxu0 %v4594_v4  ;;  %v4603_v14 = vpack.c.bf16 %v32_v11, %v31_v10  ;;  %v34_v16 = vld [vmem:[%s6719_s0 + $0x48] sm:$0xff]  ;;  %v37_v17 = vld [vmem:[%s6719_s0 + $0x60] sm:$0xff]  ;;  %v35_v22 = vld [vmem:[%s6719_s0 + $0x50] sm:$0xff]  ;;  %s4855_s12 = smov 40   ;;  %s4856_s13 = smov 32   ;;  %vm3190_vm8 = vcmask 1043459  }
   0x5   :  { %4601 = vmatpush3.bf16.msra.mxu1 %v4600_v9  ;;  %4596 = vmatprep.subr.bf16.mxu0 %v4845_v0  ;;  %v38_v18 = vld [vmem:[%s6719_s0 + $0x68] sm:$0xff]  ;;  %v4951_v19 = vld [vmem:[%s6720_s2] sm:$0xff]  ;;  %v4606_v20 = vpack.c.bf16 %v34_v16, %v33_v15  ;;  %v36_v23 = vld [vmem:[%s6719_s0 + $0x58] sm:$0xff]  ;;  %s4852_s2 = smov 104   ;;  %s4857_s14 = smov 88   ;;  %vm3187_vm9 = vcmask 1042434  }
   0x6   :  { %4602 = vmatprep.subr.bf16.mxu1 %v4845_v0  ;;  %v4612_v21 = vpack.c.bf16 %v38_v18, %v37_v17  ;;  %v39_v24 = vld [vmem:[%s6719_s0 + $0x70] sm:$0xff]  ;;  %v40_v25 = vld [vmem:[%s6719_s0 + $0x78] sm:$0xff]  ;;  %v4609_v26 = vpack.c.bf16 %v36_v23, %v35_v22  ;;  %v41_v28 = vld [vmem:[%s6719_s0 + $0x80] sm:$0xff]  ;;  %s4858_s20 = smov 24   ;;  %s4859_s24 = smov 80   ;;  %vm3184_vm10 = vcmask 1041409  }
   0x7   :  { %v4615_v27 = vpack.c.bf16 %v40_v25, %v39_v24  ;;  %v42_v29 = vld [vmem:[%s6719_s0 + $0x88] sm:$0xff]  ;;  %v45_v30 = vld [vmem:[%s6719_s0 + $0xa0] sm:$0xff]  ;;  %v43_v34 = vld [vmem:[%s6719_s0 + $0x90] sm:$0xff]  ;;  %s4860_s16 = smov 16   ;;  %s4862_s15 = smov 8   ;;  %vm3218_vm11 = vcmask 130113  }
   0x8   :  { %4598 = vmatpush3.bf16.msra.mxu0 %v4597_v13  ;;  %v46_v31 = vld [vmem:[%s6719_s0 + $0xa8] sm:$0xff]  ;;  %v4618_v32 = vpack.c.bf16 %v42_v29, %v41_v28  ;;  %v44_v35 = vld [vmem:[%s6719_s0 + $0x98] sm:$0xff]  ;;  %v47_v36 = vld [vmem:[%s6719_s0 + $0xb0] sm:$0xff]  ;;  %vm3234_vm12 = vcmask 195714   ;;  %vm3250_vm13 = vcmask 261315   ;;  %vm3266_vm14 = vcmask 326916  }
   0x9   :  { %4604 = vmatpush3.bf16.msra.mxu1 %v4603_v14  ;;  %4605 = vmatprep.subr.bf16.mxu0 %v4845_v0  ;;  %v4624_v33 = vpack.c.bf16 %v46_v31, %v45_v30  ;;  %v48_v37 = vld [vmem:[%s6719_s0 + $0xb8] sm:$0xff]  ;;  %v4621_v38 = vpack.c.bf16 %v44_v35, %v43_v34  ;;  %v49_v40 = vld [vmem:[%s6719_s0 + $0xc0] sm:$0xff]  ;;  %v50_v41 = vld [vmem:[%s6719_s0 + $0xc8] sm:$0xff]  ;;  %vm3282_vm15 = vcmask 392517  }
   0xa   :  { %4611 = vmatprep.subr.bf16.mxu1 %v4845_v0  ;;  %v4627_v39 = vpack.c.bf16 %v48_v37, %v47_v36  ;;  %v53_v42 = vld [vmem:[%s6719_s0 + $0xe0] sm:$0xff]  ;;  %v54_v43 = vld [vmem:[%s6719_s0 + $0xe8] sm:$0xff]  ;;  %v4630_v45 = vpack.c.bf16 %v50_v41, %v49_v40  ;;  %v51_v47 = vld [vmem:[%s6719_s0 + $0xd0] sm:$0xff] }
   0xb   :  { %4306 = vmatmul.mubr.msk.f32.vlgmr.msra.gmra.mrb[0].mxu0 %vm97_vm1, %v4951_v19  ;;  %v91_v44 = vld [vmem:[%s6721_s3] sm:$0xff]  ;;  %v4636_v46 = vpack.c.bf16 %v54_v43, %v53_v42  ;;  %v52_v48 = vld [vmem:[%s6719_s0 + $0xd8] sm:$0xff]  ;;  %v55_v49 = vld [vmem:[%s6719_s0 + $0xf0] sm:$0xff] }
   0xc   :  { %4317 = vmatmul.mubr.msk.f32.vlgmr.msra.gmra.mrb[0].mxu1 %vm97_vm1, %v4951_v19  ;;  %4607 = vmatpush3.bf16.msra.mxu0 %v4606_v20  ;;  %v56_v50 = vld [vmem:[%s6719_s0 + $0xf8] sm:$0xff]  ;;  %v4633_v51 = vpack.c.bf16 %v52_v48, %v51_v47  ;;  %v661_v52 = vld [vmem:[%s6722_s5] sm:$0xff]  ;;  %v5058_v55 = vld [vmem:[%s6723_s1 + $0x8] sm:$0xff] }
   0xd   :  { %4613 = vmatpush3.bf16.msra.mxu1 %v4612_v21  ;;  %4608 = vmatprep.subr.bf16.mxu0 %v4845_v0  ;;  %v4639_v53 = vpack.c.bf16 %v56_v50, %v55_v49  ;;  %v5053_v54 = vld [vmem:[%s6723_s1] sm:$0xff]  ;;  %v5071_v57 = vld [vmem:[%s6723_s1 + $0x28] sm:$0xff]  ;;  %v5083_v60 = vld [vmem:[%s6723_s1 + $0x10] sm:$0xff] }
   0xe   :  { %4614 = vmatprep.subr.bf16.mxu1 %v4845_v0  ;;  %4327 = vmatprep.mubr.msk.f32.mxu0 %vm4846_vm0, %v4847_v8  ;;  %v5066_v56 = vld [vmem:[%s6723_s1 + $0x20] sm:$0xff]  ;;  %v4642_v58 = vpack.c.bf16 %v5058_v55, %v5053_v54  ;;  %v5088_v61 = vld [vmem:[%s6723_s1 + $0x18] sm:$0xff]  ;;  %v63_v62 = vld [vmem:[%s6723_s1 + $0x30] sm:$0xff] }
   0xf   :  { %4338 = vmatprep.mubr.msk.f32.mxu1 %vm4846_vm0, %v4847_v8  ;;  %94 = vperm.xlu0 %4756, %v91_v44   ;;  %v4648_v59 = vpack.c.bf16 %v5071_v57, %v5066_v56  ;;  %v64_v63 = vld [vmem:[%s6723_s1 + $0x38] sm:$0xff]  ;;  %v4645_v1 = vpack.c.bf16 %v5088_v61, %v5083_v60  ;;  %v5107_v3 = vld [vmem:[%s6723_s1 + $0x40] sm:$0xff]  ;;  %v66_v4 = vld [vmem:[%s6723_s1 + $0x48] sm:$0xff] }
  0x10   :  { %4610 = vmatpush3.bf16.msra.mxu0 %v4609_v26  ;;  %v4651_v2 = vpack.c.bf16 %v64_v63, %v63_v62  ;;  %v69_v5 = vld [vmem:[%s6723_s1 + $0x60] sm:$0xff]  ;;  %v70_v6 = vld [vmem:[%s6723_s1 + $0x68] sm:$0xff]  ;;  %v4654_v9 = vpack.c.bf16 %v66_v4, %v5107_v3  ;;  %v5133_v11 = vld [vmem:[%s6723_s1 + $0x50] sm:$0xff] }
  0x11   :  { %4616 = vmatpush3.bf16.msra.mxu1 %v4615_v27  ;;  %4617 = vmatprep.subr.bf16.mxu0 %v4845_v0  ;;  %v5126_v7 = vld [vmem:[%s6724_s4] sm:$0xff]  ;;  %v4660_v10 = vpack.c.bf16 %v70_v6, %v69_v5  ;;  %v68_v12 = vld [vmem:[%s6723_s1 + $0x58] sm:$0xff]  ;;  %v71_v13 = vld [vmem:[%s6723_s1 + $0x70] sm:$0xff]  ;;  %s4861_s4 = smov 72  }
  0x12   :  { %4623 = vmatprep.subr.bf16.mxu1 %v4845_v0  ;;  %v72_v14 = vld [vmem:[%s6723_s1 + $0x78] sm:$0xff]  ;;  %v4657_v15 = vpack.c.bf16 %v68_v12, %v5133_v11  ;;  %v73_v17 = vld [vmem:[%s6723_s1 + $0x80] sm:$0xff]  ;;  %v74_v18 = vld [vmem:[%s6723_s1 + $0x88] sm:$0xff] }
  0x13   :  { %4328 = vmatmul.mubr.msk.f32.vlgmr.msra.gmra.mrb[2].mxu0 %vm97_vm1, %v4951_v19  ;;  %664 = vperm.xlu0 %4756, %v661_v52   ;;  %v4663_v16 = vpack.c.bf16 %v72_v14, %v71_v13  ;;  %v78_v20 = vld [vmem:[%s6723_s1 + $0xa8] sm:$0xff]  ;;  %v4666_v21 = vpack.c.bf16 %v74_v18, %v73_v17  ;;  %v75_v23 = vld [vmem:[%s6723_s1 + $0x90] sm:$0xff]  ;;  %v76_v24 = vld [vmem:[%s6723_s1 + $0x98] sm:$0xff] }
  0x14   :  { %4339 = vmatmul.mubr.msk.f32.vlgmr.msra.gmra.mrb[2].mxu1 %vm97_vm1, %v4951_v19  ;;  %4619 = vmatpush3.bf16.msra.mxu0 %v4618_v32  ;;  %v79_v25 = vld [vmem:[%s6723_s1 + $0xb0] sm:$0xff]  ;;  %v80_v26 = vld [vmem:[%s6723_s1 + $0xb8] sm:$0xff]  ;;  %v4669_v27 = vpack.c.bf16 %v76_v24, %v75_v23  ;;  %v81_v29 = vld [vmem:[%s6723_s1 + $0xc0] sm:$0xff] }
  0x15   :  { %4625 = vmatpush3.bf16.msra.mxu1 %v4624_v33  ;;  %4620 = vmatprep.subr.bf16.mxu0 %v4845_v0  ;;  %v4675_v28 = vpack.c.bf16 %v80_v26, %v79_v25  ;;  %v82_v30 = vld [vmem:[%s6723_s1 + $0xc8] sm:$0xff]  ;;  %v85_v31 = vld [vmem:[%s6723_s1 + $0xe0] sm:$0xff]  ;;  %v83_v35 = vld [vmem:[%s6723_s1 + $0xd0] sm:$0xff] }
  0x16   :  { %4626 = vmatprep.subr.bf16.mxu1 %v4845_v0  ;;  %4349 = vmatprep.mubr.msk.f32.mxu0 %vm4846_vm0, %v4847_v8  ;;  %v86_v32 = vld [vmem:[%s6723_s1 + $0xe8] sm:$0xff]  ;;  %v4678_v33 = vpack.c.bf16 %v82_v30, %v81_v29  ;;  %v84_v36 = vld [vmem:[%s6723_s1 + $0xd8] sm:$0xff]  ;;  %v87_v37 = vld [vmem:[%s6723_s1 + $0xf0] sm:$0xff] }
  0x17   :  { %4360 = vmatprep.mubr.msk.f32.mxu1 %vm4846_vm0, %v4847_v8  ;;  %v4684_v34 = vpack.c.bf16 %v86_v32, %v85_v31  ;;  %vm5398_vm5 = vmpackc.low %vm1486_vm2, %vm1486_vm2 }
  0x18   :  { %4622 = vmatpush3.bf16.msra.mxu0 %v4621_v38  ;;  %v88_v38 = vld [vmem:[%s6723_s1 + $0xf8] sm:$0xff] }
  0x19   :  { %4628 = vmatpush3.bf16.msra.mxu1 %v4627_v39  ;;  %4629 = vmatprep.subr.bf16.mxu0 %v4845_v0  ;;  %v4681_v39 = vpack.c.bf16 %v84_v36, %v83_v35  ;;  %v4687_v40 = vpack.c.bf16 %v88_v38, %v87_v37 }
  0x1a   :  { %4635 = vmatprep.subr.bf16.mxu1 %v4845_v0 }
  0x1b   :  { %4350 = vmatmul.mubr.msk.f32.vlgmr.msra.gmra.mrb[4].mxu0 %vm97_vm1, %v4951_v19 }
  0x1c   :  { %4361 = vmatmul.mubr.msk.f32.vlgmr.msra.gmra.mrb[4].mxu1 %vm97_vm1, %v4951_v19  ;;  %4631 = vmatpush3.bf16.msra.mxu0 %v4630_v45 }
  0x1d   :  { %4637 = vmatpush3.bf16.msra.mxu1 %v4636_v46  ;;  %4632 = vmatprep.subr.bf16.mxu0 %v4845_v0 }
  0x1e   :  { %4638 = vmatprep.subr.bf16.mxu1 %v4845_v0  ;;  %4371 = vmatprep.mubr.msk.f32.mxu0 %vm4846_vm0, %v4847_v8 }
  0x1f   :  { %4382 = vmatprep.mubr.msk.f32.mxu1 %vm4846_vm0, %v4847_v8 }
  0x20   :  { %4634 = vmatpush3.bf16.msra.mxu0 %v4633_v51 }
  0x21   :  { %4640 = vmatpush3.bf16.msra.mxu1 %v4639_v53  ;;  %4641 = vmatprep.subr.bf16.mxu0 %v4845_v0 }
  0x22   :  { %4647 = vmatprep.subr.bf16.mxu1 %v4845_v0 }
  0x23   :  { %4372 = vmatmul.mubr.msk.f32.vlgmr.msra.gmra.mrb[6].mxu0 %vm97_vm1, %v4951_v19 }
  0x24   :  { %4383 = vmatmul.mubr.msk.f32.vlgmr.msra.gmra.mrb[6].mxu1 %vm97_vm1, %v4951_v19  ;;  %4643 = vmatpush3.bf16.msra.mxu0 %v4642_v58  ;;  %v77_v19 = vld [vmem:[%s6723_s1 + $0xa0] sm:$0xff] }
  0x25   :  { %4649 = vmatpush3.bf16.msra.mxu1 %v4648_v59  ;;  %4644 = vmatprep.subr.bf16.mxu0 %v4845_v0  ;;  %v4672_v22 = vpack.c.bf16 %v78_v20, %v77_v19 }
  0x26   :  { %4650 = vmatprep.subr.bf16.mxu1 %v4845_v0  ;;  %4393 = vmatprep.mubr.msk.f32.mxu0 %vm4846_vm0, %v4847_v8 }
  0x27   :  { %4404 = vmatprep.mubr.msk.f32.mxu1 %vm4846_vm0, %v4847_v8 }
  0x28   :  { %4646 = vmatpush3.bf16.msra.mxu0 %v4645_v1 }
  0x29   :  { %4652 = vmatpush3.bf16.msra.mxu1 %v4651_v2  ;;  %4653 = vmatprep.subr.bf16.mxu0 %v4845_v0 }
  0x2a   :  { %4659 = vmatprep.subr.bf16.mxu1 %v4845_v0 }
  0x2b   :  { %4394 = vmatmul.mubr.msk.f32.vlgmr.msra.gmra.mrb[8].mxu0 %vm97_vm1, %v5126_v7 }
  0x2c   :  { %4405 = vmatmul.mubr.msk.f32.vlgmr.msra.gmra.mrb[8].mxu1 %vm97_vm1, %v5126_v7  ;;  %4655 = vmatpush3.bf16.msra.mxu0 %v4654_v9 }
  0x2d   :  { %4661 = vmatpush3.bf16.msra.mxu1 %v4660_v10  ;;  %4656 = vmatprep.subr.bf16.mxu0 %v4845_v0 }
  0x2e   :  { %4662 = vmatprep.subr.bf16.mxu1 %v4845_v0  ;;  %4415 = vmatprep.mubr.msk.f32.mxu0 %vm4846_vm0, %v4847_v8 }
  0x2f   :  { %4426 = vmatprep.mubr.msk.f32.mxu1 %vm4846_vm0, %v4847_v8 }
  0x30   :  { %4658 = vmatpush3.bf16.msra.mxu0 %v4657_v15 }
  0x31   :  { %4664 = vmatpush3.bf16.msra.mxu1 %v4663_v16  ;;  %4665 = vmatprep.subr.bf16.mxu0 %v4845_v0 }
  0x32   :  { %4671 = vmatprep.subr.bf16.mxu1 %v4845_v0 }
  0x33   :  { %4416 = vmatmul.mubr.msk.f32.vlgmr.msra.gmra.mrb[10].mxu0 %vm97_vm1, %v5126_v7 }
  0x34   :  { %4427 = vmatmul.mubr.msk.f32.vlgmr.msra.gmra.mrb[10].mxu1 %vm97_vm1, %v5126_v7  ;;  %4667 = vmatpush3.bf16.msra.mxu0 %v4666_v21 }
  0x35   :  { %4673 = vmatpush3.bf16.msra.mxu1 %v4672_v22  ;;  %4668 = vmatprep.subr.bf16.mxu0 %v4845_v0 }
  0x36   :  { %4674 = vmatprep.subr.bf16.mxu1 %v4845_v0  ;;  %4437 = vmatprep.mubr.msk.f32.mxu0 %vm4846_vm0, %v4847_v8 }
  0x37   :  { %4448 = vmatprep.mubr.msk.f32.mxu1 %vm4846_vm0, %v4847_v8 }
  0x38   :  { %4670 = vmatpush3.bf16.msra.mxu0 %v4669_v27 }
  0x39   :  { %4676 = vmatpush3.bf16.msra.mxu1 %v4675_v28  ;;  %4677 = vmatprep.subr.bf16.mxu0 %v4845_v0 }
  0x3a   :  { %4683 = vmatprep.subr.bf16.mxu1 %v4845_v0 }
  0x3b   :  { %4438 = vmatmul.mubr.msk.f32.vlgmr.msra.gmra.mrb[12].mxu0 %vm97_vm1, %v5126_v7 }
  0x3c   :  { %4449 = vmatmul.mubr.msk.f32.vlgmr.msra.gmra.mrb[12].mxu1 %vm97_vm1, %v5126_v7  ;;  %4679 = vmatpush3.bf16.msra.mxu0 %v4678_v33 }
  0x3d   :  { %4685 = vmatpush3.bf16.msra.mxu1 %v4684_v34  ;;  %4680 = vmatprep.subr.bf16.mxu0 %v4845_v0 }
  0x3e   :  { %4686 = vmatprep.subr.bf16.mxu1 %v4845_v0  ;;  %4459 = vmatprep.mubr.msk.f32.mxu0 %vm4846_vm0, %v4847_v8 }
  0x3f   :  { %4470 = vmatprep.mubr.msk.f32.mxu1 %vm4846_vm0, %v4847_v8  ;;  %vm3298_vm0 = vcmask 458118  }
  0x40   :  { %4682 = vmatpush3.bf16.msra.mxu0 %v4681_v39 }
  0x41   :  { %4688 = vmatpush3.bf16.msra.mxu1 %v4687_v40 }
  0x43   :  { %4460 = vmatmul.mubr.msk.f32.vlgmr.msra.gmra.mrb[14].mxu0 %vm97_vm1, %v5126_v7 }
  0x44   :  { %4471 = vmatmul.mubr.msk.f32.vlgmr.msra.gmra.mrb[14].mxu1 %vm97_vm1, %v5126_v7  ;;  %vm3314_vm1 = vcmask 523719  }
  0x8e   :  { %v95_v41 = vpop.permute.xlu0 %94 }
  0x92   :  { %v665_v7 = vpop.permute.xlu0 %664 }
  0xde   :  { %v167_v42 = vpop.f32.mrb[0].mxu0 }
  0xdf   :  { %v237_v43 = vpop.f32.mrb[0].mxu1  ;;  %v4307_v44 = vpop.f32.mrb[1].mxu0  ;;  %v168_v45 = vadd.f32 %v167_v42, %v95_v41 }
  0xe0   :  { %v4318_v0 = vpop.f32.mrb[1].mxu1  ;;  %v238_v46 = vadd.f32 %v237_v43, %v95_v41 }
  0xe1   :  { %1230 = vxpose.xlu1.b32.start.end [1/1] (short) (narrow) %v168_v45, 16 }
  0xe6   :  { %1262 = vxpose.xlu1.b32.start.end [1/1] (short) (narrow) %v238_v46, 16  ;;  %v307_v47 = vpop.f32.mrb[2].mxu0 }
  0xe7   :  { %v377_v48 = vpop.f32.mrb[2].mxu1  ;;  %v308_v8 = vadd.f32 %v307_v47, %v95_v41  ;;  %v4329_v49 = vpop.f32.mrb[3].mxu0 }
  0xe8   :  { %v4340_v50 = vpop.f32.mrb[3].mxu1  ;;  %v378_v51 = vadd.f32 %v377_v48, %v95_v41 }
  0xe9   :  { %1294 = vxpose.xlu0.b32.start.end [1/1] (short) (narrow) %v308_v8, 16 }
  0xeb   :  { %1326 = vxpose.xlu1.b32.start.end [1/1] (short) (narrow) %v378_v51, 16 }
  0xee   :  { %v447_v52 = vpop.f32.mrb[4].mxu0 }
  0xef   :  { %v448_v53 = vadd.f32 %v447_v52, %v95_v41  ;;  %v517_v58 = vpop.f32.mrb[4].mxu1  ;;  %v4351_v59 = vpop.f32.mrb[5].mxu0 }
  0xf0   :  { %v4362_v62 = vpop.f32.mrb[5].mxu1  ;;  %v518_v63 = vadd.f32 %v517_v58, %v95_v41 }
  0xf1   :  { %1358 = vxpose.xlu1.b32.start.end [1/1] (short) (narrow) %v448_v53, 16 }
  0xf6   :  { %1390 = vxpose.xlu1.b32.start.end [1/1] (short) (narrow) %v518_v63, 16  ;;  %v587_v1 = vpop.f32.mrb[6].mxu0 }
  0xf7   :  { %v657_v2 = vpop.f32.mrb[6].mxu1  ;;  %v4373_v4 = vpop.f32.mrb[7].mxu0  ;;  %v588_v6 = vadd.f32 %v587_v1, %v95_v41 }
  0xf8   :  { %v4384_v5 = vpop.f32.mrb[7].mxu1  ;;  %v658_v9 = vadd.f32 %v657_v2, %v95_v41 }
  0xfb   :  { %1422 = vxpose.xlu1.b32.start.end [1/1] (short) (narrow) %v588_v6, 16 }
  0xfe   :  { %v736_v10 = vpop.f32.mrb[8].mxu0 }
  0xff   :  { %v737_v12 = vadd.f32 %v736_v10, %v665_v7  ;;  %v806_v13 = vpop.f32.mrb[8].mxu1  ;;  %v4395_v14 = vpop.f32.mrb[9].mxu0 }
 0x100   :  { %v807_v15 = vadd.f32 %v806_v13, %v665_v7  ;;  %1454 = vxpose.xlu1.b32.start.end [1/1] (short) (narrow) %v658_v9, 16  ;;  %v4406_v16 = vpop.f32.mrb[9].mxu1 }
 0x101   :  { %4473 = vmatprep.subr.mxu0 %v737_v12 }
 0x102   :  { %4478 = vmatprep.subr.mxu1 %v807_v15  ;;  %4474 = vmatpush3.msra.mxu0 %v737_v12 }
 0x103   :  { %4479 = vmatpush3.msra.mxu1 %v807_v15 }
 0x106   :  { %v876_v17 = vpop.f32.mrb[10].mxu0 }
 0x107   :  { %v877_v18 = vadd.f32 %v876_v17, %v665_v7  ;;  %v946_v19 = vpop.f32.mrb[10].mxu1  ;;  %v4417_v20 = vpop.f32.mrb[11].mxu0 }
 0x108   :  { %v947_v21 = vadd.f32 %v946_v19, %v665_v7  ;;  %v4428_v22 = vpop.f32.mrb[11].mxu1 }
 0x109   :  { %4483 = vmatprep.subr.mxu0 %v877_v18 }
 0x10a   :  { %4488 = vmatprep.subr.mxu1 %v947_v21 }
 0x10e   :  { %v1016_v23 = vpop.f32.mrb[12].mxu0 }
 0x10f   :  { %v1086_v24 = vpop.f32.mrb[12].mxu1  ;;  %v4439_v25 = vpop.f32.mrb[13].mxu0  ;;  %v1017_v33 = vadd.f32 %v1016_v23, %v665_v7 }
 0x110   :  { %v4450_v26 = vpop.f32.mrb[13].mxu1  ;;  %v1087_v38 = vadd.f32 %v1086_v24, %v665_v7 }
 0x116   :  { %v1156_v27 = vpop.f32.mrb[14].mxu0 }
 0x117   :  { %v1226_v28 = vpop.f32.mrb[14].mxu1  ;;  %v4461_v29 = vpop.f32.mrb[15].mxu0  ;;  %v1157_v39 = vadd.f32 %v1156_v27, %v665_v7 }
 0x118   :  { %v4472_v30 = vpop.f32.mrb[15].mxu1  ;;  %v1227_v42 = vadd.f32 %v1226_v28, %v665_v7 }
 0x161   :  { %v1246_v31 = vpop.trf.xlu1 }
 0x162   :  { %4475 = vmatprep.mubr.msk.f32.mxu0 %vm1486_vm2, %v1246_v31 }
 0x165   :  { %v1247_v32 = vpop.trf.xlu1 }
 0x166   :  { %4476 = vmatmul.mubr.msk.f32.vlgmr.msra.gmra.mrb[16].mxu0 %vm1486_vm2, %v1247_v32 }
 0x167   :  { %4484 = vmatpush3.msra.mxu0 %v877_v18 }
 0x168   :  { %4493 = vmatprep.subr.mxu0 %v1017_v33 }
 0x169   :  { %v1278_v34 = vpop.trf.xlu1  ;;  %v1310_v35 = vpop.trf.xlu0 }
 0x16a   :  { %4480 = vmatprep.mubr.msk.f32.mxu1 %vm1486_vm2, %v1278_v34  ;;  %4485 = vmatprep.mubr.msk.f32.mxu0 %vm1486_vm2, %v1310_v35 }
 0x16d   :  { %v1279_v36 = vpop.trf.xlu1  ;;  %v1311_v37 = vpop.trf.xlu0 }
 0x16e   :  { %4481 = vmatmul.mubr.msk.f32.vlgmr.msra.gmra.mrb[16].mxu1 %vm1486_vm2, %v1279_v36  ;;  %4486 = vmatmul.mubr.msk.f32.vlgmr.msra.gmra.mrb[18].mxu0 %vm1486_vm2, %v1311_v37 }
 0x16f   :  { %4489 = vmatpush3.msra.mxu1 %v947_v21  ;;  %4494 = vmatpush3.msra.mxu0 %v1017_v33 }
 0x170   :  { %4498 = vmatprep.subr.mxu1 %v1087_v38  ;;  %4503 = vmatprep.subr.mxu0 %v1157_v39 }
 0x171   :  { %v1342_v40 = vpop.trf.xlu1 }
 0x172   :  { %4490 = vmatprep.mubr.msk.f32.mxu1 %vm1486_vm2, %v1342_v40 }
 0x175   :  { %v1343_v41 = vpop.trf.xlu1 }
 0x176   :  { %4491 = vmatmul.mubr.msk.f32.vlgmr.msra.gmra.mrb[18].mxu1 %vm1486_vm2, %v1343_v41 }
 0x177   :  { %4499 = vmatpush3.msra.mxu1 %v1087_v38 }
 0x178   :  { %4508 = vmatprep.subr.mxu1 %v1227_v42 }
 0x179   :  { %v1374_v43 = vpop.trf.xlu1 }
 0x17a   :  { %4495 = vmatprep.mubr.msk.f32.mxu0 %vm1486_vm2, %v1374_v43 }
 0x17d   :  { %v1375_v44 = vpop.trf.xlu1 }
 0x17e   :  { %4496 = vmatmul.mubr.msk.f32.vlgmr.msra.gmra.mrb[20].mxu0 %vm1486_vm2, %v1375_v44 }
 0x17f   :  { %4504 = vmatpush3.msra.mxu0 %v1157_v39 }
 0x181   :  { %v1406_v45 = vpop.trf.xlu1 }
 0x182   :  { %4500 = vmatprep.mubr.msk.f32.mxu1 %vm1486_vm2, %v1406_v45 }
 0x185   :  { %v1407_v0 = vpop.trf.xlu1 }
 0x186   :  { %4501 = vmatmul.mubr.msk.f32.vlgmr.msra.gmra.mrb[20].mxu1 %vm1486_vm2, %v1407_v0 }
 0x187   :  { %4509 = vmatpush3.msra.mxu1 %v1227_v42 }
 0x189   :  { %v1438_v46 = vpop.trf.xlu1 }
 0x18a   :  { %4505 = vmatprep.mubr.msk.f32.mxu0 %vm1486_vm2, %v1438_v46 }
 0x18d   :  { %v1439_v47 = vpop.trf.xlu1 }
 0x18e   :  { %4506 = vmatmul.mubr.msk.f32.vlgmr.msra.gmra.mrb[22].mxu0 %vm1486_vm2, %v1439_v47 }
 0x18f   :  { %4517 = vmatprep.mubr.msk.f32.mxu0 %vm1486_vm2, %v5053_v54 }
 0x191   :  { %v1470_v48 = vpop.trf.xlu1 }
 0x192   :  { %4510 = vmatprep.mubr.msk.f32.mxu1 %vm1486_vm2, %v1470_v48 }
 0x195   :  { %v1471_v8 = vpop.trf.xlu1 }
 0x196   :  { %4511 = vmatmul.mubr.msk.f32.vlgmr.msra.gmra.mrb[22].mxu1 %vm1486_vm2, %v1471_v8 }
 0x197   :  { %4527 = vmatprep.mubr.msk.f32.mxu1 %vm1486_vm2, %v5066_v56 }
 0x239   :  { %v4477_v49 = vpop.f32.mrb[16].mxu0 }
 0x23a   :  { %v1559_v50 = vpop.f32.mrb[17].mxu0  ;;  %v2138_v51 = vsel %vm1486_vm2, %v4477_v49, -inf }
 0x23b   :  { %2139 = vmax.xlane.f32.xlu0 %v2138_v51  ;;  %v2135_v63 = vsel %vm1486_vm2, %v1559_v50, -inf }
 0x241   :  { %v4482_v52 = vpop.f32.mrb[16].mxu1  ;;  %v4487_v53 = vpop.f32.mrb[18].mxu0 }
 0x242   :  { %v5253_v58 = vpop.f32.mrb[17].mxu1  ;;  %v2144_v54 = vsel %vm1486_vm2, %v4482_v52, -inf  ;;  %v2150_v59 = vsel %vm1486_vm2, %v4487_v53, -inf  ;;  %v5257_v62 = vpop.f32.mrb[19].mxu0 }
 0x243   :  { %2145 = vmax.xlane.f32.xlu1 %v2144_v54  ;;  %2151 = vmax.xlane.f32.xlu0 %v2150_v59  ;;  %v2141_v2 = vsel %vm1486_vm2, %v5253_v58, -inf  ;;  %v2147_v5 = vsel %vm1486_vm2, %v5257_v62, -inf }
 0x247   :  { %2136 = vmax.xlane.f32.xlu1 %v2135_v63 }
 0x249   :  { %v4492_v56 = vpop.f32.mrb[18].mxu1 }
 0x24a   :  { %v5260_v1 = vpop.f32.mrb[19].mxu1  ;;  %v2156_v4 = vsel %vm1486_vm2, %v4492_v56, -inf }
 0x24b   :  { %2142 = vmax.xlane.f32.xlu1 %v2141_v2  ;;  %2157 = vmax.xlane.f32.xlu0 %v2156_v4  ;;  %v2153_v9 = vsel %vm1486_vm2, %v5260_v1, -inf }
 0x24f   :  { %2148 = vmax.xlane.f32.xlu1 %v2147_v5 }
 0x251   :  { %v5267_v6 = vpop.f32.mrb[20].mxu0 }
 0x252   :  { %v5269_v7 = vpop.f32.mrb[21].mxu0  ;;  %v2162_v10 = vsel %vm1486_vm2, %v5267_v6, -inf }
 0x253   :  { %2154 = vmax.xlane.f32.xlu1 %v2153_v9  ;;  %2163 = vmax.xlane.f32.xlu0 %v2162_v10  ;;  %v2159_v12 = vsel %vm1486_vm2, %v5269_v7, -inf }
 0x257   :  { %2160 = vmax.xlane.f32.xlu1 %v2159_v12 }
 0x259   :  { %v5277_v13 = vpop.f32.mrb[20].mxu1 }
 0x25a   :  { %v5279_v14 = vpop.f32.mrb[21].mxu1  ;;  %v2168_v15 = vsel %vm1486_vm2, %v5277_v13, -inf }
 0x25b   :  { %2169 = vmax.xlane.f32.xlu0 %v2168_v15  ;;  %v2165_v16 = vsel %vm1486_vm2, %v5279_v14, -inf }
 0x25c   :  { %2166 = vmax.xlane.f32.xlu1 %v2165_v16 }
 0x261   :  { %v5285_v17 = vpop.f32.mrb[22].mxu0 }
 0x262   :  { %v5287_v18 = vpop.f32.mrb[23].mxu0  ;;  %v2174_v19 = vsel %vm1486_vm2, %v5285_v17, -inf }
 0x263   :  { %2175 = vmax.xlane.f32.xlu0 %v2174_v19  ;;  %v2171_v20 = vsel %vm1486_vm2, %v5287_v18, -inf }
 0x264   :  { %2172 = vmax.xlane.f32.xlu1 %v2171_v20 }
 0x269   :  { %v5293_v21 = vpop.f32.mrb[22].mxu1 }
 0x26a   :  { %v5295_v22 = vpop.f32.mrb[23].mxu1  ;;  %v2180_v23 = vsel %vm1486_vm2, %v5293_v21, -inf }
 0x26b   :  { %2181 = vmax.xlane.f32.xlu0 %v2180_v23  ;;  %v2177_v24 = vsel %vm1486_vm2, %v5295_v22, -inf }
 0x26c   :  { %2178 = vmax.xlane.f32.xlu1 %v2177_v24 }
 0x2c8   :  { %v2140_v25 = vpop.xlane.xlu0 %2139 }
 0x2c9   :  { %v2184_v26 = vsub.f32 %v4477_v49, %v2140_v25 }
 0x2cb   :  { %v2201_v27 = vmul.f32 1.442695, %v2184_v26 }
 0x2cd   :  { %4757 = vpow2.f32 %v2201_v27 }
 0x2d0   :  { %v2146_v28 = vpop.xlane.xlu1 %2145  ;;  %v2152_v29 = vpop.xlane.xlu0 %2151 }
 0x2d1   :  { %v2186_v30 = vsub.f32 %v4482_v52, %v2146_v28  ;;  %v2188_v31 = vsub.f32 %v4487_v53, %v2152_v29 }
 0x2d3   :  { %v2205_v32 = vmul.f32 1.442695, %v2186_v30  ;;  %v2209_v33 = vmul.f32 1.442695, %v2188_v31 }
 0x2d4   :  { %v2137_v34 = vpop.xlane.xlu1 %2136 }
 0x2d5   :  { %4759 = vpow2.f32 %v2205_v32  ;;  %v2183_v35 = vsub.f32 %v1559_v50, %v2137_v34 }
 0x2d6   :  { %4761 = vpow2.f32 %v2209_v33 }
 0x2d7   :  { %v5301_v36 = vpop.eup %4757  ;;  %v2199_v37 = vmul.f32 1.442695, %v2183_v35 }
 0x2d8   :  { %v2143_v38 = vpop.xlane.xlu1 %2142  ;;  %v2158_v39 = vpop.xlane.xlu0 %2157  ;;  %v2234_v40 = vsel %vm1486_vm2, %v5301_v36, 0.0 }
 0x2d9   :  { %4763 = vpow2.f32 %v2199_v37  ;;  %v2185_v41 = vsub.f32 %v5253_v58, %v2143_v38  ;;  %v2190_v42 = vsub.f32 %v4492_v56, %v2158_v39  ;;  %2235 = vadd.xlane.f32.xlu0 %v2234_v40 }
 0x2db   :  { %v2203_v43 = vmul.f32 1.442695, %v2185_v41  ;;  %v2213_v44 = vmul.f32 1.442695, %v2190_v42 }
 0x2dc   :  { %v2149_v45 = vpop.xlane.xlu1 %2148 }
 0x2dd   :  { %4765 = vpow2.f32 %v2203_v43  ;;  %v2187_v0 = vsub.f32 %v5257_v62, %v2149_v45 }
 0x2de   :  { %4767 = vpow2.f32 %v2213_v44 }
 0x2df   :  { %v5307_v46 = vpop.eup %4759  ;;  %v2207_v47 = vmul.f32 1.442695, %v2187_v0 }
 0x2e0   :  { %v2155_v48 = vpop.xlane.xlu1 %2154  ;;  %v2164_v8 = vpop.xlane.xlu0 %2163  ;;  %v2240_v49 = vsel %vm1486_vm2, %v5307_v46, 0.0 }
 0x2e1   :  { %v5311_v50 = vpop.eup %4761  ;;  %4769 = vpow2.f32 %v2207_v47  ;;  %v2189_v51 = vsub.f32 %v5260_v1, %v2155_v48  ;;  %v2192_v52 = vsub.f32 %v5267_v6, %v2164_v8  ;;  %2241 = vadd.xlane.f32.xlu0 %v2240_v49 }
 0x2e2   :  { %v2246_v62 = vsel %vm1486_vm2, %v5311_v50, 0.0 }
 0x2e3   :  { %v5315_v53 = vpop.eup %4763  ;;  %v2211_v58 = vmul.f32 1.442695, %v2189_v51  ;;  %v2217_v54 = vmul.f32 1.442695, %v2192_v52 }
 0x2e4   :  { %v2161_v59 = vpop.xlane.xlu1 %2160  ;;  %v2231_v63 = vsel %vm1486_vm2, %v5315_v53, 0.0 }
 0x2e5   :  { %4771 = vpow2.f32 %v2211_v58  ;;  %v2191_v56 = vsub.f32 %v5269_v7, %v2161_v59  ;;  %2247 = vadd.xlane.f32.xlu0 %v2246_v62  ;;  %2232 = vadd.xlane.f32.xlu1 %v2231_v63 }
 0x2e6   :  { %4773 = vpow2.f32 %v2217_v54 }
 0x2e7   :  { %v5322_v1 = vpop.eup %4765  ;;  %v2215_v2 = vmul.f32 1.442695, %v2191_v56 }
 0x2e8   :  { %v5324_v4 = vpop.eup %4767  ;;  %v2170_v5 = vpop.xlane.xlu0 %2169  ;;  %v2237_v6 = vsel %vm1486_vm2, %v5322_v1, 0.0 }
 0x2e9   :  { %4775 = vpow2.f32 %v2215_v2  ;;  %v2194_v9 = vsub.f32 %v5277_v13, %v2170_v5  ;;  %v2167_v10 = vpop.xlane.xlu1 %2166  ;;  %v2252_v12 = vsel %vm1486_vm2, %v5324_v4, 0.0  ;;  %2238 = vadd.xlane.f32.xlu1 %v2237_v6 }
 0x2ea   :  { %v2193_v7 = vsub.f32 %v5279_v14, %v2167_v10  ;;  %2253 = vadd.xlane.f32.xlu0 %v2252_v12 }
 0x2eb   :  { %v5332_v15 = vpop.eup %4769  ;;  %v2221_v16 = vmul.f32 1.442695, %v2194_v9 }
 0x2ec   :  { %v2219_v19 = vmul.f32 1.442695, %v2193_v7  ;;  %v2243_v20 = vsel %vm1486_vm2, %v5332_v15, 0.0 }
 0x2ed   :  { %4777 = vpow2.f32 %v2221_v16  ;;  %2244 = vadd.xlane.f32.xlu1 %v2243_v20 }
 0x2ee   :  { %4779 = vpow2.f32 %v2219_v19 }
 0x2ef   :  { %v5336_v23 = vpop.eup %4771 }
 0x2f0   :  { %v5338_v13 = vpop.eup %4773  ;;  %v2176_v24 = vpop.xlane.xlu0 %2175  ;;  %v2249_v25 = vsel %vm1486_vm2, %v5336_v23, 0.0 }
 0x2f1   :  { %v2196_v14 = vsub.f32 %v5285_v17, %v2176_v24  ;;  %v2258_v26 = vsel %vm1486_vm2, %v5338_v13, 0.0  ;;  %2250 = vadd.xlane.f32.xlu1 %v2249_v25  ;;  %v2173_v27 = vpop.xlane.xlu1 %2172 }
 0x2f2   :  { %2259 = vadd.xlane.f32.xlu0 %v2258_v26  ;;  %v2195_v28 = vsub.f32 %v5287_v18, %v2173_v27 }
 0x2f3   :  { %v5346_v29 = vpop.eup %4775  ;;  %v2225_v30 = vmul.f32 1.442695, %v2196_v14 }
 0x2f4   :  { %v2223_v31 = vmul.f32 1.442695, %v2195_v28  ;;  %v2255_v32 = vsel %vm1486_vm2, %v5346_v29, 0.0 }
 0x2f5   :  { %4781 = vpow2.f32 %v2225_v30  ;;  %2256 = vadd.xlane.f32.xlu1 %v2255_v32 }
 0x2f6   :  { %4783 = vpow2.f32 %v2223_v31 }
 0x2f7   :  { %v5350_v33 = vpop.eup %4777 }
 0x2f8   :  { %v5352_v17 = vpop.eup %4779  ;;  %v2182_v34 = vpop.xlane.xlu0 %2181  ;;  %v2264_v35 = vsel %vm1486_vm2, %v5350_v33, 0.0 }
 0x2f9   :  { %v2198_v18 = vsub.f32 %v5293_v21, %v2182_v34  ;;  %2265 = vadd.xlane.f32.xlu0 %v2264_v35  ;;  %v2179_v37 = vpop.xlane.xlu1 %2178  ;;  %v2261_v38 = vsel %vm1486_vm2, %v5352_v17, 0.0 }
 0x2fa   :  { %v2197_v39 = vsub.f32 %v5295_v22, %v2179_v37  ;;  %2262 = vadd.xlane.f32.xlu1 %v2261_v38 }
 0x2fb   :  { %v2229_v40 = vmul.f32 1.442695, %v2198_v18 }
 0x2fc   :  { %v2227_v41 = vmul.f32 1.442695, %v2197_v39 }
 0x2fd   :  { %4785 = vpow2.f32 %v2229_v40 }
 0x2fe   :  { %4787 = vpow2.f32 %v2227_v41 }
 0x2ff   :  { %v5360_v42 = vpop.eup %4781 }
 0x300   :  { %v5362_v43 = vpop.eup %4783  ;;  %v2270_v44 = vsel %vm1486_vm2, %v5360_v42, 0.0 }
 0x301   :  { %2271 = vadd.xlane.f32.xlu0 %v2270_v44  ;;  %v2267_v21 = vsel %vm1486_vm2, %v5362_v43, 0.0 }
 0x302   :  { %2268 = vadd.xlane.f32.xlu1 %v2267_v21 }
 0x307   :  { %v5368_v45 = vpop.eup %4785 }
 0x308   :  { %v5370_v22 = vpop.eup %4787  ;;  %v2276_v0 = vsel %vm1486_vm2, %v5368_v45, 0.0 }
 0x309   :  { %2277 = vadd.xlane.f32.xlu0 %v2276_v0  ;;  %v2273_v47 = vsel %vm1486_vm2, %v5370_v22, 0.0 }
 0x30a   :  { %2274 = vadd.xlane.f32.xlu1 %v2273_v47 }
 0x366   :  { %v2236_v48 = vpop.xlane.xlu0 %2235 }
 0x367   :  { %4789 = vrcp.f32 %v2236_v48 }
 0x36e   :  { %v2242_v8 = vpop.xlane.xlu0 %2241 }
 0x36f   :  { %4791 = vrcp.f32 %v2242_v8 }
 0x371   :  { %v4790_v49 = vpop.eup %4789 }
 0x372   :  { %v2296_v51 = vmul.f32 %v4790_v49, %v2236_v48  ;;  %v2248_v52 = vpop.xlane.xlu0 %2247  ;;  %v2233_v58 = vpop.xlane.xlu1 %2232 }
 0x373   :  { %4793 = vrcp.f32 %v2248_v52 }
 0x374   :  { %v2312_v54 = vsub.f32 2.0, %v2296_v51  ;;  %4795 = vrcp.f32 %v2233_v58 }
 0x376   :  { %v2328_v59 = vmul.f32 %v4790_v49, %v2312_v54  ;;  %v2239_v62 = vpop.xlane.xlu1 %2238 }
 0x377   :  { %v2254_v63 = vpop.xlane.xlu0 %2253  ;;  %4797 = vrcp.f32 %v2239_v62 }
 0x378   :  { %v5377_v56 = vmul.f32 %v5301_v36, %v2328_v59  ;;  %4799 = vrcp.f32 %v2254_v63 }
 0x379   :  { %v4792_v2 = vpop.eup %4791 }
 0x37a   :  { %v2298_v5 = vmul.f32 %v4792_v2, %v2242_v8  ;;  %3439 = vrot.lane.b32.xlu1 %v5377_v56, %s4849_s30  ;;  %v2245_v6 = vpop.xlane.xlu1 %2244 }
 0x37b   :  { %4801 = vrcp.f32 %v2245_v6 }
 0x37c   :  { %v2314_v9 = vsub.f32 2.0, %v2298_v5 }
 0x37d   :  { %v4794_v10 = vpop.eup %4793 }
 0x37e   :  { %v4796_v12 = vpop.eup %4795  ;;  %v2330_v7 = vmul.f32 %v4792_v2, %v2314_v9  ;;  %v2300_v16 = vmul.f32 %v4794_v10, %v2248_v52  ;;  %v2251_v19 = vpop.xlane.xlu1 %2250 }
 0x37f   :  { %v2295_v20 = vmul.f32 %v4796_v12, %v2233_v58  ;;  %v2260_v24 = vpop.xlane.xlu0 %2259  ;;  %4803 = vrcp.f32 %v2251_v19 }
 0x380   :  { %v2346_v36 = vmul.f32 %v5307_v46, %v2330_v7  ;;  %v2316_v25 = vsub.f32 2.0, %v2300_v16  ;;  %4805 = vrcp.f32 %v2260_v24 }
 0x381   :  { %v4798_v14 = vpop.eup %4797  ;;  %v2311_v26 = vsub.f32 2.0, %v2295_v20 }
 0x382   :  { %v4800_v27 = vpop.eup %4799  ;;  %v5382_v28 = vrot.slane %v2346_v36, 7  ;;  %v2332_v30 = vmul.f32 %v4794_v10, %v2316_v25  ;;  %v2297_v31 = vmul.f32 %v4798_v14, %v2239_v62  ;;  %v2257_v32 = vpop.xlane.xlu1 %2256 }
 0x383   :  { %v2327_v34 = vmul.f32 %v4796_v12, %v2311_v26  ;;  %v2302_v35 = vmul.f32 %v4800_v27, %v2254_v63  ;;  %4807 = vrcp.f32 %v2257_v32 }
 0x384   :  { %v2348_v18 = vmul.f32 %v5311_v50, %v2332_v30  ;;  %v2313_v37 = vsub.f32 2.0, %v2297_v31  ;;  %v3417_v46 = vsel %vm6727_vm3, %v5382_v28, %v5377_v56  ;;  %v3401_v8 = vsel %vm3199_vm4, %v5382_v28, %v5377_v56 }
 0x385   :  { %v4802_v38 = vpop.eup %4801  ;;  %v5389_v39 = vmul.f32 %v5315_v53, %v2327_v34  ;;  %v2318_v40 = vsub.f32 2.0, %v2302_v35  ;;  %3423 = vrot.lane.b32.xlu1 %v3417_v46, %s4850_s8 }
 0x386   :  { %v5392_v41 = vrot.slane %v2348_v18, 6  ;;  %v2329_v44 = vmul.f32 %v4798_v14, %v2313_v37  ;;  %v2299_v21 = vmul.f32 %v4802_v38, %v2245_v6  ;;  %v5394_v0 = vpop.xlane.xlu0 %2265 }
 0x387   :  { %v2334_v47 = vmul.f32 %v4800_v27, %v2318_v40  ;;  %4809 = vrcp.f32 %v5394_v0  ;;  %3308 = vrot.lane.b32.xlu0 %v5389_v39, %s4851_s9  ;;  %v5405_v53 = vpop.xlane.xlu1 %2262  ;;  %v4689_v48 = vpack.c.bf16 %v5377_v56, %v5389_v39 }
 0x388   :  { %v2345_v49 = vmul.f32 %v5322_v1, %v2329_v44  ;;  %v2315_v51 = vsub.f32 2.0, %v2299_v21  ;;  %4811 = vrcp.f32 %v5405_v53  ;;  %v3402_v52 = vsel %vm6727_vm3, %v5392_v41, %v3401_v8 }
 0x389   :  { %v4804_v58 = vpop.eup %4803  ;;  %v2350_v54 = vmul.f32 %v5324_v4, %v2334_v47  ;;  %4691 = vmatprep.subr.msk.bf16.mxu0 %vm5398_vm5, %v4689_v48  ;;  %3407 = vrot.lane.b32.xlu1 %v3402_v52, %s4852_s2  ;;  %v3385_v4 = vsel %vm3196_vm6, %v5382_v28, %v5377_v56 }
 0x38a   :  { %v4806_v59 = vpop.eup %4805  ;;  %v5420_v62 = vrot.slane %v2345_v49, 7  ;;  %v2331_v63 = vmul.f32 %v4802_v38, %v2315_v51  ;;  %v2301_v1 = vmul.f32 %v4804_v58, %v2251_v19  ;;  %4694 = vmatpush3.bf16.xpose.msk.msra.mxu0 %vm5398_vm5, %v4689_v48  ;;  %v4695_v2 = vpack.c.bf16 %v2346_v36, %v2345_v49 }
 0x38b   :  { %v5424_v5 = vrot.slane %v2350_v54, 5  ;;  %v2304_v6 = vmul.f32 %v4806_v59, %v2260_v24  ;;  %v3386_v12 = vsel %vm3199_vm4, %v5392_v41, %v3385_v4 }
 0x38c   :  { %v2347_v9 = vmul.f32 %v5332_v15, %v2331_v63  ;;  %v2317_v10 = vsub.f32 2.0, %v2301_v1  ;;  %4697 = vmatprep.subr.msk.bf16.mxu1 %vm5398_vm5, %v4695_v2  ;;  %v3286_v7 = vsel %vm6727_vm3, %v5420_v62, %v5389_v39  ;;  %v3270_v30 = vsel %vm3199_vm4, %v5420_v62, %v5389_v39  ;;  %v4821_v1 = vld [vmem:[%s6723_s1 + $0x30] sm:$0xff] }
 0x38d   :  { %v4808_v16 = vpop.eup %4807  ;;  %v2320_v19 = vsub.f32 2.0, %v2304_v6  ;;  %v3387_v20 = vsel %vm6727_vm3, %v5424_v5, %v3386_v12  ;;  %3292 = vrot.lane.b32.xlu0 %v3286_v7, %s4853_s10  ;;  %4700 = vmatpush3.bf16.xpose.msk.msra.mxu1 %vm5398_vm5, %v4695_v2  ;;  %v3254_v37 = vsel %vm3196_vm6, %v5420_v62, %v5389_v39  ;;  %v3238_v51 = vsel %vm3193_vm7, %v5420_v62, %v5389_v39  ;;  %v4823_v12 = vld [vmem:[%s6723_s1 + $0x48] sm:$0xff] }
 0x38e   :  { %v5442_v15 = vrot.slane %v2347_v9, 6  ;;  %v2333_v24 = vmul.f32 %v4804_v58, %v2317_v10  ;;  %v2303_v36 = vmul.f32 %v4808_v16, %v2257_v32  ;;  %3391 = vrot.lane.b32.xlu1 %v3387_v20, %s4854_s11  ;;  %v5445_v25 = vpop.xlane.xlu0 %2271  ;;  %v4701_v14 = vpack.c.bf16 %v2348_v18, %v2347_v9 }
 0x38f   :  { %v2336_v26 = vmul.f32 %v4806_v59, %v2320_v19  ;;  %4813 = vrcp.f32 %v5445_v25  ;;  %v5448_v27 = vpop.xlane.xlu1 %2268  ;;  %v3353_v9 = vsel %vm3190_vm8, %v5382_v28, %v5377_v56 }
 0x390   :  { %v2349_v31 = vmul.f32 %v5336_v23, %v2333_v24  ;;  %v2319_v34 = vsub.f32 2.0, %v2303_v36  ;;  %4815 = vrcp.f32 %v5448_v27  ;;  %4703 = vmatprep.subr.msk.bf16.mxu0 %vm5398_vm5, %v4701_v14  ;;  %v3271_v32 = vsel %vm6727_vm3, %v5442_v15, %v3270_v30  ;;  %v4824_v36 = vld [vmem:[%s6723_s1 + $0x60] sm:$0xff] }
 0x391   :  { %v4810_v35 = vpop.eup %4809  ;;  %v2352_v18 = vmul.f32 %v5338_v13, %v2336_v26  ;;  %4518 = vmatmul.mubr.msk.f32.vlgmr.msra.gmra.mrb[24].mxu0 %vm1486_vm2, %v5058_v55  ;;  %3276 = vrot.lane.b32.xlu0 %v3271_v32, %s4855_s12  ;;  %v3369_v23 = vsel %vm3193_vm7, %v5382_v28, %v5377_v56  ;;  %v3255_v48 = vsel %vm3199_vm4, %v5442_v15, %v3254_v37 }
 0x392   :  { %v4812_v46 = vpop.eup %4811  ;;  %v5469_v38 = vrot.slane %v2349_v31, 5  ;;  %v2335_v40 = vmul.f32 %v4808_v16, %v2319_v34  ;;  %v2306_v13 = vmul.f32 %v4810_v35, %v5394_v0  ;;  %4706 = vmatpush3.bf16.xpose.msk.msra.mxu0 %vm5398_vm5, %v4701_v14  ;;  %4520 = vmatprep.mubr.msk.f32.mxu0 %vm1486_vm2, %v5083_v60  ;;  %v4707_v55 = vpack.c.bf16 %v2350_v54, %v2349_v31  ;;  %v4825_v34 = vld [vmem:[%s6723_s1 + $0x58] sm:$0xff] }
 0x393   :  { %v5476_v44 = vrot.slane %v2352_v18, 4  ;;  %v2305_v21 = vmul.f32 %v4812_v46, %v5405_v53  ;;  %v3370_v47 = vsel %vm3196_vm6, %v5392_v41, %v3369_v23  ;;  %v3239_v54 = vsel %vm3196_vm6, %v5442_v15, %v3238_v51  ;;  %v4831_v51 = vld [vmem:[%s6723_s1 + $0x90] sm:$0xff] }
 0x394   :  { %v2351_v8 = vmul.f32 %v5346_v29, %v2335_v40  ;;  %v2322_v0 = vsub.f32 2.0, %v2306_v13  ;;  %4709 = vmatprep.subr.msk.bf16.mxu1 %vm5398_vm5, %v4707_v55  ;;  %v3371_v60 = vsel %vm3199_vm4, %v5424_v5, %v3370_v47  ;;  %4528 = vmatmul.mubr.msk.f32.vlgmr.msra.gmra.mrb[24].mxu1 %vm1486_vm2, %v5071_v57  ;;  %v3256_v53 = vsel %vm6727_vm3, %v5469_v38, %v3255_v48 }
 0x395   :  { %v2321_v49 = vsub.f32 2.0, %v2305_v21  ;;  %4521 = vmatmul.mubr.msk.f32.gmra.mrb[26].mxu0 %vm1486_vm2, %v5088_v61  ;;  %v3372_v29 = vsel %vm6727_vm3, %v5476_v44, %v3371_v60  ;;  %3260 = vrot.lane.b32.xlu0 %v3256_v53, %s4856_s13  ;;  %v3240_v2 = vsel %vm3199_vm4, %v5469_v38, %v3239_v54  ;;  %v3354_v7 = vsel %vm3193_vm7, %v5392_v41, %v3353_v9  ;;  %v4828_v21 = vld [vmem:[%s6723_s1 + $0x70] sm:$0xff]  ;;  %v4829_v60 = vld [vmem:[%s6723_s1 + $0x88] sm:$0xff]  ;;  %v4833_v9 = vld [vmem:[%s6723_s1 + $0x98] sm:$0xff] }
 0x396   :  { %v5500_v52 = vrot.slane %v2351_v8, 4  ;;  %v2338_v57 = vmul.f32 %v4810_v35, %v2322_v0  ;;  %3375 = vrot.lane.b32.xlu1 %v3372_v29, %s4857_s14  ;;  %4712 = vmatpush3.bf16.xpose.msk.msra.mxu1 %vm5398_vm5, %v4707_v55  ;;  %v5505_v61 = vpop.xlane.xlu0 %2277  ;;  %v4713_v58 = vpack.c.bf16 %v2352_v18, %v2351_v8  ;;  %v4826_v18 = vld [vmem:[%s6723_s1 + $0x68] sm:$0xff]  ;;  %v3337_v13 = vsel %vm3187_vm9, %v5382_v28, %v5377_v56 }
 0x397   :  { %v2337_v59 = vmul.f32 %v4812_v46, %v2321_v49  ;;  %4817 = vrcp.f32 %v5505_v61  ;;  %4537 = vmatprep.mubr.msk.f32.mxu0 %vm1486_vm2, %v5107_v3  ;;  %v5512_v63 = vpop.xlane.xlu1 %2274  ;;  %4530 = vmatprep.mubr.msk.f32.mxu1 %vm1486_vm2, %v4821_v1  ;;  %v4822_v3 = vld [vmem:[%s6723_s1 + $0x38] sm:$0xff]  ;;  %v4827_v46 = vld [vmem:[%s6723_s1 + $0x80] sm:$0xff]  ;;  %v3338_v48 = vsel %vm3190_vm8, %v5392_v41, %v3337_v13  ;;  %v3206_v1 = vsel %vm3187_vm9, %v5420_v62, %v5389_v39 }
 0x398   :  { %v2354_v6 = vmul.f32 %v5350_v33, %v2338_v57  ;;  %4819 = vrcp.f32 %v5512_v63  ;;  %4715 = vmatprep.subr.msk.bf16.mxu0 %vm5398_vm5, %v4713_v58  ;;  %4531 = vmatmul.mubr.msk.f32.gmra.mrb[26].mxu1 %vm1486_vm2, %v4822_v3  ;;  %v3241_v4 = vsel %vm6727_vm3, %v5500_v52, %v3240_v2  ;;  %v3207_v3 = vsel %vm3190_vm8, %v5442_v15, %v3206_v1 }
 0x399   :  { %v4814_v10 = vpop.eup %4813  ;;  %v2353_v33 = vmul.f32 %v5352_v17, %v2337_v59  ;;  %4538 = vmatmul.mubr.msk.f32.vlgmr.msra.gmra.mrb[28].mxu0 %vm1486_vm2, %v4823_v12  ;;  %3244 = vrot.lane.b32.xlu0 %v3241_v4, %s4858_s20  ;;  %v3355_v17 = vsel %vm3196_vm6, %v5424_v5, %v3354_v7  ;;  %v4834_v12 = vld [vmem:[%s6723_s1 + $0xa8] sm:$0xff]  ;;  %v3287_v1 = vsel %vm3184_vm10, %v5469_v38, %v5442_v15 }
 0x39a   :  { %v4816_v16 = vpop.eup %4815  ;;  %v5541_v19 = vrot.slane %v2354_v6, 3  ;;  %v2308_v20 = vmul.f32 %v4814_v10, %v5445_v25  ;;  %4718 = vmatpush3.bf16.xpose.msk.msra.mxu0 %vm5398_vm5, %v4713_v58  ;;  %4540 = vmatprep.mubr.msk.f32.mxu0 %vm1486_vm2, %v5133_v11  ;;  %v3356_v25 = vsel %vm3199_vm4, %v5476_v44, %v3355_v17 }
 0x39b   :  { %v2307_v24 = vmul.f32 %v4816_v16, %v5448_v27  ;;  %4547 = vmatprep.mubr.msk.f32.mxu1 %vm1486_vm2, %v4824_v36  ;;  %v4719_v14 = vpack.c.bf16 %v2354_v6, %v2353_v33  ;;  %v5557_v26 = vrot.slane %v2353_v33, 3  ;;  %v3222_v27 = vsel %vm3190_vm8, %v5420_v62, %v5389_v39 }
 0x39c   :  { %v2324_v30 = vsub.f32 2.0, %v2308_v20  ;;  %v3357_v11 = vsel %vm6727_vm3, %v5541_v19, %v3356_v25  ;;  %v3223_v32 = vsel %vm3193_vm7, %v5442_v15, %v3222_v27  ;;  %v4835_v20 = vld [vmem:[%s6723_s1 + $0xb0] sm:$0xff]  ;;  %v4836_v25 = vld [vmem:[%s6723_s1 + $0xc0] sm:$0xff] }
 0x39d   :  { %v2323_v31 = vsub.f32 2.0, %v2307_v24  ;;  %4541 = vmatmul.mubr.msk.f32.gmra.mrb[30].mxu0 %vm1486_vm2, %v4825_v34  ;;  %3359 = vrot.lane.b32.xlu1 %v3357_v11, %s4859_s24  ;;  %v3224_v23 = vsel %vm3196_vm6, %v5469_v38, %v3223_v32  ;;  %v4837_v11 = vld [vmem:[%s6723_s1 + $0xb8] sm:$0xff]  ;;  %v4839_v34 = vld [vmem:[%s6723_s1 + $0xc8] sm:$0xff]  ;;  %v4840_v32 = vld [vmem:[%s6723_s1 + $0xd0] sm:$0xff] }
 0x39e   :  { %v2340_v35 = vmul.f32 %v4814_v10, %v2324_v30  ;;  %4548 = vmatmul.mubr.msk.f32.vlgmr.msra.gmra.mrb[28].mxu1 %vm1486_vm2, %v4826_v18  ;;  %4721 = vmatprep.subr.msk.bf16.mxu1 %vm5398_vm5, %v4719_v14  ;;  %v3225_v40 = vsel %vm3199_vm4, %v5500_v52, %v3224_v23  ;;  %v3208_v10 = vsel %vm3193_vm7, %v5469_v38, %v3207_v3 }
 0x39f   :  { %v2339_v37 = vmul.f32 %v4816_v16, %v2323_v31  ;;  %4724 = vmatpush3.bf16.xpose.msk.msra.mxu1 %vm5398_vm5, %v4719_v14  ;;  %4557 = vmatprep.mubr.msk.f32.mxu0 %vm1486_vm2, %v4827_v46  ;;  %v3226_v47 = vsel %vm6727_vm3, %v5557_v26, %v3225_v40  ;;  %v3209_v7 = vsel %vm3196_vm6, %v5500_v52, %v3208_v10  ;;  %v4838_v31 = vld [vmem:[%s6723_s1 + $0xe0] sm:$0xff] }
 0x3a0   :  { %v2356_v55 = vmul.f32 %v5360_v42, %v2340_v35  ;;  %4550 = vmatprep.mubr.msk.f32.mxu1 %vm1486_vm2, %v4828_v21  ;;  %v3339_v42 = vsel %vm3193_vm7, %v5424_v5, %v3338_v48  ;;  %v3210_v17 = vsel %vm3199_vm4, %v5557_v26, %v3209_v7  ;;  %v3185_v35 = vsel %vm3184_vm10, %v5420_v62, %v5389_v39  ;;  %v4841_v39 = vld [vmem:[%s6723_s1 + $0xd8] sm:$0xff] }
 0x3a1   :  { %v4818_v8 = vpop.eup %4817  ;;  %v2355_v0 = vmul.f32 %v5362_v43, %v2339_v37  ;;  %4558 = vmatmul.mubr.msk.f32.vlgmr.msra.gmra.mrb[32].mxu0 %vm1486_vm2, %v4829_v60  ;;  %3228 = vrot.lane.b32.xlu1 %v3226_v47, %s4860_s16  ;;  %v4830_v43 = vld [vmem:[%s6723_s1 + $0x78] sm:$0xff]  ;;  %v3340_v57 = vsel %vm3196_vm6, %v5476_v44, %v3339_v42  ;;  %v3188_v50 = vsel %vm3187_vm9, %v5442_v15, %v3185_v35 }
 0x3a2   :  { %v4820_v53 = vpop.eup %4819  ;;  %v5607_v49 = vrot.slane %v2356_v55, 2  ;;  %v2310_v29 = vmul.f32 %v4818_v8, %v5505_v61  ;;  %4551 = vmatmul.mubr.msk.f32.gmra.mrb[30].mxu1 %vm1486_vm2, %v4830_v43  ;;  %4560 = vmatprep.mubr.msk.f32.mxu0 %vm1486_vm2, %v4831_v51  ;;  %v4832_v61 = vld [vmem:[%s6723_s1 + $0xa0] sm:$0xff]  ;;  %v3341_v54 = vsel %vm3199_vm4, %v5541_v19, %v3340_v57  ;;  %v3319_v37 = vsel %vm3184_vm10, %v5382_v28, %v5377_v56 }
 0x3a3   :  { %v2309_v58 = vmul.f32 %v4820_v53, %v5512_v63  ;;  %4567 = vmatprep.mubr.msk.f32.mxu1 %vm1486_vm2, %v4832_v61  ;;  %v4725_v59 = vpack.c.bf16 %v2356_v55, %v2355_v0  ;;  %v5630_v2 = vrot.slane %v2355_v0, 2  ;;  %v3191_v46 = vsel %vm3190_vm8, %v5469_v38, %v3188_v50 }
 0x3a4   :  { %v2326_v6 = vsub.f32 2.0, %v2310_v29  ;;  %v3342_v63 = vsel %vm6727_vm3, %v5607_v49, %v3341_v54  ;;  %v3321_v40 = vsel %vm3187_vm9, %v5392_v41, %v3319_v37  ;;  %v3194_v13 = vsel %vm3193_vm7, %v5500_v52, %v3191_v46  ;;  %v4842_v29 = vld [vmem:[%s6723_s1 + $0xe8] sm:$0xff] }
 0x3a5   :  { %v2325_v4 = vsub.f32 2.0, %v2309_v58  ;;  %4561 = vmatmul.mubr.msk.f32.gmra.mrb[34].mxu0 %vm1486_vm2, %v4833_v9  ;;  %3343 = vrot.lane.b32.xlu1 %v3342_v63, %s4861_s4  ;;  %v3211_v36 = vsel %vm6727_vm3, %v5630_v2, %v3210_v17  ;;  %v3242_v18 = vsel %vm3184_vm10, %v5630_v2, %v5557_v26  ;;  %v3257_v55 = vsel %vm3184_vm10, %v5557_v26, %v5500_v52  ;;  %v4843_v58 = vld [vmem:[%s6723_s1 + $0xf0] sm:$0xff] }
 0x3a6   :  { %v2342_v33 = vmul.f32 %v4818_v8, %v2326_v6  ;;  %4568 = vmatmul.mubr.msk.f32.vlgmr.msra.gmra.mrb[32].mxu1 %vm1486_vm2, %v4834_v12  ;;  %4727 = vmatprep.subr.msk.bf16.mxu0 %vm5398_vm5, %v4725_v59  ;;  %v3323_v21 = vsel %vm3190_vm8, %v5424_v5, %v3321_v40  ;;  %v3197_v47 = vsel %vm3196_vm6, %v5557_v26, %v3194_v13  ;;  %v4844_v6 = vld [vmem:[%s6723_s1 + $0xf8] sm:$0xff] }
 0x3a7   :  { %v2341_v16 = vmul.f32 %v4820_v53, %v2325_v4  ;;  %4730 = vmatpush3.bf16.xpose.msk.msra.mxu0 %vm5398_vm5, %v4725_v59  ;;  %4570 = vmatprep.mubr.msk.f32.mxu1 %vm1486_vm2, %v4835_v20  ;;  %v3258_v48 = vsel %vm3187_vm9, %v5630_v2, %v3257_v55  ;;  %v3325_v8 = vsel %vm3193_vm7, %v5476_v44, %v3323_v21 }
 0x3a8   :  { %v2358_v24 = vmul.f32 %v5368_v45, %v2342_v33  ;;  %4577 = vmatprep.mubr.msk.f32.mxu0 %vm1486_vm2, %v4836_v25  ;;  %v3200_v0 = vsel %vm3199_vm4, %v5630_v2, %v3197_v47  ;;  %v3327_v42 = vsel %vm3196_vm6, %v5541_v19, %v3325_v8  ;;  %v3272_v51 = vsel %vm3184_vm10, %v5500_v52, %v5469_v38 }
 0x3a9   :  { %v2357_v14 = vmul.f32 %v5370_v22, %v2341_v16  ;;  %3212 = vrot.lane.b32.xlu1 %v3211_v36, %s4862_s15  ;;  %v3329_v43 = vsel %vm3199_vm4, %v5607_v49, %v3327_v42  ;;  %v3273_v61 = vsel %vm3187_vm9, %v5557_v26, %v3272_v51  ;;  %v3373_v63 = vsel %vm3184_vm10, %v5607_v49, %v5541_v19 }
 0x3aa   :  { %v5666_v30 = vrot.slane %v2358_v24, 1  ;;  %4571 = vmatmul.mubr.msk.f32.gmra.mrb[34].mxu1 %vm1486_vm2, %v4837_v11  ;;  %v3274_v54 = vsel %vm3190_vm8, %v5630_v2, %v3273_v61  ;;  %v3288_v3 = vsel %vm3187_vm9, %v5500_v52, %v3287_v1  ;;  %v3302_v33 = vsel %vm3184_vm10, %v5442_v15, %v5420_v62 }
 0x3ab   :  { %v5672_v45 = vrot.slane %v2357_v14, 1  ;;  %v4731_v27 = vpack.c.bf16 %v2358_v24, %v2357_v14  ;;  %4587 = vmatprep.mubr.msk.f32.mxu1 %vm1486_vm2, %v4838_v31  ;;  %v3289_v9 = vsel %vm3190_vm8, %v5557_v26, %v3288_v3  ;;  %v3388_v7 = vsel %vm3184_vm10, %v5541_v19, %v5476_v44 }
 0x3ac   :  { %3345 = vrot.lane.b32.xlu0 %v5666_v30, %s4861_s4  ;;  %v3358_v56 = vsel %vm3184_vm10, %v5666_v30, %v5607_v49  ;;  %v3331_v57 = vsel %vm6727_vm3, %v5666_v30, %v3329_v43  ;;  %v3374_v4 = vsel %vm3187_vm9, %v5666_v30, %v3373_v63  ;;  %v3290_v10 = vsel %vm3193_vm7, %v5630_v2, %v3289_v9 }
 0x3ad   :  { %4733 = vmatprep.subr.msk.bf16.mxu1 %vm5398_vm5, %v4731_v27  ;;  %v3227_v22 = vsel %vm3184_vm10, %v5672_v45, %v5630_v2  ;;  %v3243_v23 = vsel %vm3187_vm9, %v5672_v45, %v3242_v18  ;;  %v3259_v60 = vsel %vm3190_vm8, %v5672_v45, %v3258_v48  ;;  %v3203_v53 = vsel %vm6727_vm3, %v5672_v45, %v3200_v0 }
 0x3ae   :  { %4578 = vmatmul.mubr.msk.f32.vlgmr.msra.gmra.mrb[36].mxu0 %vm1486_vm2, %v4839_v34  ;;  %3230 = vrot.lane.b32.xlu1 %v3227_v22, %s4860_s16  ;;  %3205 = vst.msk [vmem:[%s6725_s6] sm:$0xff] %vm1486_vm2, %v3203_v53  ;;  %v3275_v59 = vsel %vm3193_vm7, %v5672_v45, %v3274_v54  ;;  %v3291_v12 = vsel %vm3196_vm6, %v5672_v45, %v3290_v10  ;;  %vm3399_vm3 = vcmask 847616  }
 0x3af   :  { %4736 = vmatpush3.bf16.xpose.msk.msra.mxu1 %vm5398_vm5, %v4731_v27  ;;  %4580 = vmatprep.mubr.msk.f32.mxu0 %vm1486_vm2, %v4840_v32  ;;  %v3303_v16 = vsel %vm3187_vm9, %v5469_v38, %v3302_v33  ;;  %v3389_v20 = vsel %vm3187_vm9, %v5607_v49, %v3388_v7  ;;  %v3403_v38 = vsel %vm3184_vm10, %v5476_v44, %v5424_v5  ;;  %vm3236_vm5 = vcmask 189568  }
 0x3b0   :  { %3214 = vrot.lane.b32.xlu0 %v5672_v45, %s4862_s15  ;;  %s4863_s15 = smov 64   ;;  %v3304_v17 = vsel %vm3190_vm8, %v5500_v52, %v3303_v16  ;;  %v3390_v62 = vsel %vm3190_vm8, %v5666_v30, %v3389_v20  ;;  %v3404_v52 = vsel %vm3187_vm9, %v5541_v19, %v3403_v38  ;;  %v3433_v27 = vsel %vm3184_vm10, %v5392_v41, %v5382_v28 }
 0x3b1   :  { %v3305_v15 = vsel %vm3193_vm7, %v5557_v26, %v3304_v17  ;;  %v3405_v26 = vsel %vm3190_vm8, %v5607_v49, %v3404_v52  ;;  %v3434_v22 = vsel %vm3187_vm9, %v5424_v5, %v3433_v27 }
 0x3b2   :  { %4581 = vmatmul.mubr.msk.f32.gmra.mrb[38].mxu0 %vm1486_vm2, %v4841_v39  ;;  %3246 = vrot.lane.b32.xlu1 %v3243_v23, %s4858_s20  ;;  %v3306_v24 = vsel %vm3196_vm6, %v5630_v2, %v3305_v15  ;;  %v3406_v25 = vsel %vm3193_vm7, %v5666_v30, %v3405_v26  ;;  %v3418_v2 = vsel %vm3184_vm10, %v5424_v5, %v5392_v41 }
 0x3b3   :  { %v3307_v36 = vsel %vm3199_vm4, %v5672_v45, %v3306_v24  ;;  %v3419_v14 = vsel %vm3187_vm9, %v5476_v44, %v3418_v2  ;;  %v3435_v34 = vsel %vm3190_vm8, %v5476_v44, %v3434_v22 }
 0x3b4   :  { %3361 = vrot.lane.b32.xlu0 %v3358_v56, %s4859_s24  ;;  %v3420_v11 = vsel %vm3190_vm8, %v5541_v19, %v3419_v14  ;;  %v3436_v32 = vsel %vm3193_vm7, %v5541_v19, %v3435_v34 }
 0x3b5   :  { %v3421_v45 = vsel %vm3193_vm7, %v5607_v49, %v3420_v11  ;;  %v3437_v35 = vsel %vm3196_vm6, %v5607_v49, %v3436_v32 }
 0x3b6   :  { %4588 = vmatmul.mubr.msk.f32.vlgmr.msra.gmra.mrb[36].mxu1 %vm1486_vm2, %v4842_v29  ;;  %3262 = vrot.lane.b32.xlu1 %v3259_v60, %s4856_s13  ;;  %v3422_v31 = vsel %vm3196_vm6, %v5666_v30, %v3421_v45  ;;  %v3438_v28 = vsel %vm3199_vm4, %v5666_v30, %v3437_v35 }
 0x3b7   :  { %4590 = vmatprep.mubr.msk.f32.mxu1 %vm1486_vm2, %v4843_v58 }
 0x3b8   :  { %3332 = vrot.lane.b32.xlu0 %v3331_v57, %s4863_s15 }
 0x3ba   :  { %4591 = vmatmul.mubr.msk.f32.gmra.mrb[38].mxu1 %vm1486_vm2, %v4844_v6  ;;  %3278 = vrot.lane.b32.xlu1 %v3275_v59, %s4855_s12  ;;  %vm3220_vm2 = vcmask 122944  }
 0x3bc   :  { %3377 = vrot.lane.b32.xlu0 %v3374_v4, %s4857_s14 }
 0x3be   :  { %3294 = vrot.lane.b32.xlu1 %v3291_v12, %s4853_s10 }
 0x3c0   :  { %3393 = vrot.lane.b32.xlu0 %v3390_v62, %s4854_s11 }
 0x3c2   :  { %3310 = vrot.lane.b32.xlu1 %v3307_v36, %s4851_s9 }
 0x3c4   :  { %3409 = vrot.lane.b32.xlu0 %v3406_v25, %s4852_s2 }
 0x3c8   :  { %3425 = vrot.lane.b32.xlu0 %v3422_v31, %s4850_s8 }
 0x3cc   :  { %3441 = vrot.lane.b32.xlu0 %v3438_v28, %s4849_s30 }
 0x3ec   :  { %v5851_v41 = vpop.permute.xlu1 %3439 }
 0x3f7   :  { %v5853_v18 = vpop.permute.xlu1 %3423 }
 0x3f9   :  { %v3309_v50 = vpop.permute.xlu0 %3308 }
 0x3fb   :  { %v5855_v5 = vpop.permute.xlu1 %3407 }
 0x3ff   :  { %v3293_v44 = vpop.permute.xlu0 %3292 }
 0x400   :  { %v5857_v23 = vpop.permute.xlu1 %3391 }
 0x403   :  { %v3277_v19 = vpop.permute.xlu0 %3276 }
 0x407   :  { %v3261_v39 = vpop.permute.xlu0 %3260 }
 0x408   :  { %v5859_v37 = vpop.permute.xlu1 %3375 }
 0x40b   :  { %v3245_v30 = vpop.permute.xlu0 %3244 }
 0x40f   :  { %v3360_v46 = vpop.permute.xlu1 %3359 }
 0x413   :  { %v3229_v49 = vpop.permute.xlu1 %3228 }
 0x417   :  { %v3344_v40 = vpop.permute.xlu1 %3343 }
 0x41b   :  { %v3213_v13 = vpop.permute.xlu1 %3212 }
 0x41c   :  { %3219 = vst.msk [vmem:[%s6725_s6 - $0x1] sm:$0xfe] %vm3218_vm11, %v3213_v13  ;;  %vm3252_vm11 = vcmask 256192  }
 0x41d   :  { %3235 = vst.msk [vmem:[%s6725_s6 - $0x2] sm:$0xfc] %vm3234_vm12, %v3229_v49  ;;  %vm3268_vm12 = vcmask 322816  }
 0x41e   :  { %3251 = vst.msk [vmem:[%s6725_s6 - $0x3] sm:$0xf8] %vm3250_vm13, %v3245_v30  ;;  %v3346_v56 = vpop.permute.xlu0 %3345  ;;  %vm3284_vm13 = vcmask 389440  }
 0x41f   :  { %3267 = vst.msk [vmem:[%s6725_s6 - $0x4] sm:$0xf0] %vm3266_vm14, %v3261_v39  ;;  %vm3300_vm14 = vcmask 456064  }
 0x420   :  { %v3231_v55 = vpop.permute.xlu1 %3230  ;;  %3283 = vst.msk [vmem:[%s6725_s6 - $0x5] sm:$0xe0] %vm3282_vm15, %v3277_v19  ;;  %vm3316_vm15 = vcmask 522688  }
 0x421   :  { %3299 = vst.msk [vmem:[%s6725_s6 - $0x6] sm:$0xc0] %vm3298_vm0, %v3293_v44  ;;  %vm3335_vm0 = vcmask 589312  }
 0x422   :  { %v3215_v21 = vpop.permute.xlu0 %3214  ;;  %3315 = vst.msk [vmem:[%s6725_s6 - $0x7] sm:$0x80] %vm3314_vm1, %v3309_v50  ;;  %vm3349_vm1 = vcmask 654913  }
 0x423   :  { %3221 = vst.msk [vmem:[%s6725_s6 + $0x7] sm:$0x1] %vm3220_vm2, %v3215_v21  ;;  %vm3351_vm2 = vcmask 647744  }
 0x424   :  { %3237 = vst.msk [vmem:[%s6725_s6 + $0x6] sm:$0x3] %vm3236_vm5, %v3231_v55  ;;  %v3247_v47 = vpop.permute.xlu1 %3246  ;;  %vm3367_vm5 = vcmask 714368  }
 0x425   :  { %3253 = vst.msk [vmem:[%s6725_s6 + $0x5] sm:$0x7] %vm3252_vm11, %v3247_v47  ;;  %vm3365_vm11 = vcmask 720514  }
 0x426   :  { %v3362_v48 = vpop.permute.xlu0 %3361 }
 0x428   :  { %v3263_v8 = vpop.permute.xlu1 %3262 }
 0x429   :  { %3269 = vst.msk [vmem:[%s6725_s6 + $0x4] sm:$0xf] %vm3268_vm12, %v3263_v8  ;;  %vm3381_vm12 = vcmask 786115  }
 0x42a   :  { %v3333_v0 = vpop.permute.xlu0 %3332 }
 0x42c   :  { %v3279_v60 = vpop.permute.xlu1 %3278 }
 0x42d   :  { %3285 = vst.msk [vmem:[%s6725_s6 + $0x3] sm:$0x1f] %vm3284_vm13, %v3279_v60  ;;  %vm3383_vm13 = vcmask 780992  }
 0x42e   :  { %v3378_v42 = vpop.permute.xlu0 %3377 }
 0x430   :  { %v3295_v53 = vpop.permute.xlu1 %3294 }
 0x431   :  { %3301 = vst.msk [vmem:[%s6725_s6 + $0x2] sm:$0x3f] %vm3300_vm14, %v3295_v53  ;;  %vm3397_vm14 = vcmask 851716  }
 0x432   :  { %v3394_v29 = vpop.permute.xlu0 %3393 }
 0x434   :  { %v3311_v43 = vpop.permute.xlu1 %3310 }
 0x435   :  { %3317 = vst.msk [vmem:[%s6725_s6 + $0x1] sm:$0x7f] %vm3316_vm15, %v3311_v43  ;;  %vm3415_vm15 = vcmask 914240  }
 0x436   :  { %3336 = vst.msk [vmem:[%s6725_s6] sm:$0xff] %vm3335_vm0, %v3333_v0  ;;  %v3410_v51 = vpop.permute.xlu0 %3409  ;;  %vm3413_vm0 = vcmask 917317  }
 0x437   :  { %3350 = vst.msk [vmem:[%s6725_s6 - $0x1] sm:$0xfe] %vm3349_vm1, %v3344_v40  ;;  %vm3431_vm1 = vcmask 980864  }
 0x438   :  { %3352 = vst.msk [vmem:[%s6725_s6 + $0x7] sm:$0x1] %vm3351_vm2, %v3346_v56  ;;  %vm3429_vm2 = vcmask 982918  }
 0x439   :  { %3368 = vst.msk [vmem:[%s6725_s6 + $0x6] sm:$0x3] %vm3367_vm5, %v3362_v48  ;;  %vm3445_vm5 = vcmask 1048519  }
 0x43a   :  { %3366 = vst.msk [vmem:[%s6725_s6 - $0x2] sm:$0xfc] %vm3365_vm11, %v3360_v46  ;;  %v3426_v57 = vpop.permute.xlu0 %3425  ;;  %vm3447_vm11 = vcmask 1047488  }
 0x43b   :  { %3382 = vst.msk [vmem:[%s6725_s6 - $0x3] sm:$0xf8] %vm3381_vm12, %v5859_v37 }
 0x43c   :  { %3384 = vst.msk [vmem:[%s6725_s6 + $0x5] sm:$0x7] %vm3383_vm13, %v3378_v42 }
 0x43d   :  { %3398 = vst.msk [vmem:[%s6725_s6 - $0x4] sm:$0xf0] %vm3397_vm14, %v5857_v23 }
 0x43e   :  { %3400 = vst.msk [vmem:[%s6725_s6 + $0x4] sm:$0xf] %vm3399_vm3, %v3394_v29  ;;  %v3442_v58 = vpop.permute.xlu0 %3441  ;;  %vm6730_vm3 = vcmask 1047559  }
 0x43f   :  { %3416 = vst.msk [vmem:[%s6725_s6 + $0x3] sm:$0x1f] %vm3415_vm15, %v3410_v51  ;;  %vm6731_vm12 = vmmov %vm6730_vm3 }
 0x440   :  { %3414 = vst.msk [vmem:[%s6725_s6 - $0x5] sm:$0xe0] %vm3413_vm0, %v5855_v5  ;;  %vm6732_vm13 = vmmov %vm6730_vm3 }
 0x441   :  { %3432 = vst.msk [vmem:[%s6725_s6 + $0x2] sm:$0x3f] %vm3431_vm1, %v3426_v57  ;;  %vm6733_vm14 = vmmov %vm6730_vm3 }
 0x442   :  { %3430 = vst.msk [vmem:[%s6725_s6 - $0x6] sm:$0xc0] %vm3429_vm2, %v5853_v18  ;;  %vm6734_vm15 = vmmov %vm6730_vm3 }
 0x443   :  { %3446 = vst.msk [vmem:[%s6725_s6 - $0x7] sm:$0x80] %vm3445_vm5, %v5851_v41  ;;  %vm6735_vm0 = vmmov %vm6730_vm3 }
 0x444   :  { %3448 = vst.msk [vmem:[%s6725_s6 + $0x1] sm:$0x7f] %vm3447_vm11, %v3442_v58  ;;  %vm6736_vm1 = vmmov %vm6735_vm0 }
 0x445   :  { %vm6737_vm2 = vmmov %vm6735_vm0 }
 0x446   :  { %vm6738_vm5 = vmmov %vm6735_vm0 }
 0x447   :  { %vm6741_vm11 = vmmov %vm6735_vm0 }
 0x464   :  { %v5953_v61 = vpop.f32.mrb[24].mxu0 }
 0x465   :  { %v5955_v54 = vpop.f32.mrb[25].mxu0  ;;  %v3631_v59 = vrot.slane %v5953_v61, 1  ;;  %v3721_v63 = vrot.slane %v5953_v61, 6  ;;  %v3649_v3 = vrot.slane %v5953_v61, 2  ;;  %v3667_v4 = vrot.slane %v5953_v61, 3 }
 0x466   :  { %v3512_v1 = vrot.slane %v5955_v54, 3  ;;  %v3531_v9 = vrot.slane %v5955_v54, 4  ;;  %v3474_v16 = vrot.slane %v5955_v54, 1  ;;  %v3569_v15 = vrot.slane %v5955_v54, 6 }
 0x467   :  { %v5959_v6 = vpop.f32.mrb[24].mxu1  ;;  %v3493_v24 = vrot.slane %v5955_v54, 2  ;;  %v3685_v26 = vrot.slane %v5953_v61, 4 }
 0x468   :  { %v5965_v10 = vpop.f32.mrb[26].mxu0  ;;  %v5967_v33 = vpop.f32.mrb[25].mxu1  ;;  %v3722_v12 = vrot.slane %v5959_v6, 5  ;;  %v3632_v7 = vsel %vm3184_vm10, %v5959_v6, %v3631_v59  ;;  %v3650_v52 = vrot.slane %v5959_v6, 1  ;;  %v3668_v29 = vrot.slane %v5959_v6, 2 }
 0x469   :  { %v5975_v62 = vpop.f32.mrb[27].mxu0  ;;  %v3513_v25 = vrot.slane %v5967_v33, 2  ;;  %v3532_v2 = vrot.slane %v5967_v33, 3  ;;  %v3570_v32 = vrot.slane %v5967_v33, 5  ;;  %v3475_v35 = vsel %vm3184_vm10, %v5967_v33, %v3474_v16 }
 0x46a   :  { %v3723_v34 = vsel %vm3184_vm10, %v3722_v12, %v3721_v63  ;;  %v3651_v55 = vsel %vm3184_vm10, %v3650_v52, %v3649_v3  ;;  %v3494_v21 = vrot.slane %v5967_v33, 1 }
 0x46b   :  { %v5987_v45 = vpop.f32.mrb[26].mxu1  ;;  %v3571_v39 = vsel %vm3184_vm10, %v3570_v32, %v3569_v15 }
 0x46c   :  { %v5990_v31 = vpop.f32.mrb[27].mxu1  ;;  %v5992_v22 = vpop.f32.mrb[28].mxu0 }
 0x46d   :  { %v6002_v50 = vpop.f32.mrb[29].mxu0  ;;  %v3724_v49 = vrot.slane %v5992_v22, 4  ;;  %v3633_v13 = vrot.slane %v5992_v22, 7  ;;  %v3652_v42 = vsel %vm3187_vm9, %v5992_v22, %v3651_v55 }
 0x46e   :  { %v3572_v40 = vrot.slane %v6002_v50, 4  ;;  %v3476_v56 = vrot.slane %v6002_v50, 7 }
 0x46f   :  { %v3725_v0 = vsel %vm3187_vm9, %v3724_v49, %v3723_v34  ;;  %v3634_v57 = vsel %vm3187_vm9, %v3633_v13, %v3632_v7  ;;  %v3495_v34 = vsel %vm3184_vm10, %v3494_v21, %v3493_v24 }
 0x470   :  { %v6012_v30 = vpop.f32.mrb[30].mxu0  ;;  %v3573_v60 = vsel %vm3187_vm9, %v3572_v40, %v3571_v39  ;;  %v3477_v3 = vsel %vm3187_vm9, %v3476_v56, %v3475_v35 }
 0x471   :  { %v6019_v48 = vpop.f32.mrb[28].mxu1  ;;  %v6021_v8 = vpop.f32.mrb[31].mxu0 }
 0x472   :  { %v6029_v43 = vpop.f32.mrb[29].mxu1  ;;  %v3726_v51 = vrot.slane %v6019_v48, 3  ;;  %v3635_v63 = vrot.slane %v6019_v48, 6  ;;  %v3653_v52 = vrot.slane %v6019_v48, 7 }
 0x473   :  { %v3574_v59 = vrot.slane %v6029_v43, 3  ;;  %v3478_v15 = vrot.slane %v6029_v43, 6 }
 0x474   :  { %v6037_v12 = vpop.f32.mrb[32].mxu0  ;;  %v3727_v16 = vsel %vm3190_vm8, %v3726_v51, %v3725_v0  ;;  %v3636_v40 = vsel %vm3190_vm8, %v3635_v63, %v3634_v57  ;;  %v3654_v37 = vsel %vm3190_vm8, %v3653_v52, %v3652_v42 }
 0x475   :  { %v6044_v32 = vpop.f32.mrb[30].mxu1  ;;  %v6046_v49 = vpop.f32.mrb[33].mxu0  ;;  %v3728_v39 = vrot.slane %v6037_v12, 2  ;;  %v3575_v35 = vsel %vm3190_vm8, %v3574_v59, %v3573_v60  ;;  %v3637_v21 = vrot.slane %v6037_v12, 5  ;;  %v3479_v19 = vsel %vm3190_vm8, %v3478_v15, %v3477_v3 }
 0x476   :  { %v6053_v55 = vpop.f32.mrb[31].mxu1  ;;  %v3576_v24 = vrot.slane %v6046_v49, 2  ;;  %v3480_v60 = vrot.slane %v6046_v49, 5  ;;  %v3655_v56 = vrot.slane %v6037_v12, 6  ;;  %v3497_v15 = vrot.slane %v6029_v43, 7 }
 0x477   :  { %v3729_v51 = vsel %vm3193_vm7, %v3728_v39, %v3727_v16  ;;  %v3638_v63 = vsel %vm3193_vm7, %v3637_v21, %v3636_v40  ;;  %v3496_v16 = vsel %vm3187_vm9, %v6002_v50, %v3495_v34  ;;  %v3499_v36 = vrot.slane %v6046_v49, 6 }
 0x478   :  { %v6061_v59 = vpop.f32.mrb[34].mxu0  ;;  %v3577_v57 = vsel %vm3193_vm7, %v3576_v24, %v3575_v35  ;;  %v3481_v3 = vsel %vm3193_vm7, %v3480_v60, %v3479_v19  ;;  %v3656_v40 = vsel %vm3193_vm7, %v3655_v56, %v3654_v37  ;;  %v3498_v34 = vsel %vm3190_vm8, %v3497_v15, %v3496_v16 }
 0x479   :  { %v6068_v13 = vpop.f32.mrb[35].mxu0  ;;  %v6070_v0 = vpop.f32.mrb[32].mxu1  ;;  %v3673_v16 = vrot.slane %v6037_v12, 7 }
 0x47a   :  { %v6077_v35 = vpop.f32.mrb[33].mxu1  ;;  %v3730_v42 = vrot.slane %v6070_v0, 1  ;;  %v3639_v52 = vrot.slane %v6070_v0, 4  ;;  %v3657_v19 = vrot.slane %v6070_v0, 5  ;;  %v3675_v15 = vrot.slane %v6070_v0, 6 }
 0x47b   :  { %v3578_v24 = vrot.slane %v6077_v35, 1  ;;  %v3482_v21 = vrot.slane %v6077_v35, 4  ;;  %v3501_v38 = vrot.slane %v6077_v35, 5 }
 0x47c   :  { %v3731_v60 = vsel %vm3196_vm6, %v3730_v42, %v3729_v51  ;;  %v3640_v39 = vsel %vm3196_vm6, %v3639_v52, %v3638_v63  ;;  %v3658_v44 = vsel %vm3196_vm6, %v3657_v19, %v3656_v40  ;;  %v3500_v51 = vsel %vm3193_vm7, %v3499_v36, %v3498_v34 }
 0x47d   :  { %v6090_v7 = vpop.f32.mrb[34].mxu1  ;;  %v3579_v37 = vsel %vm3196_vm6, %v3578_v24, %v3577_v57  ;;  %v3483_v56 = vsel %vm3196_vm6, %v3482_v21, %v3481_v3  ;;  %v3670_v63 = vrot.slane %v5992_v22, 1  ;;  %v3502_v42 = vsel %vm3196_vm6, %v3501_v38, %v3500_v51 }
 0x47e   :  { %v6096_v5 = vpop.f32.mrb[35].mxu1  ;;  %v3669_v57 = vsel %vm3184_vm10, %v3668_v29, %v3667_v4  ;;  %v3514_v3 = vsel %vm3184_vm10, %v3513_v25, %v3512_v1  ;;  %v3515_v36 = vrot.slane %v6002_v50, 1  ;;  %v3518_v40 = vrot.slane %v6046_v49, 7 }
 0x47f   :  { %v3671_v52 = vsel %vm3187_vm9, %v3670_v63, %v3669_v57  ;;  %v3520_v24 = vrot.slane %v6077_v35, 6  ;;  %v3686_v38 = vrot.slane %v5959_v6, 3  ;;  %v3688_v19 = vrot.slane %v5992_v22, 2 }
 0x480   :  { %v3672_v4 = vsel %vm3190_vm8, %v6019_v48, %v3671_v52  ;;  %v3516_v29 = vsel %vm3187_vm9, %v3515_v36, %v3514_v3  ;;  %v3690_v1 = vrot.slane %v6019_v48, 1 }
 0x481   :  { %v6116_v21 = vpop.f32.mrb[36].mxu0  ;;  %v3674_v57 = vsel %vm3193_vm7, %v3673_v16, %v3672_v4  ;;  %v3517_v41 = vsel %vm3190_vm8, %v6029_v43, %v3516_v29  ;;  %v3687_v29 = vsel %vm3184_vm10, %v3686_v38, %v3685_v26  ;;  %v3536_v26 = vrot.slane %v6029_v43, 1 }
 0x482   :  { %v6123_v25 = vpop.f32.mrb[37].mxu0  ;;  %v3732_v34 = vsel %vm3199_vm4, %v6116_v21, %v3731_v60  ;;  %v3641_v51 = vrot.slane %v6116_v21, 3  ;;  %v3659_v63 = vrot.slane %v6116_v21, 4  ;;  %v3676_v53 = vsel %vm3196_vm6, %v3675_v15, %v3674_v57 }
 0x483   :  { %v3580_v52 = vsel %vm3199_vm4, %v6123_v25, %v3579_v37  ;;  %v3484_v3 = vrot.slane %v6123_v25, 3  ;;  %v3503_v36 = vrot.slane %v6123_v25, 4  ;;  %v3677_v60 = vrot.slane %v6116_v21, 5 }
 0x484   :  { %v3642_v18 = vsel %vm3199_vm4, %v3641_v51, %v3640_v39  ;;  %v3660_v47 = vsel %vm3199_vm4, %v3659_v63, %v3658_v44  ;;  %v3519_v4 = vsel %vm3193_vm7, %v3518_v40, %v3517_v41  ;;  %v3522_v28 = vrot.slane %v6123_v25, 5 }
 0x485   :  { %v6140_v46 = vpop.f32.mrb[38].mxu0  ;;  %v3485_v16 = vsel %vm3199_vm4, %v3484_v3, %v3483_v56  ;;  %v3504_v37 = vsel %vm3199_vm4, %v3503_v36, %v3502_v42  ;;  %v3678_v44 = vsel %vm3199_vm4, %v3677_v60, %v3676_v53  ;;  %v3521_v51 = vsel %vm3196_vm6, %v3520_v24, %v3519_v4 }
 0x486   :  { %v6147_v39 = vpop.f32.mrb[39].mxu0  ;;  %v3523_v56 = vsel %vm3199_vm4, %v3522_v28, %v3521_v51  ;;  %v3689_v42 = vsel %vm3187_vm9, %v3688_v19, %v3687_v29  ;;  %v3693_v41 = vrot.slane %v6070_v0, 7  ;;  %v3695_v40 = vrot.slane %v6116_v21, 6 }
 0x487   :  { %v3691_v63 = vsel %vm3190_vm8, %v3690_v1, %v3689_v42  ;;  %v3533_v53 = vsel %vm3184_vm10, %v3532_v2, %v3531_v9  ;;  %v3534_v24 = vrot.slane %v6002_v50, 2  ;;  %v3539_v19 = vrot.slane %v6077_v35, 7 }
 0x488   :  { %v3692_v28 = vsel %vm3193_vm7, %v6037_v12, %v3691_v63  ;;  %v3541_v57 = vrot.slane %v6123_v25, 6  ;;  %v3703_v1 = vrot.slane %v5953_v61, 5 }
 0x489   :  { %v6166_v38 = vpop.f32.mrb[36].mxu1 }
 0x48a   :  { %v6173_v3 = vpop.f32.mrb[37].mxu1  ;;  %v3733_v36 = vrot.slane %v6166_v38, 7  ;;  %v3643_v9 = vrot.slane %v6166_v38, 2  ;;  %v3661_v2 = vrot.slane %v6166_v38, 3  ;;  %v3679_v60 = vrot.slane %v6166_v38, 4 }
 0x48b   :  { %v3581_v4 = vrot.slane %v6173_v3, 7  ;;  %v3486_v51 = vrot.slane %v6173_v3, 2  ;;  %v3505_v29 = vrot.slane %v6173_v3, 3  ;;  %v3524_v42 = vrot.slane %v6173_v3, 4 }
 0x48c   :  { %v3734_v63 = vsel %vm6730_vm3, %v3733_v36, %v3732_v34  ;;  %v3644_v15 = vsel %vm6731_vm12, %v3643_v9, %v3642_v18  ;;  %v3662_v27 = vsel %vm6732_vm13, %v3661_v2, %v3660_v47  ;;  %v3680_v58 = vsel %vm6733_vm14, %v3679_v60, %v3678_v44  ;;  %vm6742_vm3 = vmmov %vm6735_vm0 }
 0x48d   :  { %3735 = vrot.lane.b32.xlu0 %v3734_v63, %s4854_s11  ;;  %v6188_v23 = vpop.f32.mrb[38].mxu1  ;;  %v3582_v11 = vsel %vm6734_vm15, %v3581_v4, %v3580_v52  ;;  %v3487_v17 = vsel %vm6735_vm0, %v3486_v51, %v3485_v16  ;;  %v3506_v14 = vsel %vm6736_vm1, %v3505_v29, %v3504_v37  ;;  %v3525_v20 = vsel %vm6737_vm2, %v3524_v42, %v3523_v56  ;;  %vm6743_vm12 = vmmov %vm6735_vm0 }
 0x48e   :  { %3583 = vrot.lane.b32.xlu1 %v3582_v11, %s4854_s11  ;;  %v6195_v34 = vpop.f32.mrb[39].mxu1  ;;  %v3694_v18 = vsel %vm3196_vm6, %v3693_v41, %v3692_v28  ;;  %v3697_v47 = vrot.slane %v6166_v38, 5  ;;  %v3535_v44 = vsel %vm3187_vm9, %v3534_v24, %v3533_v53  ;;  %v3543_v36 = vrot.slane %v6173_v3, 5  ;;  %vm6746_vm13 = vmmov %vm6735_vm0 }
 0x48f   :  { %v3696_v52 = vsel %vm3199_vm4, %v3695_v40, %v3694_v18  ;;  %v3537_v16 = vsel %vm3190_vm8, %v3536_v26, %v3535_v44  ;;  %v3704_v37 = vrot.slane %v5959_v6, 4  ;;  %v3706_v56 = vrot.slane %v5992_v22, 3  ;;  %vm6749_vm14 = vmmov %vm6735_vm0 }
 0x490   :  { %v3698_v11 = vsel %vm6738_vm5, %v3697_v47, %v3696_v52  ;;  %v3538_v9 = vsel %vm3193_vm7, %v6046_v49, %v3537_v16  ;;  %v3708_v41 = vrot.slane %v6019_v48, 2  ;;  %v3710_v28 = vrot.slane %v6037_v12, 1  ;;  %vm6750_vm15 = vmmov %vm6735_vm0 }
 0x491   :  { %3645 = vrot.lane.b32.xlu0 %v3644_v15, %s4860_s16  ;;  %v3540_v53 = vsel %vm3196_vm6, %v3539_v19, %v3538_v9  ;;  %v3705_v40 = vsel %vm3184_vm10, %v3704_v37, %v3703_v1  ;;  %v3713_v24 = vrot.slane %v6116_v21, 7  ;;  %v3715_v26 = vrot.slane %v6166_v38, 6  ;;  %vm6752_vm1 = vmmov %vm6735_vm0 }
 0x492   :  { %3488 = vrot.lane.b32.xlu1 %v3487_v17, %s4860_s16  ;;  %v3542_v2 = vsel %vm3199_vm4, %v3541_v57, %v3540_v53  ;;  %v3707_v60 = vsel %vm3187_vm9, %v3706_v56, %v3705_v40  ;;  %v6739_v4 = vrot.slane %v5955_v54, 5  ;;  %v6740_v51 = vrot.slane %v5967_v33, 4  ;;  %vm6755_vm2 = vmmov %vm6735_vm0 }
 0x493   :  { %v3553_v19 = vrot.slane %v6002_v50, 3  ;;  %v3544_v1 = vsel %vm6741_vm11, %v3543_v36, %v3542_v2  ;;  %v3709_v29 = vsel %vm3190_vm8, %v3708_v41, %v3707_v60  ;;  %v3555_v42 = vrot.slane %v6029_v43, 2  ;;  %vm6756_vm5 = vmmov %vm6735_vm0 }
 0x494   :  { %v3552_v15 = vsel %vm3184_vm10, %v6740_v51, %v6739_v4  ;;  %v3557_v17 = vrot.slane %v6046_v49, 1  ;;  %v3711_v57 = vsel %vm3193_vm7, %v3710_v28, %v3709_v29  ;;  %v3560_v18 = vrot.slane %v6123_v25, 7  ;;  %vm6757_vm11 = vmmov %vm6735_vm0 }
 0x495   :  { %v3554_v63 = vsel %vm3187_vm9, %v3553_v19, %v3552_v15  ;;  %v3562_v47 = vrot.slane %v6173_v3, 6  ;;  %3663 = vrot.lane.b32.xlu0 %v3662_v27, %s4856_s13  ;;  %v3712_v44 = vsel %vm3196_vm6, %v6070_v0, %v3711_v57  ;;  %v3739_v52 = vrot.slane %v5953_v61, 7 }
 0x496   :  { %v3556_v36 = vsel %vm3190_vm8, %v3555_v42, %v3554_v63  ;;  %v3740_v16 = vrot.slane %v5959_v6, 6  ;;  %3507 = vrot.lane.b32.xlu1 %v3506_v14, %s4856_s13  ;;  %v3714_v37 = vsel %vm3199_vm4, %v3713_v24, %v3712_v44  ;;  %v3742_v9 = vrot.slane %v5992_v22, 5 }
 0x497   :  { %v3558_v56 = vsel %vm3193_vm7, %v3557_v17, %v3556_v36  ;;  %v3744_v41 = vrot.slane %v6019_v48, 4  ;;  %v3716_v27 = vsel %vm6742_vm3, %v3715_v26, %v3714_v37  ;;  %v3746_v40 = vrot.slane %v6037_v12, 3  ;;  %vm6760_vm3 = vmmov %vm6735_vm0 }
 0x498   :  { %v3559_v28 = vsel %vm3196_vm6, %v6077_v35, %v3558_v56  ;;  %v3741_v53 = vsel %vm3184_vm10, %v3740_v16, %v3739_v52  ;;  %v3748_v24 = vrot.slane %v6070_v0, 2  ;;  %v3750_v60 = vrot.slane %v6116_v21, 1 }
 0x499   :  { %v3561_v2 = vsel %vm3199_vm4, %v3560_v18, %v3559_v28  ;;  %v3743_v14 = vsel %vm3187_vm9, %v3742_v9, %v3741_v53  ;;  %3681 = vrot.lane.b32.xlu0 %v3680_v58, %s4853_s10  ;;  %v6744_v51 = vrot.slane %v5955_v54, 7  ;;  %v6745_v15 = vrot.slane %v5967_v33, 6 }
 0x49a   :  { %v3563_v4 = vsel %vm6743_vm12, %v3562_v47, %v3561_v2  ;;  %v3745_v26 = vsel %vm3190_vm8, %v3744_v41, %v3743_v14  ;;  %v3591_v29 = vrot.slane %v6002_v50, 5  ;;  %3526 = vrot.lane.b32.xlu1 %v3525_v20, %s4853_s10  ;;  %v3593_v17 = vrot.slane %v6029_v43, 4  ;;  %vm6763_vm12 = vmmov %vm6735_vm0 }
 0x49b   :  { %v3590_v19 = vsel %vm3184_vm10, %v6745_v15, %v6744_v51  ;;  %v3747_v42 = vsel %vm3193_vm7, %v3746_v40, %v3745_v26  ;;  %v3595_v58 = vrot.slane %v6046_v49, 3  ;;  %v3597_v57 = vrot.slane %v6077_v35, 2 }
 0x49c   :  { %v3749_v63 = vsel %vm3196_vm6, %v3748_v24, %v3747_v42  ;;  %v3592_v18 = vsel %vm3187_vm9, %v3591_v29, %v3590_v19  ;;  %v3599_v47 = vrot.slane %v6123_v25, 1  ;;  %v4021_v44 = vrot.slane %v5965_v10, 6 }
 0x49d   :  { %v3751_v36 = vsel %vm3199_vm4, %v3750_v60, %v3749_v63  ;;  %v3594_v20 = vsel %vm3190_vm8, %v3593_v17, %v3592_v18  ;;  %v4022_v52 = vrot.slane %v5987_v45, 5  ;;  %v4024_v16 = vrot.slane %v6012_v30, 4  ;;  %3699 = vrot.lane.b32.xlu0 %v3698_v11, %s4863_s15 }
 0x49e   :  { %v3752_v37 = vsel %vm6746_vm13, %v6166_v38, %v3751_v36  ;;  %v3596_v56 = vsel %vm3193_vm7, %v3595_v58, %v3594_v20  ;;  %v4026_v9 = vrot.slane %v6044_v32, 3  ;;  %v4028_v41 = vrot.slane %v6061_v59, 2  ;;  %3545 = vrot.lane.b32.xlu1 %v3544_v1, %s4863_s15  ;;  %vm6764_vm13 = vmmov %vm6735_vm0 }
 0x49f   :  { %v3598_v28 = vsel %vm3196_vm6, %v3597_v57, %v3596_v56  ;;  %v4023_v53 = vsel %vm3184_vm10, %v4022_v52, %v4021_v44  ;;  %v4030_v40 = vrot.slane %v6090_v7, 1  ;;  %v4033_v2 = vrot.slane %v6188_v23, 7 }
 0x4a0   :  { %v3600_v11 = vsel %vm3199_vm4, %v3599_v47, %v3598_v28  ;;  %v4025_v14 = vsel %vm3187_vm9, %v4024_v16, %v4023_v53  ;;  %v6747_v24 = vrot.slane %v5975_v62, 6  ;;  %v6748_v60 = vrot.slane %v5990_v31, 5 }
 0x4a1   :  { %v3874_v1 = vrot.slane %v6021_v8, 4  ;;  %v3601_v51 = vsel %vm6749_vm14, %v6173_v3, %v3600_v11  ;;  %v4027_v15 = vsel %vm3190_vm8, %v4026_v9, %v4025_v14  ;;  %v3876_v19 = vrot.slane %v6053_v55, 3  ;;  %3717 = vrot.lane.b32.xlu0 %v3716_v27, %s4859_s24  ;;  %vm6767_vm14 = vmmov %vm6735_vm0 }
 0x4a2   :  { %v3873_v26 = vsel %vm3184_vm10, %v6748_v60, %v6747_v24  ;;  %v3878_v29 = vrot.slane %v6068_v13, 2  ;;  %v4029_v42 = vsel %vm3193_vm7, %v4028_v41, %v4027_v15  ;;  %v3880_v58 = vrot.slane %v6096_v5, 1  ;;  %3564 = vrot.lane.b32.xlu1 %v3563_v4, %s4859_s24 }
 0x4a3   :  { %v3875_v17 = vsel %vm3187_vm9, %v3874_v1, %v3873_v26  ;;  %v3883_v57 = vrot.slane %v6195_v34, 7  ;;  %v4031_v63 = vsel %vm3196_vm6, %v4030_v40, %v4029_v42  ;;  %v3931_v47 = vrot.slane %v5965_v10, 1 }
 0x4a4   :  { %v3877_v18 = vsel %vm3190_vm8, %v3876_v19, %v3875_v17  ;;  %v3933_v44 = vrot.slane %v6012_v30, 7  ;;  %v4032_v27 = vsel %vm3199_vm4, %v6140_v46, %v4031_v63  ;;  %v3935_v20 = vrot.slane %v6044_v32, 6 }
 0x4a5   :  { %v3879_v36 = vsel %vm3193_vm7, %v3878_v29, %v3877_v18  ;;  %v3937_v52 = vrot.slane %v6061_v59, 5  ;;  %v4034_v16 = vsel %vm6750_vm15, %v4033_v2, %v4032_v27  ;;  %v3932_v56 = vsel %vm3184_vm10, %v5987_v45, %v3931_v47  ;;  %3753 = vrot.lane.b32.xlu0 %v3752_v37, %s4850_s8  ;;  %vm6768_vm15 = vmmov %vm6735_vm0 }
 0x4a6   :  { %v3881_v4 = vsel %vm3196_vm6, %v3880_v58, %v3879_v36  ;;  %v3939_v9 = vrot.slane %v6090_v7, 4  ;;  %v3934_v28 = vsel %vm3187_vm9, %v3933_v44, %v3932_v56  ;;  %v3941_v53 = vrot.slane %v6140_v46, 3  ;;  %3602 = vrot.lane.b32.xlu1 %v3601_v51, %s4850_s8 }
 0x4a7   :  { %v3882_v41 = vsel %vm3199_vm4, %v6147_v39, %v3881_v4  ;;  %v3943_v40 = vrot.slane %v6188_v23, 2  ;;  %v3936_v11 = vsel %vm3190_vm8, %v3935_v20, %v3934_v28  ;;  %v6751_v14 = vrot.slane %v5975_v62, 1 }
 0x4a8   :  { %v3884_v2 = vsel %vm6735_vm0, %v3883_v57, %v3882_v41  ;;  %v3783_v24 = vrot.slane %v6021_v8, 7  ;;  %v3938_v60 = vsel %vm3193_vm7, %v3937_v52, %v3936_v11  ;;  %v3785_v26 = vrot.slane %v6053_v55, 6 }
 0x4a9   :  { %v3782_v37 = vsel %vm3184_vm10, %v5990_v31, %v6751_v14  ;;  %v3787_v1 = vrot.slane %v6068_v13, 5  ;;  %v3789_v15 = vrot.slane %v6096_v5, 4  ;;  %v3940_v51 = vsel %vm3196_vm6, %v3939_v9, %v3938_v60  ;;  %4035 = vrot.lane.b32.xlu0 %v4034_v16, %s4854_s11 }
 0x4aa   :  { %v3784_v19 = vsel %vm3187_vm9, %v3783_v24, %v3782_v37  ;;  %v3791_v29 = vrot.slane %v6147_v39, 3  ;;  %v3793_v42 = vrot.slane %v6195_v34, 2  ;;  %v3942_v17 = vsel %vm3199_vm4, %v3941_v53, %v3940_v51  ;;  %3885 = vrot.lane.b32.xlu1 %v3884_v2, %s4854_s11 }
 0x4ab   :  { %v3786_v58 = vsel %vm3190_vm8, %v3785_v26, %v3784_v19  ;;  %v3949_v57 = vrot.slane %v5965_v10, 2  ;;  %v3950_v63 = vrot.slane %v5987_v45, 1  ;;  %v3944_v18 = vsel %vm6752_vm1, %v3943_v40, %v3942_v17 }
 0x4ac   :  { %v3788_v47 = vsel %vm3193_vm7, %v3787_v1, %v3786_v58  ;;  %v3953_v44 = vrot.slane %v6044_v32, 7  ;;  %v3955_v27 = vrot.slane %v6061_v59, 6  ;;  %v3957_v52 = vrot.slane %v6090_v7, 5 }
 0x4ad   :  { %v3790_v36 = vsel %vm3196_vm6, %v3789_v15, %v3788_v47  ;;  %v3951_v20 = vsel %vm3184_vm10, %v3950_v63, %v3949_v57  ;;  %v3959_v16 = vrot.slane %v6140_v46, 4  ;;  %v3961_v9 = vrot.slane %v6188_v23, 3  ;;  %3945 = vrot.lane.b32.xlu0 %v3944_v18, %s4860_s16 }
 0x4ae   :  { %v3792_v4 = vsel %vm3199_vm4, %v3791_v29, %v3790_v36  ;;  %v3952_v56 = vsel %vm3187_vm9, %v6012_v30, %v3951_v20  ;;  %v6753_v41 = vrot.slane %v5975_v62, 2  ;;  %v6754_v28 = vrot.slane %v5990_v31, 1 }
 0x4af   :  { %v3794_v40 = vsel %vm6755_vm2, %v3793_v42, %v3792_v4  ;;  %v3954_v2 = vsel %vm3190_vm8, %v3953_v44, %v3952_v56  ;;  %v3803_v14 = vrot.slane %v6053_v55, 7  ;;  %v3805_v24 = vrot.slane %v6068_v13, 6  ;;  %vm6773_vm2 = vmmov %vm6752_vm1 }
 0x4b0   :  { %v3801_v53 = vsel %vm3184_vm10, %v6754_v28, %v6753_v41  ;;  %3795 = vrot.lane.b32.xlu1 %v3794_v40, %s4860_s16  ;;  %v3956_v37 = vsel %vm3193_vm7, %v3955_v27, %v3954_v2  ;;  %v3807_v60 = vrot.slane %v6096_v5, 5  ;;  %v3809_v26 = vrot.slane %v6147_v39, 4 }
 0x4b1   :  { %v3802_v11 = vsel %vm3187_vm9, %v6021_v8, %v3801_v53  ;;  %v3958_v1 = vsel %vm3196_vm6, %v3957_v52, %v3956_v37  ;;  %v3811_v51 = vrot.slane %v6195_v34, 3  ;;  %v3967_v19 = vrot.slane %v5965_v10, 3 }
 0x4b2   :  { %v3804_v15 = vsel %vm3190_vm8, %v3803_v14, %v3802_v11  ;;  %v3960_v29 = vsel %vm3199_vm4, %v3959_v16, %v3958_v1  ;;  %v3968_v17 = vrot.slane %v5987_v45, 2  ;;  %v3970_v58 = vrot.slane %v6012_v30, 1 }
 0x4b3   :  { %v3806_v42 = vsel %vm3193_vm7, %v3805_v24, %v3804_v15  ;;  %v3962_v57 = vsel %vm6756_vm5, %v3961_v9, %v3960_v29  ;;  %v3973_v18 = vrot.slane %v6061_v59, 7  ;;  %v3975_v47 = vrot.slane %v6090_v7, 6  ;;  %vm6778_vm5 = vmmov %vm6752_vm1 }
 0x4b4   :  { %v3808_v63 = vsel %vm3196_vm6, %v3807_v60, %v3806_v42  ;;  %3963 = vrot.lane.b32.xlu0 %v3962_v57, %s4856_s13  ;;  %v3969_v27 = vsel %vm3184_vm10, %v3968_v17, %v3967_v19  ;;  %v3977_v36 = vrot.slane %v6140_v46, 5  ;;  %v3979_v20 = vrot.slane %v6188_v23, 4 }
 0x4b5   :  { %v3810_v44 = vsel %vm3199_vm4, %v3809_v26, %v3808_v63  ;;  %v3971_v16 = vsel %vm3187_vm9, %v3970_v58, %v3969_v27  ;;  %v6758_v4 = vrot.slane %v5975_v62, 3  ;;  %v6759_v56 = vrot.slane %v5990_v31, 2 }
 0x4b6   :  { %v3812_v52 = vsel %vm6757_vm11, %v3811_v51, %v3810_v44  ;;  %v3820_v41 = vrot.slane %v6021_v8, 1  ;;  %v3972_v28 = vsel %vm3190_vm8, %v6044_v32, %v3971_v16  ;;  %v3823_v53 = vrot.slane %v6068_v13, 7  ;;  %vm6780_vm11 = vmmov %vm6752_vm1 }
 0x4b7   :  { %v3819_v9 = vsel %vm3184_vm10, %v6759_v56, %v6758_v4  ;;  %3813 = vrot.lane.b32.xlu1 %v3812_v52, %s4856_s13  ;;  %v3825_v40 = vrot.slane %v6096_v5, 6  ;;  %v3827_v2 = vrot.slane %v6147_v39, 5  ;;  %v3974_v11 = vsel %vm3193_vm7, %v3973_v18, %v3972_v28 }
 0x4b8   :  { %v3821_v14 = vsel %vm3187_vm9, %v3820_v41, %v3819_v9  ;;  %v3829_v37 = vrot.slane %v6195_v34, 4  ;;  %v3985_v24 = vrot.slane %v5965_v10, 4  ;;  %v3976_v60 = vsel %vm3196_vm6, %v3975_v47, %v3974_v11 }
 0x4b9   :  { %v3822_v26 = vsel %vm3190_vm8, %v6053_v55, %v3821_v14  ;;  %v3986_v1 = vrot.slane %v5987_v45, 3  ;;  %v3988_v15 = vrot.slane %v6012_v30, 2  ;;  %v3978_v51 = vsel %vm3199_vm4, %v3977_v36, %v3976_v60 }
 0x4ba   :  { %v3824_v19 = vsel %vm3193_vm7, %v3823_v53, %v3822_v26  ;;  %v3990_v29 = vrot.slane %v6044_v32, 1  ;;  %v3993_v42 = vrot.slane %v6090_v7, 7  ;;  %v3980_v17 = vsel %vm6760_vm3, %v3979_v20, %v3978_v51  ;;  %vm6782_vm3 = vmmov %vm6752_vm1 }
 0x4bb   :  { %v3826_v58 = vsel %vm3196_vm6, %v3825_v40, %v3824_v19  ;;  %v3987_v57 = vsel %vm3184_vm10, %v3986_v1, %v3985_v24  ;;  %v3995_v63 = vrot.slane %v6140_v46, 6  ;;  %3981 = vrot.lane.b32.xlu0 %v3980_v17, %s4853_s10  ;;  %v3997_v44 = vrot.slane %v6188_v23, 5 }
 0x4bc   :  { %v3828_v18 = vsel %vm3199_vm4, %v3827_v2, %v3826_v58  ;;  %v3989_v47 = vsel %vm3187_vm9, %v3988_v15, %v3987_v57  ;;  %v6761_v27 = vrot.slane %v5975_v62, 4  ;;  %v6762_v36 = vrot.slane %v5990_v31, 3 }
 0x4bd   :  { %v3830_v52 = vsel %vm6763_vm12, %v3829_v37, %v3828_v18  ;;  %v3991_v16 = vsel %vm3190_vm8, %v3990_v29, %v3989_v47  ;;  %v3838_v4 = vrot.slane %v6021_v8, 2  ;;  %v3840_v56 = vrot.slane %v6053_v55, 1  ;;  %vm6785_vm12 = vmmov %vm6752_vm1 }
 0x4be   :  { %v3837_v20 = vsel %vm3184_vm10, %v6762_v36, %v6761_v27  ;;  %3831 = vrot.lane.b32.xlu1 %v3830_v52, %s4853_s10  ;;  %v3992_v9 = vsel %vm3193_vm7, %v6061_v59, %v3991_v16  ;;  %v3843_v41 = vrot.slane %v6096_v5, 7  ;;  %v3845_v28 = vrot.slane %v6147_v39, 6 }
 0x4bf   :  { %v3847_v53 = vrot.slane %v6195_v34, 5  ;;  %v3994_v40 = vsel %vm3196_vm6, %v3993_v42, %v3992_v9  ;;  %v3839_v2 = vsel %vm3187_vm9, %v3838_v4, %v3837_v20  ;;  %v4003_v11 = vrot.slane %v5965_v10, 5 }
 0x4c0   :  { %v4004_v14 = vrot.slane %v5987_v45, 4  ;;  %v3996_v37 = vsel %vm3199_vm4, %v3995_v63, %v3994_v40  ;;  %v3841_v24 = vsel %vm3190_vm8, %v3840_v56, %v3839_v2  ;;  %v4006_v60 = vrot.slane %v6012_v30, 3 }
 0x4c1   :  { %v4008_v26 = vrot.slane %v6044_v32, 2  ;;  %v3998_v1 = vsel %vm6764_vm13, %v3997_v44, %v3996_v37  ;;  %v3842_v15 = vsel %vm3193_vm7, %v6068_v13, %v3841_v24  ;;  %v4010_v19 = vrot.slane %v6061_v59, 1 }
 0x4c2   :  { %v4005_v51 = vsel %vm3184_vm10, %v4004_v14, %v4003_v11  ;;  %3999 = vrot.lane.b32.xlu0 %v3998_v1, %s4863_s15  ;;  %v3844_v29 = vsel %vm3196_vm6, %v3843_v41, %v3842_v15  ;;  %v4013_v17 = vrot.slane %v6140_v46, 7  ;;  %v4015_v58 = vrot.slane %v6188_v23, 6 }
 0x4c3   :  { %v4007_v42 = vsel %vm3187_vm9, %v4006_v60, %v4005_v51  ;;  %v3846_v57 = vsel %vm3199_vm4, %v3845_v28, %v3844_v29  ;;  %v6765_v18 = vrot.slane %v5975_v62, 5  ;;  %v6766_v47 = vrot.slane %v5990_v31, 4 }
 0x4c4   :  { %v4009_v63 = vsel %vm3190_vm8, %v4008_v26, %v4007_v42  ;;  %v3856_v27 = vrot.slane %v6021_v8, 3  ;;  %v3848_v36 = vsel %vm6767_vm14, %v3847_v53, %v3846_v57  ;;  %v3858_v52 = vrot.slane %v6053_v55, 2 }
 0x4c5   :  { %v3855_v44 = vsel %vm3184_vm10, %v6766_v47, %v6765_v18  ;;  %v4011_v20 = vsel %vm3193_vm7, %v4010_v19, %v4009_v63  ;;  %v3860_v16 = vrot.slane %v6068_v13, 1  ;;  %3849 = vrot.lane.b32.xlu1 %v3848_v36, %s4863_s15  ;;  %v3863_v9 = vrot.slane %v6147_v39, 7 }
 0x4c6   :  { %v4012_v4 = vsel %vm3196_vm6, %v6090_v7, %v4011_v20  ;;  %v3857_v56 = vsel %vm3187_vm9, %v3856_v27, %v3855_v44  ;;  %v3865_v41 = vrot.slane %v6195_v34, 6  ;;  %v4039_v40 = vrot.slane %v5965_v10, 7 }
 0x4c7   :  { %v4014_v28 = vsel %vm3199_vm4, %v4013_v17, %v4012_v4  ;;  %v3859_v53 = vsel %vm3190_vm8, %v3858_v52, %v3857_v56  ;;  %v4040_v2 = vrot.slane %v5987_v45, 6  ;;  %v4042_v37 = vrot.slane %v6012_v30, 5 }
 0x4c8   :  { %v4016_v11 = vsel %vm6768_vm15, %v4015_v58, %v4014_v28  ;;  %v3861_v14 = vsel %vm3193_vm7, %v3860_v16, %v3859_v53  ;;  %v4044_v24 = vrot.slane %v6044_v32, 4  ;;  %v4046_v1 = vrot.slane %v6061_v59, 3 }
 0x4c9   :  { %4017 = vrot.lane.b32.xlu0 %v4016_v11, %s4859_s24  ;;  %v3862_v60 = vsel %vm3196_vm6, %v6096_v5, %v3861_v14  ;;  %v4041_v26 = vsel %vm3184_vm10, %v4040_v2, %v4039_v40  ;;  %v4048_v15 = vrot.slane %v6090_v7, 2  ;;  %vm3472_vm0 = vcmask 130048  }
 0x4ca   :  { %v3864_v51 = vsel %vm3199_vm4, %v3863_v9, %v3862_v60  ;;  %v4043_v19 = vsel %vm3187_vm9, %v4042_v37, %v4041_v26  ;;  %v4050_v29 = vrot.slane %v6140_v46, 1  ;;  %v6769_v42 = vrot.slane %v5975_v62, 7 }
 0x4cb   :  { %v6770_v17 = vrot.slane %v5990_v31, 6  ;;  %v3866_v57 = vsel %vm6752_vm1, %v3865_v41, %v3864_v51  ;;  %v4045_v63 = vsel %vm3190_vm8, %v4044_v24, %v4043_v19  ;;  %v3892_v18 = vrot.slane %v6021_v8, 5 }
 0x4cc   :  { %v3894_v47 = vrot.slane %v6053_v55, 4  ;;  %v3463_v44 = vrot.slane %v6046_v49, 4  ;;  %3867 = vrot.lane.b32.xlu1 %v3866_v57, %s4859_s24  ;;  %v4047_v27 = vsel %vm3193_vm7, %v4046_v1, %v4045_v63  ;;  %v3896_v36 = vrot.slane %v6068_v13, 3 }
 0x4cd   :  { %v3891_v58 = vsel %vm3184_vm10, %v6770_v17, %v6769_v42  ;;  %v3898_v20 = vrot.slane %v6096_v5, 2  ;;  %v4049_v52 = vsel %vm3196_vm6, %v4048_v15, %v4047_v27  ;;  %v3900_v4 = vrot.slane %v6147_v39, 1 }
 0x4ce   :  { %v3893_v16 = vsel %vm3187_vm9, %v3892_v18, %v3891_v58  ;;  %v6771_v56 = vrot.slane %v5959_v6, 7  ;;  %v4051_v49 = vsel %vm3199_vm4, %v4050_v29, %v4049_v52  ;;  %v6772_v28 = vrot.slane %v5992_v22, 6 }
 0x4cf   :  { %v3895_v41 = vsel %vm3190_vm8, %v3894_v47, %v3893_v16  ;;  %v3623_v40 = vrot.slane %v6070_v0, 3  ;;  %v4052_v2 = vsel %vm6773_vm2, %v6188_v23, %v4051_v49  ;;  %v6774_v14 = vrot.slane %v6019_v48, 5 }
 0x4d0   :  { %v3616_v9 = vsel %vm3184_vm10, %v6771_v56, %v5953_v61  ;;  %v3897_v11 = vsel %vm3193_vm7, %v3896_v36, %v3895_v41  ;;  %v3625_v61 = vrot.slane %v6116_v21, 2  ;;  %4053 = vrot.lane.b32.xlu0 %v4052_v2, %s4850_s8  ;;  %v6775_v22 = vrot.slane %v6037_v12, 4 }
 0x4d1   :  { %v3618_v53 = vsel %vm3187_vm9, %v6772_v28, %v3616_v9  ;;  %v3899_v37 = vsel %vm3196_vm6, %v3898_v20, %v3897_v11  ;;  %v3627_v0 = vrot.slane %v6166_v38, 1  ;;  %v6776_v60 = vrot.slane %v5967_v33, 7 }
 0x4d2   :  { %v3620_v6 = vsel %vm3190_vm8, %v6774_v14, %v3618_v53  ;;  %v3901_v48 = vsel %vm3199_vm4, %v3900_v4, %v3899_v37  ;;  %v6777_v21 = vrot.slane %v6002_v50, 6  ;;  %v3465_v51 = vrot.slane %v6077_v35, 3 }
 0x4d3   :  { %v3622_v24 = vsel %vm3193_vm7, %v6775_v22, %v3620_v6  ;;  %v3458_v26 = vsel %vm3184_vm10, %v6776_v60, %v5955_v54  ;;  %v3902_v12 = vsel %vm6778_vm5, %v6195_v34, %v3901_v48  ;;  %v6779_v19 = vrot.slane %v6029_v43, 5 }
 0x4d4   :  { %v3624_v1 = vsel %vm3196_vm6, %v3623_v40, %v3622_v24  ;;  %v3460_v15 = vsel %vm3187_vm9, %v6777_v21, %v3458_v26  ;;  %v3467_v54 = vrot.slane %v6123_v25, 2  ;;  %v3919_v29 = vrot.slane %v6044_v32, 5  ;;  %3903 = vrot.lane.b32.xlu1 %v3902_v12, %s4850_s8 }
 0x4d5   :  { %v3626_v38 = vsel %vm3199_vm4, %v3625_v61, %v3624_v1  ;;  %v3462_v33 = vsel %vm3190_vm8, %v6779_v19, %v3460_v15  ;;  %v3469_v35 = vrot.slane %v6173_v3, 1  ;;  %v3767_v17 = vrot.slane %v6021_v8, 6 }
 0x4d6   :  { %v3628_v50 = vsel %vm6780_vm11, %v3627_v0, %v3626_v38  ;;  %v3464_v42 = vsel %vm3193_vm7, %v3463_v44, %v3462_v33  ;;  %v3921_v58 = vrot.slane %v6061_v59, 4  ;;  %v3769_v32 = vrot.slane %v6053_v55, 5 }
 0x4d7   :  { %3630 = vst.msk [vmem:[%s6726_s7 + $0x8] sm:$0xff] %vm3472_vm0, %v3628_v50  ;;  %v3466_v43 = vsel %vm3196_vm6, %v3465_v51, %v3464_v42  ;;  %v3771_v25 = vrot.slane %v6068_v13, 4  ;;  %v6781_v3 = vrot.slane %v5987_v45, 7  ;;  %v6783_v63 = vrot.slane %v6012_v30, 6 }
 0x4d8   :  { %v3468_v57 = vsel %vm3199_vm4, %v3467_v54, %v3466_v43  ;;  %v3923_v47 = vrot.slane %v6090_v7, 3  ;;  %v3925_v44 = vrot.slane %v6140_v46, 2  ;;  %v3927_v45 = vrot.slane %v6188_v23, 1 }
 0x4d9   :  { %v3916_v8 = vsel %vm3184_vm10, %v6781_v3, %v5965_v10  ;;  %v3470_v59 = vsel %vm6782_vm3, %v3469_v35, %v3468_v57  ;;  %v6784_v10 = vrot.slane %v5990_v31, 7  ;;  %v3773_v55 = vrot.slane %v6096_v5, 3 }
 0x4da   :  { %v3918_v18 = vsel %vm3187_vm9, %v6783_v63, %v3916_v8  ;;  %3473 = vst.msk [vmem:[%s6726_s7] sm:$0xff] %vm3472_vm0, %v3470_v59  ;;  %v3775_v7 = vrot.slane %v6147_v39, 2  ;;  %v3777_v52 = vrot.slane %v6195_v34, 1  ;;  %vm3586_vm13 = vcmask 917248  }
 0x4db   :  { %v3920_v13 = vsel %vm3190_vm8, %v3919_v29, %v3918_v18  ;;  %v3766_v30 = vsel %vm3184_vm10, %v6784_v10, %v5975_v62  ;;  %vm3567_vm10 = vcmask 786048   ;;  %vm3605_vm14 = vcmask 1048448  }
 0x4dc   :  { %v3922_v46 = vsel %vm3193_vm7, %v3921_v58, %v3920_v13  ;;  %v3768_v27 = vsel %vm3187_vm9, %v3767_v17, %v3766_v30  ;;  %vm6786_vm9 = vmmov %vm6752_vm1 }
 0x4dd   :  { %v3924_v36 = vsel %vm3196_vm6, %v3923_v47, %v3922_v46  ;;  %v3770_v20 = vsel %vm3190_vm8, %v3769_v32, %v3768_v27  ;;  %vm3548_vm8 = vcmask 654848  }
 0x4de   :  { %v3926_v23 = vsel %vm3199_vm4, %v3925_v44, %v3924_v36  ;;  %v3772_v31 = vsel %vm3193_vm7, %v3771_v25, %v3770_v20  ;;  %vm3491_vm7 = vcmask 261248  }
 0x4df   :  { %v3928_v62 = vsel %vm6785_vm12, %v3927_v45, %v3926_v23  ;;  %v3774_v5 = vsel %vm3196_vm6, %v3773_v55, %v3772_v31  ;;  %vm3529_vm6 = vcmask 523648  }
 0x4e0   :  { %3930 = vst.msk [vmem:[%s6726_s7 + $0x18] sm:$0xff] %vm3472_vm0, %v3928_v62  ;;  %v3776_v39 = vsel %vm3199_vm4, %v3775_v7, %v3774_v5  ;;  %vm3510_vm4 = vcmask 392448  }
 0x4e1   :  { %v3778_v16 = vsel %vm6786_vm9, %v3777_v52, %v3776_v39 }
 0x4e2   :  { %3780 = vst.msk [vmem:[%s6726_s7 + $0x10] sm:$0xff] %vm3472_vm0, %v3778_v16 }
 0x4ff   :  { %v3736_v34 = vpop.permute.xlu0 %3735 }
 0x500   :  { %v3584_v4 = vpop.permute.xlu1 %3583 }
 0x503   :  { %v3646_v56 = vpop.permute.xlu0 %3645 }
 0x504   :  { %3648 = vst.msk [vmem:[%s6726_s7 + $0x8] sm:$0xff] %vm3491_vm7, %v3646_v56  ;;  %v3489_v9 = vpop.permute.xlu1 %3488 }
 0x505   :  { %3492 = vst.msk [vmem:[%s6726_s7] sm:$0xff] %vm3491_vm7, %v3489_v9 }
 0x507   :  { %v3664_v49 = vpop.permute.xlu0 %3663 }
 0x508   :  { %3666 = vst.msk [vmem:[%s6726_s7 + $0x8] sm:$0xff] %vm3510_vm4, %v3664_v49  ;;  %v3508_v41 = vpop.permute.xlu1 %3507 }
 0x509   :  { %3511 = vst.msk [vmem:[%s6726_s7] sm:$0xff] %vm3510_vm4, %v3508_v41 }
 0x50b   :  { %v3682_v28 = vpop.permute.xlu0 %3681 }
 0x50c   :  { %3684 = vst.msk [vmem:[%s6726_s7 + $0x8] sm:$0xff] %vm3529_vm6, %v3682_v28  ;;  %v3527_v53 = vpop.permute.xlu1 %3526 }
 0x50d   :  { %3530 = vst.msk [vmem:[%s6726_s7] sm:$0xff] %vm3529_vm6, %v3527_v53 }
 0x50f   :  { %v3700_v40 = vpop.permute.xlu0 %3699 }
 0x510   :  { %3702 = vst.msk [vmem:[%s6726_s7 + $0x8] sm:$0xff] %vm3548_vm8, %v3700_v40  ;;  %v3546_v2 = vpop.permute.xlu1 %3545 }
 0x511   :  { %3549 = vst.msk [vmem:[%s6726_s7] sm:$0xff] %vm3548_vm8, %v3546_v2 }
 0x513   :  { %v3718_v11 = vpop.permute.xlu0 %3717 }
 0x514   :  { %3720 = vst.msk [vmem:[%s6726_s7 + $0x8] sm:$0xff] %vm3567_vm10, %v3718_v11  ;;  %v3565_v14 = vpop.permute.xlu1 %3564 }
 0x515   :  { %3568 = vst.msk [vmem:[%s6726_s7] sm:$0xff] %vm3567_vm10, %v3565_v14 }
 0x516   :  { %3738 = vst.msk [vmem:[%s6726_s7 + $0x8] sm:$0xff] %vm3586_vm13, %v3736_v34  ;;  %3587 = vst.msk [vmem:[%s6726_s7] sm:$0xff] %vm3586_vm13, %v3584_v4 }
 0x517   :  { %v3754_v6 = vpop.permute.xlu0 %3753 }
 0x518   :  { %3756 = vst.msk [vmem:[%s6726_s7 + $0x8] sm:$0xff] %vm3605_vm14, %v3754_v6  ;;  %v3603_v61 = vpop.permute.xlu1 %3602 }
 0x519   :  { %3606 = vst.msk [vmem:[%s6726_s7] sm:$0xff] %vm3605_vm14, %v3603_v61 }
 0x51b   :  { %v4036_v37 = vpop.permute.xlu0 %4035 }
 0x51c   :  { %v3886_v22 = vpop.permute.xlu1 %3885 }
 0x51f   :  { %v3946_v24 = vpop.permute.xlu0 %3945 }
 0x520   :  { %3948 = vst.msk [vmem:[%s6726_s7 + $0x18] sm:$0xff] %vm3491_vm7, %v3946_v24 }
 0x522   :  { %v3796_v0 = vpop.permute.xlu1 %3795 }
 0x523   :  { %3798 = vst.msk [vmem:[%s6726_s7 + $0x10] sm:$0xff] %vm3491_vm7, %v3796_v0 }
 0x526   :  { %v3964_v60 = vpop.permute.xlu0 %3963 }
 0x527   :  { %3966 = vst.msk [vmem:[%s6726_s7 + $0x18] sm:$0xff] %vm3510_vm4, %v3964_v60 }
 0x529   :  { %v3814_v26 = vpop.permute.xlu1 %3813 }
 0x52a   :  { %3816 = vst.msk [vmem:[%s6726_s7 + $0x10] sm:$0xff] %vm3510_vm4, %v3814_v26 }
 0x52d   :  { %v3982_v48 = vpop.permute.xlu0 %3981 }
 0x52e   :  { %3984 = vst.msk [vmem:[%s6726_s7 + $0x18] sm:$0xff] %vm3529_vm6, %v3982_v48 }
 0x530   :  { %v3832_v1 = vpop.permute.xlu1 %3831 }
 0x531   :  { %3834 = vst.msk [vmem:[%s6726_s7 + $0x10] sm:$0xff] %vm3529_vm6, %v3832_v1 }
 0x534   :  { %v4000_v21 = vpop.permute.xlu0 %3999 }
 0x535   :  { %4002 = vst.msk [vmem:[%s6726_s7 + $0x18] sm:$0xff] %vm3548_vm8, %v4000_v21 }
 0x537   :  { %v3850_v15 = vpop.permute.xlu1 %3849 }
 0x538   :  { %3852 = vst.msk [vmem:[%s6726_s7 + $0x10] sm:$0xff] %vm3548_vm8, %v3850_v15 }
 0x53b   :  { %v4018_v51 = vpop.permute.xlu0 %4017 }
 0x53c   :  { %4020 = vst.msk [vmem:[%s6726_s7 + $0x18] sm:$0xff] %vm3567_vm10, %v4018_v51 }
 0x53d   :  { %4038 = vst.msk [vmem:[%s6726_s7 + $0x18] sm:$0xff] %vm3586_vm13, %v4036_v37 }
 0x53e   :  { %v3868_v12 = vpop.permute.xlu1 %3867 }
 0x53f   :  { %3870 = vst.msk [vmem:[%s6726_s7 + $0x10] sm:$0xff] %vm3567_vm10, %v3868_v12 }
 0x540   :  { %3888 = vst.msk [vmem:[%s6726_s7 + $0x10] sm:$0xff] %vm3586_vm13, %v3886_v22 }
 0x542   :  { %v4054_v38 = vpop.permute.xlu0 %4053 }
 0x543   :  { %4056 = vst.msk [vmem:[%s6726_s7 + $0x18] sm:$0xff] %vm3605_vm14, %v4054_v38 }
 0x546   :  { %v3904_v19 = vpop.permute.xlu1 %3903 }
 0x547   :  { %3906 = vst.msk [vmem:[%s6726_s7 + $0x10] sm:$0xff] %vm3605_vm14, %v3904_v19 }

</bundles_post_ra>
